<compile_context>
chip_gen: v7x
topology: tpu7x:2x2x1
jax: 0.10.0
libtpu: 0.0.40
codegen_flags: <defaults>
</compile_context>

<pallas_src>
import functools
import math

import jax
import jax.numpy as jnp
from jax import lax
from jax.experimental import pallas as pl
from jax.experimental.pallas import tpu as pltpu

D_MODEL = 32
HEADS = 4
D_FF = 64
EPS = 1e-6
NEG_INF = -1e18


# ----------------------------- fused kernel -----------------------------------

def _layernorm(x, g, b):
    mu = jnp.mean(x, axis=-1, keepdims=True)
    var = jnp.mean((x - mu) ** 2, axis=-1, keepdims=True)
    return (x - mu) * lax.rsqrt(var + EPS) * g + b


def fused_layer_kernel(act_ref, mask_ref, w_ref, v_ref, o_ref, *,
                       batch, heads, d_ff, s_src, s_knl, s_his):
    B = batch
    D = o_ref.shape[-1]
    F = d_ff
    dk = D // heads

    n_src, n_knl, n_his = B * s_src, B * s_knl, B * s_his

    # ---- activations, sliced out of the packed slab (static, sublane-aligned)
    x = act_ref[0:n_src, :]                                       # (B*Ssrc, D)
    knl = act_ref[n_src:n_src + n_knl, :]                         # (B*Sknl, D)
    his = act_ref[n_src + n_knl:n_src + n_knl + n_his, :]         # (B*Shis, D)

    # ---- masks -> additive bias, computed once up front -----------------------
    neg_bias = jnp.where(mask_ref[...] > 0.5, NEG_INF, 0.0)      # (B, Ssrc+Sknl+Shis)
    src_bias = neg_bias[:, 0:s_src]
    knl_bias = neg_bias[:, s_src:s_src + s_knl]
    his_bias = neg_bias[:, s_src + s_knl:s_src + s_knl + s_his]

    # ---- slab slicing helpers (all-static offsets) ----------------------------
    def w(r0, rows, c0, cols):
        return w_ref[r0:r0 + rows, c0:c0 + cols]

    def vec(r, c0, cols):
        return v_ref[r:r + 1, c0:c0 + cols]

    ln1_g, ln1_b = vec(0, 0, D), vec(1, 0, D)
    ln2_g, ln2_b = vec(2, 0, D), vec(3, 0, D)
    ln3_g, ln3_b = vec(4, 0, D), vec(5, 0, D)
    fln_g, fln_b = vec(6, 0, D), vec(7, 0, D)

    # ---- hoisted K/V projections for knowledge / history attentions -----------
    # (depend only on kernel inputs -> pulled off the serial critical path so the
    #  scheduler can overlap them with attention-1's softmax/EUP work)
    knl_kv = (jnp.dot(knl, w(D, D, D, 2 * D), preferred_element_type=jnp.float32)
              + vec(9, D, 2 * D))                                 # (B*Sknl, 2D)
    his_kv = (jnp.dot(his, w(2 * D, D, D, 2 * D), preferred_element_type=jnp.float32)
              + vec(10, D, 2 * D))                                # (B*Shis, 2D)

    def attend(q, k, v, bias, wo, bo):
        # q: (B*Sq, D)  k,v: (B*Sk, D)  bias: (B, Sk)  -- 1/sqrt(dk) already in q
        Sq = q.shape[0] // B
        Sk = k.shape[0] // B
        ctx_rows = []
        for b in range(B):                                        # static, B tiny
            qb = q[b * Sq:(b + 1) * Sq, :]
            kb = k[b * Sk:(b + 1) * Sk, :]
            vb = v[b * Sk:(b + 1) * Sk, :]
            bb = bias[b:b + 1, :]                                  # (1, Sk)
            ctx_heads = []
            for h in range(heads):                                 # static, heads=4
                sl = slice(h * dk, (h + 1) * dk)
                # contract last dim of both operands -> no K transpose / vxpose
                s = lax.dot_general(qb[:, sl], kb[:, sl],
                                    (((1,), (1,)), ((), ())),
                                    preferred_element_type=jnp.float32)  # (Sq,Sk)
                s = s + bb
                s = s - jnp.max(s, axis=-1, keepdims=True)
                p = jnp.exp(s)
                p = p * pl.reciprocal(jnp.sum(p, axis=-1, keepdims=True),
                                      approx=True)
                ctx_heads.append(jnp.dot(p, vb[:, sl],
                                         preferred_element_type=jnp.float32))
            ctx_rows.append(jnp.concatenate(ctx_heads, axis=-1))   # lane concat (Sq,D)
        ctx = ctx_rows[0] if B == 1 else jnp.concatenate(ctx_rows, axis=0)  # (B*Sq,D)
        # single Wo matmul over the whole flattened batch
        return jnp.dot(ctx, wo, preferred_element_type=jnp.float32) + bo

    # 1) self attention over source (+ residual; dropout = identity in eval).
    #    One fused QKV projection (N = 3D) instead of three N = D matmuls.
    xn = _layernorm(x, ln1_g, ln1_b)
    qkv = (jnp.dot(xn, w(0, D, 0, 3 * D), preferred_element_type=jnp.float32)
           + vec(8, 0, 3 * D))
    query = attend(qkv[:, 0:D], qkv[:, D:2 * D], qkv[:, 2 * D:3 * D],
                   src_bias, w(3 * D, D, 0, D), vec(11, 0, D)) + x

    # 2) knowledge attention (key/value = knl_bank, query = LN(query)) (+ residual)
    qn = _layernorm(query, ln2_g, ln2_b)
    q_k = (jnp.dot(qn, w(D, D, 0, D), preferred_element_type=jnp.float32)
           + vec(9, 0, D))
    knl_out = attend(q_k, knl_kv[:, 0:D], knl_kv[:, D:2 * D],
                     knl_bias, w(4 * D, D, 0, D), vec(12, 0, D)) + query

    # 3) context attention over history bank (+ residual)
    kon = _layernorm(knl_out, ln3_g, ln3_b)
    q_c = (jnp.dot(kon, w(2 * D, D, 0, D), preferred_element_type=jnp.float32)
           + vec(10, 0, D))
    out = attend(q_c, his_kv[:, 0:D], his_kv[:, D:2 * D],
                 his_bias, w(5 * D, D, 0, D), vec(13, 0, D)) + knl_out

    # 4) position-wise feed forward: LN -> Linear -> ReLU -> Linear -> + residual
    on = _layernorm(out, fln_g, fln_b)
    hmid = jnp.maximum(
        jnp.dot(on, w(6 * D, D, 0, F), preferred_element_type=jnp.float32)
        + vec(14, 0, F), 0.0)
    y = (jnp.dot(hmid, w(7 * D, F, 0, D), preferred_element_type=jnp.float32)
         + vec(15, 0, D))
    o_ref[...] = y + out


# ----------------------------- slab packing ------------------------------------

def _pack_slabs(params):
    """Pack all weights into one (7D+F, 128) slab and all biases/LN vectors into
    one (16, 128) slab.  The 1/sqrt(dk) query scale is folded into the Q columns
    of both the fused QKV weight and its bias (matches onmt, which divides q
    after adding the bias)."""
    sa, ka, ca, f = (params["self_attn"], params["knl_attn"],
                     params["ctx_attn"], params["ffn"])
    D = sa["wq"].shape[0]
    F = f["w1"].shape[1]
    scale = 1.0 / math.sqrt(D // HEADS)

    def qkv_w(p):
        return jnp.concatenate([p["wq"] * scale, p["wk"], p["wv"]], axis=1)  # (D,3D)

    def qkv_b(p):
        return jnp.concatenate([p["bq"] * scale, p["bk"], p["bv"]], axis=1)  # (1,3D)

    def put(slab, r0, m):
        return slab.at[r0:r0 + m.shape[0], 0:m.shape[1]].set(m)

    w_slab = jnp.zeros((7 * D + F, 128), jnp.float32)
    w_slab = put(w_slab, 0 * D, qkv_w(sa))
    w_slab = put(w_slab, 1 * D, qkv_w(ka))
    w_slab = put(w_slab, 2 * D, qkv_w(ca))
    w_slab = put(w_slab, 3 * D, sa["wo"])
    w_slab = put(w_slab, 4 * D, ka["wo"])
    w_slab = put(w_slab, 5 * D, ca["wo"])
    w_slab = put(w_slab, 6 * D, f["w1"])
    w_slab = put(w_slab, 7 * D, f["w2"])

    v_slab = jnp.zeros((16, 128), jnp.float32)
    rows = [params["ln1_g"], params["ln1_b"], params["ln2_g"], params["ln2_b"],
            params["ln3_g"], params["ln3_b"], f["ln_g"], f["ln_b"],
            qkv_b(sa), qkv_b(ka), qkv_b(ca),
            sa["bo"], ka["bo"], ca["bo"], f["b1"], f["b2"]]
    for i, r in enumerate(rows):
        v_slab = put(v_slab, i, r.reshape(1, -1))
    return w_slab, v_slab


# ----------------------------- wrapper ------------------------------------------

def atransformer_encoder_layer(params, inputs, src_mask, knl_bank, knl_mask,
                               his_bank, his_mask):
    """model_mode2='default' forward. his_bank: [his_len, B, D] (PyTorch convention)."""
    B, Ssrc, D = inputs.shape
    Sknl = knl_bank.shape[1]
    his = jnp.transpose(his_bank, (1, 0, 2))                 # glue: [B, his_len, D]
    Shis = his.shape[1]

    # TODO(synk): in production the parameter slabs would be packed once, not per call.
    w_slab, v_slab = _pack_slabs(params)
    acts = jnp.concatenate([inputs.reshape(B * Ssrc, D),
                            knl_bank.reshape(B * Sknl, D),
                            his.reshape(B * Shis, D)], axis=0)          # (B*(S..), D)
    masks = jnp.concatenate([src_mask.reshape(B, Ssrc),
                             knl_mask.reshape(B, Sknl),
                             his_mask.reshape(B, Shis)], axis=1)        # (B, ΣSk)

    vmem = lambda: pl.BlockSpec(memory_space=pltpu.MemorySpace.VMEM)
    out = pl.pallas_call(
        functools.partial(fused_layer_kernel, batch=B, heads=HEADS, d_ff=D_FF,
                          s_src=Ssrc, s_knl=Sknl, s_his=Shis),
        out_shape=jax.ShapeDtypeStruct((B * Ssrc, D), jnp.float32),
        in_specs=[vmem(), vmem(), vmem(), vmem()],
        out_specs=vmem(),
    )(acts, masks, w_slab, v_slab)
    return out.reshape(B, Ssrc, D)


# ----------------------------- reference (pure JAX) -----------------------------

def _ref_ln(x, g, b):
    mu = jnp.mean(x, axis=-1, keepdims=True)
    var = jnp.mean((x - mu) ** 2, axis=-1, keepdims=True)
    return (x - mu) / jnp.sqrt(var + EPS) * g + b


def _ref_mha(q_in, kv, mask, res, p):
    B, Sq, D = q_in.shape
    Sk = kv.shape[1]
    dk = D // HEADS
    q = q_in @ p["wq"] + p["bq"]
    k = kv @ p["wk"] + p["bk"]
    v = kv @ p["wv"] + p["bv"]
    q = q.reshape(B, Sq, HEADS, dk).transpose(0, 2, 1, 3) / math.sqrt(dk)
    k = k.reshape(B, Sk, HEADS, dk).transpose(0, 2, 1, 3)
    v = v.reshape(B, Sk, HEADS, dk).transpose(0, 2, 1, 3)
    s = jnp.einsum("bhqd,bhkd->bhqk", q, k)
    s = jnp.where(mask[:, None, :, :] > 0.5, NEG_INF, s)
    p_attn = jax.nn.softmax(s, axis=-1)
    ctx = jnp.einsum("bhqk,bhkd->bhqd", p_attn, v)
    ctx = ctx.transpose(0, 2, 1, 3).reshape(B, Sq, D)
    return ctx @ p["wo"] + p["bo"] + res


def _ref_forward(params, inputs, src_mask, knl_bank, knl_mask, his_bank, his_mask):
    xn = _ref_ln(inputs, params["ln1_g"], params["ln1_b"])
    query = _ref_mha(xn, xn, src_mask, inputs, params["self_attn"])
    qn = _ref_ln(query, params["ln2_g"], params["ln2_b"])
    knl_out = _ref_mha(qn, knl_bank, knl_mask, query, params["knl_attn"])
    his = jnp.transpose(his_bank, (1, 0, 2))
    kn = _ref_ln(knl_out, params["ln3_g"], params["ln3_b"])
    out = _ref_mha(kn, his, his_mask, knl_out, params["ctx_attn"])
    f = params["ffn"]
    h = jnp.maximum(_ref_ln(out, f["ln_g"], f["ln_b"]) @ f["w1"] + f["b1"], 0.0)
    return h @ f["w2"] + f["b2"] + out


# ----------------------------- setup / main --------------------------------------

def _init_attn_params(key, d):
    ks = jax.random.split(key, 4)
    mk = lambda k, shape: (0.02 * jax.random.normal(k, shape)).astype(jnp.float32)
    return {
        "wq": mk(ks[0], (d, d)), "bq": jnp.zeros((1, d), jnp.float32),
        "wk": mk(ks[1], (d, d)), "bk": jnp.zeros((1, d), jnp.float32),
        "wv": mk(ks[2], (d, d)), "bv": jnp.zeros((1, d), jnp.float32),
        "wo": mk(ks[3], (d, d)), "bo": jnp.zeros((1, d), jnp.float32),
    }


def init_params(key, d, d_ff):
    k1, k2, k3, k4, k5 = jax.random.split(key, 5)
    mk = lambda k, shape: (0.02 * jax.random.normal(k, shape)).astype(jnp.float32)
    ones = lambda: jnp.ones((1, d), jnp.float32)
    zeros = lambda: jnp.zeros((1, d), jnp.float32)
    return {
        "self_attn": _init_attn_params(k1, d),
        "knl_attn": _init_attn_params(k2, d),
        "ctx_attn": _init_attn_params(k3, d),
        "ffn": {
            "ln_g": ones(), "ln_b": zeros(),
            "w1": mk(k4, (d, d_ff)), "b1": jnp.zeros((1, d_ff), jnp.float32),
            "w2": mk(k5, (d_ff, d)), "b2": jnp.zeros((1, d), jnp.float32),
        },
        "ln1_g": ones(), "ln1_b": zeros(),
        "ln2_g": ones(), "ln2_b": zeros(),
        "ln3_g": ones(), "ln3_b": zeros(),
    }


if __name__ == "__main__":
    B, S_SRC, S_KNL, S_HIS = 2, 8, 16, 8

    root = jax.random.PRNGKey(0)
    kp, kx, kk, kh = jax.random.split(root, 4)
    params = init_params(kp, D_MODEL, D_FF)

    inputs = jax.random.normal(kx, (B, S_SRC, D_MODEL), jnp.float32)
    knl_bank = jax.random.normal(kk, (B, S_KNL, D_MODEL), jnp.float32)
    his_bank = jax.random.normal(kh, (S_HIS, B, D_MODEL), jnp.float32)  # [len, B, D]

    # masks: 1.0 = masked-out key position
    src_mask = jnp.zeros((B, 1, S_SRC), jnp.float32)
    knl_mask = jnp.zeros((B, 1, S_KNL), jnp.float32).at[1, 0, -2:].set(1.0)
    his_mask = jnp.zeros((B, 1, S_HIS), jnp.float32).at[0, 0, -1:].set(1.0)

    fwd = jax.jit(atransformer_encoder_layer)
    out = fwd(params, inputs, src_mask, knl_bank, knl_mask, his_bank, his_mask)
    out = jax.block_until_ready(out)

    ref = _ref_forward(params, inputs, src_mask, knl_bank, knl_mask, his_bank, his_mask)
    assert out.shape == (B, S_SRC, D_MODEL)
    # tolerance has a small margin for the approx-reciprocal softmax denominator
    assert jnp.allclose(out, ref, atol=2e-3, rtol=2e-3), "mismatch vs pure-JAX reference"
    print("KERNEL_OK")
</pallas_src>

<mosaic_0001>
module attributes {stable_mosaic.version = 11 : i64} {
  func.func @fused_layer_kernel(%arg0: memref<64x32xf32, #tpu.memory_space<vmem>>, %arg1: memref<2x32xf32, #tpu.memory_space<vmem>>, %arg2: memref<288x128xf32, #tpu.memory_space<vmem>>, %arg3: memref<16x128xf32, #tpu.memory_space<vmem>>, %arg4: memref<16x32xf32, #tpu.memory_space<vmem>>) attributes {dimension_semantics = [], scalar_prefetch = 0 : i64, scratch_operands = 0 : i64, tpu.core_type = #tpu.core_type<tc>} {
    %c0 = arith.constant 0 : index
    %c0_0 = arith.constant 0 : index
    %0 = vector.load %arg0[%c0, %c0_0] : memref<64x32xf32, #tpu.memory_space<vmem>>, vector<16x32xf32>
    %c16 = arith.constant 16 : index
    %c0_1 = arith.constant 0 : index
    %1 = vector.load %arg0[%c16, %c0_1] : memref<64x32xf32, #tpu.memory_space<vmem>>, vector<32x32xf32>
    %c48 = arith.constant 48 : index
    %c0_2 = arith.constant 0 : index
    %2 = vector.load %arg0[%c48, %c0_2] : memref<64x32xf32, #tpu.memory_space<vmem>>, vector<16x32xf32>
    %c0_3 = arith.constant 0 : index
    %c0_4 = arith.constant 0 : index
    %3 = vector.load %arg1[%c0_3, %c0_4] : memref<2x32xf32, #tpu.memory_space<vmem>>, vector<2x32xf32>
    %cst = arith.constant 5.000000e-01 : f32
    %4 = vector.broadcast %cst : f32 to vector<2x32xf32>
    %5 = arith.cmpf ogt, %3, %4 : vector<2x32xf32>
    %cst_5 = arith.constant -9.99999984E+17 : f32
    %cst_6 = arith.constant 0.000000e+00 : f32
    %6 = vector.broadcast %cst_5 : f32 to vector<2x32xf32>
    %7 = vector.broadcast %cst_6 : f32 to vector<2x32xf32>
    %8 = arith.select %5, %6, %7 : vector<2x32xi1>, vector<2x32xf32>
    %9 = vector.extract_strided_slice %8 {offsets = [0, 0], sizes = [2, 8], strides = [1, 1]} : vector<2x32xf32> to vector<2x8xf32>
    %10 = vector.extract_strided_slice %8 {offsets = [0, 8], sizes = [2, 16], strides = [1, 1]} : vector<2x32xf32> to vector<2x16xf32>
    %11 = vector.extract_strided_slice %8 {offsets = [0, 24], sizes = [2, 8], strides = [1, 1]} : vector<2x32xf32> to vector<2x8xf32>
    %c0_7 = arith.constant 0 : index
    %c0_8 = arith.constant 0 : index
    %12 = vector.load %arg3[%c0_7, %c0_8] : memref<16x128xf32, #tpu.memory_space<vmem>>, vector<1x32xf32>
    %c1 = arith.constant 1 : index
    %c0_9 = arith.constant 0 : index
    %13 = vector.load %arg3[%c1, %c0_9] : memref<16x128xf32, #tpu.memory_space<vmem>>, vector<1x32xf32>
    %c2 = arith.constant 2 : index
    %c0_10 = arith.constant 0 : index
    %14 = vector.load %arg3[%c2, %c0_10] : memref<16x128xf32, #tpu.memory_space<vmem>>, vector<1x32xf32>
    %c3 = arith.constant 3 : index
    %c0_11 = arith.constant 0 : index
    %15 = vector.load %arg3[%c3, %c0_11] : memref<16x128xf32, #tpu.memory_space<vmem>>, vector<1x32xf32>
    %c4 = arith.constant 4 : index
    %c0_12 = arith.constant 0 : index
    %16 = vector.load %arg3[%c4, %c0_12] : memref<16x128xf32, #tpu.memory_space<vmem>>, vector<1x32xf32>
    %c5 = arith.constant 5 : index
    %c0_13 = arith.constant 0 : index
    %17 = vector.load %arg3[%c5, %c0_13] : memref<16x128xf32, #tpu.memory_space<vmem>>, vector<1x32xf32>
    %c6 = arith.constant 6 : index
    %c0_14 = arith.constant 0 : index
    %18 = vector.load %arg3[%c6, %c0_14] : memref<16x128xf32, #tpu.memory_space<vmem>>, vector<1x32xf32>
    %c7 = arith.constant 7 : index
    %c0_15 = arith.constant 0 : index
    %19 = vector.load %arg3[%c7, %c0_15] : memref<16x128xf32, #tpu.memory_space<vmem>>, vector<1x32xf32>
    %c32 = arith.constant 32 : index
    %c32_16 = arith.constant 32 : index
    %20 = vector.load %arg2[%c32, %c32_16] : memref<288x128xf32, #tpu.memory_space<vmem>>, vector<32x64xf32>
    %cst_17 = arith.constant dense<0.000000e+00> : vector<32x64xf32>
    %21 = tpu.matmul %1, %20, %cst_17 {dimension_numbers = #tpu.dot_dimension_numbers<[1], [0], [0], [1], [0, 0, 1, 1], [], []>} : vector<32x32xf32>, vector<32x64xf32>, vector<32x64xf32> -> vector<32x64xf32>
    %c9 = arith.constant 9 : index
    %c32_18 = arith.constant 32 : index
    %22 = vector.load %arg3[%c9, %c32_18] : memref<16x128xf32, #tpu.memory_space<vmem>>, vector<1x64xf32>
    %23 = vector.broadcast %22 : vector<1x64xf32> to vector<32x64xf32>
    %24 = arith.addf %21, %23 : vector<32x64xf32>
    %c64 = arith.constant 64 : index
    %c32_19 = arith.constant 32 : index
    %25 = vector.load %arg2[%c64, %c32_19] : memref<288x128xf32, #tpu.memory_space<vmem>>, vector<32x64xf32>
    %cst_20 = arith.constant dense<0.000000e+00> : vector<16x64xf32>
    %26 = tpu.matmul %2, %25, %cst_20 {dimension_numbers = #tpu.dot_dimension_numbers<[1], [0], [0], [1], [0, 0, 1, 1], [], []>} : vector<16x32xf32>, vector<32x64xf32>, vector<16x64xf32> -> vector<16x64xf32>
    %c10 = arith.constant 10 : index
    %c32_21 = arith.constant 32 : index
    %27 = vector.load %arg3[%c10, %c32_21] : memref<16x128xf32, #tpu.memory_space<vmem>>, vector<1x64xf32>
    %28 = vector.broadcast %27 : vector<1x64xf32> to vector<16x64xf32>
    %29 = arith.addf %26, %28 : vector<16x64xf32>
    %cst_22 = arith.constant dense<0.000000e+00> : vector<16xf32>
    %30 = vector.multi_reduction <add>, %0, %cst_22 [1] : vector<16x32xf32> to vector<16xf32>
    %31 = vector.shape_cast %30 : vector<16xf32> to vector<16x1xf32>
    %cst_23 = arith.constant 3.200000e+01 : f32
    %32 = vector.broadcast %cst_23 : f32 to vector<16x1xf32>
    %33 = arith.divf %31, %32 : vector<16x1xf32>
    %34 = vector.broadcast %33 : vector<16x1xf32> to vector<16x32xf32>
    %35 = arith.subf %0, %34 : vector<16x32xf32>
    %36 = arith.mulf %35, %35 : vector<16x32xf32>
    %cst_24 = arith.constant dense<0.000000e+00> : vector<16xf32>
    %37 = vector.multi_reduction <add>, %36, %cst_24 [1] : vector<16x32xf32> to vector<16xf32>
    %38 = vector.shape_cast %37 : vector<16xf32> to vector<16x1xf32>
    %cst_25 = arith.constant 3.200000e+01 : f32
    %39 = vector.broadcast %cst_25 : f32 to vector<16x1xf32>
    %40 = arith.divf %38, %39 : vector<16x1xf32>
    %41 = vector.broadcast %33 : vector<16x1xf32> to vector<16x32xf32>
    %42 = arith.subf %0, %41 : vector<16x32xf32>
    %cst_26 = arith.constant 9.99999997E-7 : f32
    %43 = vector.broadcast %cst_26 : f32 to vector<16x1xf32>
    %44 = arith.addf %40, %43 : vector<16x1xf32>
    %45 = math.rsqrt %44 : vector<16x1xf32>
    %46 = vector.broadcast %45 : vector<16x1xf32> to vector<16x32xf32>
    %47 = arith.mulf %42, %46 : vector<16x32xf32>
    %48 = vector.broadcast %12 : vector<1x32xf32> to vector<16x32xf32>
    %49 = arith.mulf %47, %48 : vector<16x32xf32>
    %50 = vector.broadcast %13 : vector<1x32xf32> to vector<16x32xf32>
    %51 = arith.addf %49, %50 : vector<16x32xf32>
    %c0_27 = arith.constant 0 : index
    %c0_28 = arith.constant 0 : index
    %52 = vector.load %arg2[%c0_27, %c0_28] : memref<288x128xf32, #tpu.memory_space<vmem>>, vector<32x96xf32>
    %cst_29 = arith.constant dense<0.000000e+00> : vector<16x96xf32>
    %53 = tpu.matmul %51, %52, %cst_29 {dimension_numbers = #tpu.dot_dimension_numbers<[1], [0], [0], [1], [0, 0, 1, 1], [], []>} : vector<16x32xf32>, vector<32x96xf32>, vector<16x96xf32> -> vector<16x96xf32>
    %c8 = arith.constant 8 : index
    %c0_30 = arith.constant 0 : index
    %54 = vector.load %arg3[%c8, %c0_30] : memref<16x128xf32, #tpu.memory_space<vmem>>, vector<1x96xf32>
    %55 = vector.broadcast %54 : vector<1x96xf32> to vector<16x96xf32>
    %56 = arith.addf %53, %55 : vector<16x96xf32>
    %57 = vector.extract_strided_slice %56 {offsets = [0, 0], sizes = [16, 32], strides = [1, 1]} : vector<16x96xf32> to vector<16x32xf32>
    %58 = vector.extract_strided_slice %56 {offsets = [0, 32], sizes = [16, 32], strides = [1, 1]} : vector<16x96xf32> to vector<16x32xf32>
    %59 = vector.extract_strided_slice %56 {offsets = [0, 64], sizes = [16, 32], strides = [1, 1]} : vector<16x96xf32> to vector<16x32xf32>
    %c96 = arith.constant 96 : index
    %c0_31 = arith.constant 0 : index
    %60 = vector.load %arg2[%c96, %c0_31] : memref<288x128xf32, #tpu.memory_space<vmem>>, vector<32x32xf32>
    %c11 = arith.constant 11 : index
    %c0_32 = arith.constant 0 : index
    %61 = vector.load %arg3[%c11, %c0_32] : memref<16x128xf32, #tpu.memory_space<vmem>>, vector<1x32xf32>
    %62 = vector.extract_strided_slice %57 {offsets = [0, 0], sizes = [8, 32], strides = [1, 1]} : vector<16x32xf32> to vector<8x32xf32>
    %63 = vector.extract_strided_slice %58 {offsets = [0, 0], sizes = [8, 32], strides = [1, 1]} : vector<16x32xf32> to vector<8x32xf32>
    %64 = vector.extract_strided_slice %59 {offsets = [0, 0], sizes = [8, 32], strides = [1, 1]} : vector<16x32xf32> to vector<8x32xf32>
    %65 = vector.extract_strided_slice %9 {offsets = [0, 0], sizes = [1, 8], strides = [1, 1]} : vector<2x8xf32> to vector<1x8xf32>
    %66 = vector.extract_strided_slice %62 {offsets = [0, 0], sizes = [8, 8], strides = [1, 1]} : vector<8x32xf32> to vector<8x8xf32>
    %67 = vector.extract_strided_slice %63 {offsets = [0, 0], sizes = [8, 8], strides = [1, 1]} : vector<8x32xf32> to vector<8x8xf32>
    %cst_33 = arith.constant dense<0.000000e+00> : vector<8x8xf32>
    %68 = tpu.matmul %66, %67, %cst_33 {dimension_numbers = #tpu.dot_dimension_numbers<[1], [1], [0], [0], [0, 0, 1, 0], [], []>} : vector<8x8xf32>, vector<8x8xf32>, vector<8x8xf32> -> vector<8x8xf32>
    %69 = vector.broadcast %65 : vector<1x8xf32> to vector<8x8xf32>
    %70 = arith.addf %68, %69 : vector<8x8xf32>
    %cst_34 = arith.constant dense<0xFF800000> : vector<8xf32>
    %71 = vector.multi_reduction <maximumf>, %70, %cst_34 [1] : vector<8x8xf32> to vector<8xf32>
    %72 = vector.shape_cast %71 : vector<8xf32> to vector<8x1xf32>
    %73 = vector.broadcast %72 : vector<8x1xf32> to vector<8x8xf32>
    %74 = arith.subf %70, %73 : vector<8x8xf32>
    %75 = math.exp %74 : vector<8x8xf32>
    %cst_35 = arith.constant dense<0.000000e+00> : vector<8xf32>
    %76 = vector.multi_reduction <add>, %75, %cst_35 [1] : vector<8x8xf32> to vector<8xf32>
    %77 = vector.shape_cast %76 : vector<8xf32> to vector<8x1xf32>
    %78 = tpu.reciprocal %77 {approx = true} : vector<8x1xf32> -> vector<8x1xf32>
    %79 = vector.broadcast %78 : vector<8x1xf32> to vector<8x8xf32>
    %80 = arith.mulf %75, %79 : vector<8x8xf32>
    %81 = vector.extract_strided_slice %64 {offsets = [0, 0], sizes = [8, 8], strides = [1, 1]} : vector<8x32xf32> to vector<8x8xf32>
    %cst_36 = arith.constant dense<0.000000e+00> : vector<8x8xf32>
    %82 = tpu.matmul %80, %81, %cst_36 {dimension_numbers = #tpu.dot_dimension_numbers<[1], [0], [0], [1], [0, 0, 1, 1], [], []>} : vector<8x8xf32>, vector<8x8xf32>, vector<8x8xf32> -> vector<8x8xf32>
    %83 = vector.extract_strided_slice %62 {offsets = [0, 8], sizes = [8, 8], strides = [1, 1]} : vector<8x32xf32> to vector<8x8xf32>
    %84 = vector.extract_strided_slice %63 {offsets = [0, 8], sizes = [8, 8], strides = [1, 1]} : vector<8x32xf32> to vector<8x8xf32>
    %cst_37 = arith.constant dense<0.000000e+00> : vector<8x8xf32>
    %85 = tpu.matmul %83, %84, %cst_37 {dimension_numbers = #tpu.dot_dimension_numbers<[1], [1], [0], [0], [0, 0, 1, 0], [], []>} : vector<8x8xf32>, vector<8x8xf32>, vector<8x8xf32> -> vector<8x8xf32>
    %86 = vector.broadcast %65 : vector<1x8xf32> to vector<8x8xf32>
    %87 = arith.addf %85, %86 : vector<8x8xf32>
    %cst_38 = arith.constant dense<0xFF800000> : vector<8xf32>
    %88 = vector.multi_reduction <maximumf>, %87, %cst_38 [1] : vector<8x8xf32> to vector<8xf32>
    %89 = vector.shape_cast %88 : vector<8xf32> to vector<8x1xf32>
    %90 = vector.broadcast %89 : vector<8x1xf32> to vector<8x8xf32>
    %91 = arith.subf %87, %90 : vector<8x8xf32>
    %92 = math.exp %91 : vector<8x8xf32>
    %cst_39 = arith.constant dense<0.000000e+00> : vector<8xf32>
    %93 = vector.multi_reduction <add>, %92, %cst_39 [1] : vector<8x8xf32> to vector<8xf32>
    %94 = vector.shape_cast %93 : vector<8xf32> to vector<8x1xf32>
    %95 = tpu.reciprocal %94 {approx = true} : vector<8x1xf32> -> vector<8x1xf32>
    %96 = vector.broadcast %95 : vector<8x1xf32> to vector<8x8xf32>
    %97 = arith.mulf %92, %96 : vector<8x8xf32>
    %98 = vector.extract_strided_slice %64 {offsets = [0, 8], sizes = [8, 8], strides = [1, 1]} : vector<8x32xf32> to vector<8x8xf32>
    %cst_40 = arith.constant dense<0.000000e+00> : vector<8x8xf32>
    %99 = tpu.matmul %97, %98, %cst_40 {dimension_numbers = #tpu.dot_dimension_numbers<[1], [0], [0], [1], [0, 0, 1, 1], [], []>} : vector<8x8xf32>, vector<8x8xf32>, vector<8x8xf32> -> vector<8x8xf32>
    %100 = vector.extract_strided_slice %62 {offsets = [0, 16], sizes = [8, 8], strides = [1, 1]} : vector<8x32xf32> to vector<8x8xf32>
    %101 = vector.extract_strided_slice %63 {offsets = [0, 16], sizes = [8, 8], strides = [1, 1]} : vector<8x32xf32> to vector<8x8xf32>
    %cst_41 = arith.constant dense<0.000000e+00> : vector<8x8xf32>
    %102 = tpu.matmul %100, %101, %cst_41 {dimension_numbers = #tpu.dot_dimension_numbers<[1], [1], [0], [0], [0, 0, 1, 0], [], []>} : vector<8x8xf32>, vector<8x8xf32>, vector<8x8xf32> -> vector<8x8xf32>
    %103 = vector.broadcast %65 : vector<1x8xf32> to vector<8x8xf32>
    %104 = arith.addf %102, %103 : vector<8x8xf32>
    %cst_42 = arith.constant dense<0xFF800000> : vector<8xf32>
    %105 = vector.multi_reduction <maximumf>, %104, %cst_42 [1] : vector<8x8xf32> to vector<8xf32>
    %106 = vector.shape_cast %105 : vector<8xf32> to vector<8x1xf32>
    %107 = vector.broadcast %106 : vector<8x1xf32> to vector<8x8xf32>
    %108 = arith.subf %104, %107 : vector<8x8xf32>
    %109 = math.exp %108 : vector<8x8xf32>
    %cst_43 = arith.constant dense<0.000000e+00> : vector<8xf32>
    %110 = vector.multi_reduction <add>, %109, %cst_43 [1] : vector<8x8xf32> to vector<8xf32>
    %111 = vector.shape_cast %110 : vector<8xf32> to vector<8x1xf32>
    %112 = tpu.reciprocal %111 {approx = true} : vector<8x1xf32> -> vector<8x1xf32>
    %113 = vector.broadcast %112 : vector<8x1xf32> to vector<8x8xf32>
    %114 = arith.mulf %109, %113 : vector<8x8xf32>
    %115 = vector.extract_strided_slice %64 {offsets = [0, 16], sizes = [8, 8], strides = [1, 1]} : vector<8x32xf32> to vector<8x8xf32>
    %cst_44 = arith.constant dense<0.000000e+00> : vector<8x8xf32>
    %116 = tpu.matmul %114, %115, %cst_44 {dimension_numbers = #tpu.dot_dimension_numbers<[1], [0], [0], [1], [0, 0, 1, 1], [], []>} : vector<8x8xf32>, vector<8x8xf32>, vector<8x8xf32> -> vector<8x8xf32>
    %117 = vector.extract_strided_slice %62 {offsets = [0, 24], sizes = [8, 8], strides = [1, 1]} : vector<8x32xf32> to vector<8x8xf32>
    %118 = vector.extract_strided_slice %63 {offsets = [0, 24], sizes = [8, 8], strides = [1, 1]} : vector<8x32xf32> to vector<8x8xf32>
    %cst_45 = arith.constant dense<0.000000e+00> : vector<8x8xf32>
    %119 = tpu.matmul %117, %118, %cst_45 {dimension_numbers = #tpu.dot_dimension_numbers<[1], [1], [0], [0], [0, 0, 1, 0], [], []>} : vector<8x8xf32>, vector<8x8xf32>, vector<8x8xf32> -> vector<8x8xf32>
    %120 = vector.broadcast %65 : vector<1x8xf32> to vector<8x8xf32>
    %121 = arith.addf %119, %120 : vector<8x8xf32>
    %cst_46 = arith.constant dense<0xFF800000> : vector<8xf32>
    %122 = vector.multi_reduction <maximumf>, %121, %cst_46 [1] : vector<8x8xf32> to vector<8xf32>
    %123 = vector.shape_cast %122 : vector<8xf32> to vector<8x1xf32>
    %124 = vector.broadcast %123 : vector<8x1xf32> to vector<8x8xf32>
    %125 = arith.subf %121, %124 : vector<8x8xf32>
    %126 = math.exp %125 : vector<8x8xf32>
    %cst_47 = arith.constant dense<0.000000e+00> : vector<8xf32>
    %127 = vector.multi_reduction <add>, %126, %cst_47 [1] : vector<8x8xf32> to vector<8xf32>
    %128 = vector.shape_cast %127 : vector<8xf32> to vector<8x1xf32>
    %129 = tpu.reciprocal %128 {approx = true} : vector<8x1xf32> -> vector<8x1xf32>
    %130 = vector.broadcast %129 : vector<8x1xf32> to vector<8x8xf32>
    %131 = arith.mulf %126, %130 : vector<8x8xf32>
    %132 = vector.extract_strided_slice %64 {offsets = [0, 24], sizes = [8, 8], strides = [1, 1]} : vector<8x32xf32> to vector<8x8xf32>
    %cst_48 = arith.constant dense<0.000000e+00> : vector<8x8xf32>
    %133 = tpu.matmul %131, %132, %cst_48 {dimension_numbers = #tpu.dot_dimension_numbers<[1], [0], [0], [1], [0, 0, 1, 1], [], []>} : vector<8x8xf32>, vector<8x8xf32>, vector<8x8xf32> -> vector<8x8xf32>
    %134 = tpu.concatenate %82, %99, %116, %133 in 1 : vector<8x8xf32>, vector<8x8xf32>, vector<8x8xf32>, vector<8x8xf32> -> vector<8x32xf32>
    %135 = vector.extract_strided_slice %57 {offsets = [8, 0], sizes = [8, 32], strides = [1, 1]} : vector<16x32xf32> to vector<8x32xf32>
    %136 = vector.extract_strided_slice %58 {offsets = [8, 0], sizes = [8, 32], strides = [1, 1]} : vector<16x32xf32> to vector<8x32xf32>
    %137 = vector.extract_strided_slice %59 {offsets = [8, 0], sizes = [8, 32], strides = [1, 1]} : vector<16x32xf32> to vector<8x32xf32>
    %138 = vector.extract_strided_slice %9 {offsets = [1, 0], sizes = [1, 8], strides = [1, 1]} : vector<2x8xf32> to vector<1x8xf32>
    %139 = vector.extract_strided_slice %135 {offsets = [0, 0], sizes = [8, 8], strides = [1, 1]} : vector<8x32xf32> to vector<8x8xf32>
    %140 = vector.extract_strided_slice %136 {offsets = [0, 0], sizes = [8, 8], strides = [1, 1]} : vector<8x32xf32> to vector<8x8xf32>
    %cst_49 = arith.constant dense<0.000000e+00> : vector<8x8xf32>
    %141 = tpu.matmul %139, %140, %cst_49 {dimension_numbers = #tpu.dot_dimension_numbers<[1], [1], [0], [0], [0, 0, 1, 0], [], []>} : vector<8x8xf32>, vector<8x8xf32>, vector<8x8xf32> -> vector<8x8xf32>
    %142 = vector.broadcast %138 : vector<1x8xf32> to vector<8x8xf32>
    %143 = arith.addf %141, %142 : vector<8x8xf32>
    %cst_50 = arith.constant dense<0xFF800000> : vector<8xf32>
    %144 = vector.multi_reduction <maximumf>, %143, %cst_50 [1] : vector<8x8xf32> to vector<8xf32>
    %145 = vector.shape_cast %144 : vector<8xf32> to vector<8x1xf32>
    %146 = vector.broadcast %145 : vector<8x1xf32> to vector<8x8xf32>
    %147 = arith.subf %143, %146 : vector<8x8xf32>
    %148 = math.exp %147 : vector<8x8xf32>
    %cst_51 = arith.constant dense<0.000000e+00> : vector<8xf32>
    %149 = vector.multi_reduction <add>, %148, %cst_51 [1] : vector<8x8xf32> to vector<8xf32>
    %150 = vector.shape_cast %149 : vector<8xf32> to vector<8x1xf32>
    %151 = tpu.reciprocal %150 {approx = true} : vector<8x1xf32> -> vector<8x1xf32>
    %152 = vector.broadcast %151 : vector<8x1xf32> to vector<8x8xf32>
    %153 = arith.mulf %148, %152 : vector<8x8xf32>
    %154 = vector.extract_strided_slice %137 {offsets = [0, 0], sizes = [8, 8], strides = [1, 1]} : vector<8x32xf32> to vector<8x8xf32>
    %cst_52 = arith.constant dense<0.000000e+00> : vector<8x8xf32>
    %155 = tpu.matmul %153, %154, %cst_52 {dimension_numbers = #tpu.dot_dimension_numbers<[1], [0], [0], [1], [0, 0, 1, 1], [], []>} : vector<8x8xf32>, vector<8x8xf32>, vector<8x8xf32> -> vector<8x8xf32>
    %156 = vector.extract_strided_slice %135 {offsets = [0, 8], sizes = [8, 8], strides = [1, 1]} : vector<8x32xf32> to vector<8x8xf32>
    %157 = vector.extract_strided_slice %136 {offsets = [0, 8], sizes = [8, 8], strides = [1, 1]} : vector<8x32xf32> to vector<8x8xf32>
    %cst_53 = arith.constant dense<0.000000e+00> : vector<8x8xf32>
    %158 = tpu.matmul %156, %157, %cst_53 {dimension_numbers = #tpu.dot_dimension_numbers<[1], [1], [0], [0], [0, 0, 1, 0], [], []>} : vector<8x8xf32>, vector<8x8xf32>, vector<8x8xf32> -> vector<8x8xf32>
    %159 = vector.broadcast %138 : vector<1x8xf32> to vector<8x8xf32>
    %160 = arith.addf %158, %159 : vector<8x8xf32>
    %cst_54 = arith.constant dense<0xFF800000> : vector<8xf32>
    %161 = vector.multi_reduction <maximumf>, %160, %cst_54 [1] : vector<8x8xf32> to vector<8xf32>
    %162 = vector.shape_cast %161 : vector<8xf32> to vector<8x1xf32>
    %163 = vector.broadcast %162 : vector<8x1xf32> to vector<8x8xf32>
    %164 = arith.subf %160, %163 : vector<8x8xf32>
    %165 = math.exp %164 : vector<8x8xf32>
    %cst_55 = arith.constant dense<0.000000e+00> : vector<8xf32>
    %166 = vector.multi_reduction <add>, %165, %cst_55 [1] : vector<8x8xf32> to vector<8xf32>
    %167 = vector.shape_cast %166 : vector<8xf32> to vector<8x1xf32>
    %168 = tpu.reciprocal %167 {approx = true} : vector<8x1xf32> -> vector<8x1xf32>
    %169 = vector.broadcast %168 : vector<8x1xf32> to vector<8x8xf32>
    %170 = arith.mulf %165, %169 : vector<8x8xf32>
    %171 = vector.extract_strided_slice %137 {offsets = [0, 8], sizes = [8, 8], strides = [1, 1]} : vector<8x32xf32> to vector<8x8xf32>
    %cst_56 = arith.constant dense<0.000000e+00> : vector<8x8xf32>
    %172 = tpu.matmul %170, %171, %cst_56 {dimension_numbers = #tpu.dot_dimension_numbers<[1], [0], [0], [1], [0, 0, 1, 1], [], []>} : vector<8x8xf32>, vector<8x8xf32>, vector<8x8xf32> -> vector<8x8xf32>
    %173 = vector.extract_strided_slice %135 {offsets = [0, 16], sizes = [8, 8], strides = [1, 1]} : vector<8x32xf32> to vector<8x8xf32>
    %174 = vector.extract_strided_slice %136 {offsets = [0, 16], sizes = [8, 8], strides = [1, 1]} : vector<8x32xf32> to vector<8x8xf32>
    %cst_57 = arith.constant dense<0.000000e+00> : vector<8x8xf32>
    %175 = tpu.matmul %173, %174, %cst_57 {dimension_numbers = #tpu.dot_dimension_numbers<[1], [1], [0], [0], [0, 0, 1, 0], [], []>} : vector<8x8xf32>, vector<8x8xf32>, vector<8x8xf32> -> vector<8x8xf32>
    %176 = vector.broadcast %138 : vector<1x8xf32> to vector<8x8xf32>
    %177 = arith.addf %175, %176 : vector<8x8xf32>
    %cst_58 = arith.constant dense<0xFF800000> : vector<8xf32>
    %178 = vector.multi_reduction <maximumf>, %177, %cst_58 [1] : vector<8x8xf32> to vector<8xf32>
    %179 = vector.shape_cast %178 : vector<8xf32> to vector<8x1xf32>
    %180 = vector.broadcast %179 : vector<8x1xf32> to vector<8x8xf32>
    %181 = arith.subf %177, %180 : vector<8x8xf32>
    %182 = math.exp %181 : vector<8x8xf32>
    %cst_59 = arith.constant dense<0.000000e+00> : vector<8xf32>
    %183 = vector.multi_reduction <add>, %182, %cst_59 [1] : vector<8x8xf32> to vector<8xf32>
    %184 = vector.shape_cast %183 : vector<8xf32> to vector<8x1xf32>
    %185 = tpu.reciprocal %184 {approx = true} : vector<8x1xf32> -> vector<8x1xf32>
    %186 = vector.broadcast %185 : vector<8x1xf32> to vector<8x8xf32>
    %187 = arith.mulf %182, %186 : vector<8x8xf32>
    %188 = vector.extract_strided_slice %137 {offsets = [0, 16], sizes = [8, 8], strides = [1, 1]} : vector<8x32xf32> to vector<8x8xf32>
    %cst_60 = arith.constant dense<0.000000e+00> : vector<8x8xf32>
    %189 = tpu.matmul %187, %188, %cst_60 {dimension_numbers = #tpu.dot_dimension_numbers<[1], [0], [0], [1], [0, 0, 1, 1], [], []>} : vector<8x8xf32>, vector<8x8xf32>, vector<8x8xf32> -> vector<8x8xf32>
    %190 = vector.extract_strided_slice %135 {offsets = [0, 24], sizes = [8, 8], strides = [1, 1]} : vector<8x32xf32> to vector<8x8xf32>
    %191 = vector.extract_strided_slice %136 {offsets = [0, 24], sizes = [8, 8], strides = [1, 1]} : vector<8x32xf32> to vector<8x8xf32>
    %cst_61 = arith.constant dense<0.000000e+00> : vector<8x8xf32>
    %192 = tpu.matmul %190, %191, %cst_61 {dimension_numbers = #tpu.dot_dimension_numbers<[1], [1], [0], [0], [0, 0, 1, 0], [], []>} : vector<8x8xf32>, vector<8x8xf32>, vector<8x8xf32> -> vector<8x8xf32>
    %193 = vector.broadcast %138 : vector<1x8xf32> to vector<8x8xf32>
    %194 = arith.addf %192, %193 : vector<8x8xf32>
    %cst_62 = arith.constant dense<0xFF800000> : vector<8xf32>
    %195 = vector.multi_reduction <maximumf>, %194, %cst_62 [1] : vector<8x8xf32> to vector<8xf32>
    %196 = vector.shape_cast %195 : vector<8xf32> to vector<8x1xf32>
    %197 = vector.broadcast %196 : vector<8x1xf32> to vector<8x8xf32>
    %198 = arith.subf %194, %197 : vector<8x8xf32>
    %199 = math.exp %198 : vector<8x8xf32>
    %cst_63 = arith.constant dense<0.000000e+00> : vector<8xf32>
    %200 = vector.multi_reduction <add>, %199, %cst_63 [1] : vector<8x8xf32> to vector<8xf32>
    %201 = vector.shape_cast %200 : vector<8xf32> to vector<8x1xf32>
    %202 = tpu.reciprocal %201 {approx = true} : vector<8x1xf32> -> vector<8x1xf32>
    %203 = vector.broadcast %202 : vector<8x1xf32> to vector<8x8xf32>
    %204 = arith.mulf %199, %203 : vector<8x8xf32>
    %205 = vector.extract_strided_slice %137 {offsets = [0, 24], sizes = [8, 8], strides = [1, 1]} : vector<8x32xf32> to vector<8x8xf32>
    %cst_64 = arith.constant dense<0.000000e+00> : vector<8x8xf32>
    %206 = tpu.matmul %204, %205, %cst_64 {dimension_numbers = #tpu.dot_dimension_numbers<[1], [0], [0], [1], [0, 0, 1, 1], [], []>} : vector<8x8xf32>, vector<8x8xf32>, vector<8x8xf32> -> vector<8x8xf32>
    %207 = tpu.concatenate %155, %172, %189, %206 in 1 : vector<8x8xf32>, vector<8x8xf32>, vector<8x8xf32>, vector<8x8xf32> -> vector<8x32xf32>
    %208 = tpu.concatenate %134, %207 in 0 : vector<8x32xf32>, vector<8x32xf32> -> vector<16x32xf32>
    %cst_65 = arith.constant dense<0.000000e+00> : vector<16x32xf32>
    %209 = tpu.matmul %208, %60, %cst_65 {dimension_numbers = #tpu.dot_dimension_numbers<[1], [0], [0], [1], [0, 0, 1, 1], [], []>} : vector<16x32xf32>, vector<32x32xf32>, vector<16x32xf32> -> vector<16x32xf32>
    %210 = vector.broadcast %61 : vector<1x32xf32> to vector<16x32xf32>
    %211 = arith.addf %209, %210 : vector<16x32xf32>
    %212 = arith.addf %211, %0 : vector<16x32xf32>
    %cst_66 = arith.constant dense<0.000000e+00> : vector<16xf32>
    %213 = vector.multi_reduction <add>, %212, %cst_66 [1] : vector<16x32xf32> to vector<16xf32>
    %214 = vector.shape_cast %213 : vector<16xf32> to vector<16x1xf32>
    %cst_67 = arith.constant 3.200000e+01 : f32
    %215 = vector.broadcast %cst_67 : f32 to vector<16x1xf32>
    %216 = arith.divf %214, %215 : vector<16x1xf32>
    %217 = vector.broadcast %216 : vector<16x1xf32> to vector<16x32xf32>
    %218 = arith.subf %212, %217 : vector<16x32xf32>
    %219 = arith.mulf %218, %218 : vector<16x32xf32>
    %cst_68 = arith.constant dense<0.000000e+00> : vector<16xf32>
    %220 = vector.multi_reduction <add>, %219, %cst_68 [1] : vector<16x32xf32> to vector<16xf32>
    %221 = vector.shape_cast %220 : vector<16xf32> to vector<16x1xf32>
    %cst_69 = arith.constant 3.200000e+01 : f32
    %222 = vector.broadcast %cst_69 : f32 to vector<16x1xf32>
    %223 = arith.divf %221, %222 : vector<16x1xf32>
    %224 = vector.broadcast %216 : vector<16x1xf32> to vector<16x32xf32>
    %225 = arith.subf %212, %224 : vector<16x32xf32>
    %cst_70 = arith.constant 9.99999997E-7 : f32
    %226 = vector.broadcast %cst_70 : f32 to vector<16x1xf32>
    %227 = arith.addf %223, %226 : vector<16x1xf32>
    %228 = math.rsqrt %227 : vector<16x1xf32>
    %229 = vector.broadcast %228 : vector<16x1xf32> to vector<16x32xf32>
    %230 = arith.mulf %225, %229 : vector<16x32xf32>
    %231 = vector.broadcast %14 : vector<1x32xf32> to vector<16x32xf32>
    %232 = arith.mulf %230, %231 : vector<16x32xf32>
    %233 = vector.broadcast %15 : vector<1x32xf32> to vector<16x32xf32>
    %234 = arith.addf %232, %233 : vector<16x32xf32>
    %c32_71 = arith.constant 32 : index
    %c0_72 = arith.constant 0 : index
    %235 = vector.load %arg2[%c32_71, %c0_72] : memref<288x128xf32, #tpu.memory_space<vmem>>, vector<32x32xf32>
    %cst_73 = arith.constant dense<0.000000e+00> : vector<16x32xf32>
    %236 = tpu.matmul %234, %235, %cst_73 {dimension_numbers = #tpu.dot_dimension_numbers<[1], [0], [0], [1], [0, 0, 1, 1], [], []>} : vector<16x32xf32>, vector<32x32xf32>, vector<16x32xf32> -> vector<16x32xf32>
    %c9_74 = arith.constant 9 : index
    %c0_75 = arith.constant 0 : index
    %237 = vector.load %arg3[%c9_74, %c0_75] : memref<16x128xf32, #tpu.memory_space<vmem>>, vector<1x32xf32>
    %238 = vector.broadcast %237 : vector<1x32xf32> to vector<16x32xf32>
    %239 = arith.addf %236, %238 : vector<16x32xf32>
    %240 = vector.extract_strided_slice %24 {offsets = [0, 0], sizes = [32, 32], strides = [1, 1]} : vector<32x64xf32> to vector<32x32xf32>
    %241 = vector.extract_strided_slice %24 {offsets = [0, 32], sizes = [32, 32], strides = [1, 1]} : vector<32x64xf32> to vector<32x32xf32>
    %c128 = arith.constant 128 : index
    %c0_76 = arith.constant 0 : index
    %242 = vector.load %arg2[%c128, %c0_76] : memref<288x128xf32, #tpu.memory_space<vmem>>, vector<32x32xf32>
    %c12 = arith.constant 12 : index
    %c0_77 = arith.constant 0 : index
    %243 = vector.load %arg3[%c12, %c0_77] : memref<16x128xf32, #tpu.memory_space<vmem>>, vector<1x32xf32>
    %244 = vector.extract_strided_slice %239 {offsets = [0, 0], sizes = [8, 32], strides = [1, 1]} : vector<16x32xf32> to vector<8x32xf32>
    %245 = vector.extract_strided_slice %240 {offsets = [0, 0], sizes = [16, 32], strides = [1, 1]} : vector<32x32xf32> to vector<16x32xf32>
    %246 = vector.extract_strided_slice %241 {offsets = [0, 0], sizes = [16, 32], strides = [1, 1]} : vector<32x32xf32> to vector<16x32xf32>
    %247 = vector.extract_strided_slice %10 {offsets = [0, 0], sizes = [1, 16], strides = [1, 1]} : vector<2x16xf32> to vector<1x16xf32>
    %248 = vector.extract_strided_slice %244 {offsets = [0, 0], sizes = [8, 8], strides = [1, 1]} : vector<8x32xf32> to vector<8x8xf32>
    %249 = vector.extract_strided_slice %245 {offsets = [0, 0], sizes = [16, 8], strides = [1, 1]} : vector<16x32xf32> to vector<16x8xf32>
    %cst_78 = arith.constant dense<0.000000e+00> : vector<8x16xf32>
    %250 = tpu.matmul %248, %249, %cst_78 {dimension_numbers = #tpu.dot_dimension_numbers<[1], [1], [0], [0], [0, 0, 1, 0], [], []>} : vector<8x8xf32>, vector<16x8xf32>, vector<8x16xf32> -> vector<8x16xf32>
    %251 = vector.broadcast %247 : vector<1x16xf32> to vector<8x16xf32>
    %252 = arith.addf %250, %251 : vector<8x16xf32>
    %cst_79 = arith.constant dense<0xFF800000> : vector<8xf32>
    %253 = vector.multi_reduction <maximumf>, %252, %cst_79 [1] : vector<8x16xf32> to vector<8xf32>
    %254 = vector.shape_cast %253 : vector<8xf32> to vector<8x1xf32>
    %255 = vector.broadcast %254 : vector<8x1xf32> to vector<8x16xf32>
    %256 = arith.subf %252, %255 : vector<8x16xf32>
    %257 = math.exp %256 : vector<8x16xf32>
    %cst_80 = arith.constant dense<0.000000e+00> : vector<8xf32>
    %258 = vector.multi_reduction <add>, %257, %cst_80 [1] : vector<8x16xf32> to vector<8xf32>
    %259 = vector.shape_cast %258 : vector<8xf32> to vector<8x1xf32>
    %260 = tpu.reciprocal %259 {approx = true} : vector<8x1xf32> -> vector<8x1xf32>
    %261 = vector.broadcast %260 : vector<8x1xf32> to vector<8x16xf32>
    %262 = arith.mulf %257, %261 : vector<8x16xf32>
    %263 = vector.extract_strided_slice %246 {offsets = [0, 0], sizes = [16, 8], strides = [1, 1]} : vector<16x32xf32> to vector<16x8xf32>
    %cst_81 = arith.constant dense<0.000000e+00> : vector<8x8xf32>
    %264 = tpu.matmul %262, %263, %cst_81 {dimension_numbers = #tpu.dot_dimension_numbers<[1], [0], [0], [1], [0, 0, 1, 1], [], []>} : vector<8x16xf32>, vector<16x8xf32>, vector<8x8xf32> -> vector<8x8xf32>
    %265 = vector.extract_strided_slice %244 {offsets = [0, 8], sizes = [8, 8], strides = [1, 1]} : vector<8x32xf32> to vector<8x8xf32>
    %266 = vector.extract_strided_slice %245 {offsets = [0, 8], sizes = [16, 8], strides = [1, 1]} : vector<16x32xf32> to vector<16x8xf32>
    %cst_82 = arith.constant dense<0.000000e+00> : vector<8x16xf32>
    %267 = tpu.matmul %265, %266, %cst_82 {dimension_numbers = #tpu.dot_dimension_numbers<[1], [1], [0], [0], [0, 0, 1, 0], [], []>} : vector<8x8xf32>, vector<16x8xf32>, vector<8x16xf32> -> vector<8x16xf32>
    %268 = vector.broadcast %247 : vector<1x16xf32> to vector<8x16xf32>
    %269 = arith.addf %267, %268 : vector<8x16xf32>
    %cst_83 = arith.constant dense<0xFF800000> : vector<8xf32>
    %270 = vector.multi_reduction <maximumf>, %269, %cst_83 [1] : vector<8x16xf32> to vector<8xf32>
    %271 = vector.shape_cast %270 : vector<8xf32> to vector<8x1xf32>
    %272 = vector.broadcast %271 : vector<8x1xf32> to vector<8x16xf32>
    %273 = arith.subf %269, %272 : vector<8x16xf32>
    %274 = math.exp %273 : vector<8x16xf32>
    %cst_84 = arith.constant dense<0.000000e+00> : vector<8xf32>
    %275 = vector.multi_reduction <add>, %274, %cst_84 [1] : vector<8x16xf32> to vector<8xf32>
    %276 = vector.shape_cast %275 : vector<8xf32> to vector<8x1xf32>
    %277 = tpu.reciprocal %276 {approx = true} : vector<8x1xf32> -> vector<8x1xf32>
    %278 = vector.broadcast %277 : vector<8x1xf32> to vector<8x16xf32>
    %279 = arith.mulf %274, %278 : vector<8x16xf32>
    %280 = vector.extract_strided_slice %246 {offsets = [0, 8], sizes = [16, 8], strides = [1, 1]} : vector<16x32xf32> to vector<16x8xf32>
    %cst_85 = arith.constant dense<0.000000e+00> : vector<8x8xf32>
    %281 = tpu.matmul %279, %280, %cst_85 {dimension_numbers = #tpu.dot_dimension_numbers<[1], [0], [0], [1], [0, 0, 1, 1], [], []>} : vector<8x16xf32>, vector<16x8xf32>, vector<8x8xf32> -> vector<8x8xf32>
    %282 = vector.extract_strided_slice %244 {offsets = [0, 16], sizes = [8, 8], strides = [1, 1]} : vector<8x32xf32> to vector<8x8xf32>
    %283 = vector.extract_strided_slice %245 {offsets = [0, 16], sizes = [16, 8], strides = [1, 1]} : vector<16x32xf32> to vector<16x8xf32>
    %cst_86 = arith.constant dense<0.000000e+00> : vector<8x16xf32>
    %284 = tpu.matmul %282, %283, %cst_86 {dimension_numbers = #tpu.dot_dimension_numbers<[1], [1], [0], [0], [0, 0, 1, 0], [], []>} : vector<8x8xf32>, vector<16x8xf32>, vector<8x16xf32> -> vector<8x16xf32>
    %285 = vector.broadcast %247 : vector<1x16xf32> to vector<8x16xf32>
    %286 = arith.addf %284, %285 : vector<8x16xf32>
    %cst_87 = arith.constant dense<0xFF800000> : vector<8xf32>
    %287 = vector.multi_reduction <maximumf>, %286, %cst_87 [1] : vector<8x16xf32> to vector<8xf32>
    %288 = vector.shape_cast %287 : vector<8xf32> to vector<8x1xf32>
    %289 = vector.broadcast %288 : vector<8x1xf32> to vector<8x16xf32>
    %290 = arith.subf %286, %289 : vector<8x16xf32>
    %291 = math.exp %290 : vector<8x16xf32>
    %cst_88 = arith.constant dense<0.000000e+00> : vector<8xf32>
    %292 = vector.multi_reduction <add>, %291, %cst_88 [1] : vector<8x16xf32> to vector<8xf32>
    %293 = vector.shape_cast %292 : vector<8xf32> to vector<8x1xf32>
    %294 = tpu.reciprocal %293 {approx = true} : vector<8x1xf32> -> vector<8x1xf32>
    %295 = vector.broadcast %294 : vector<8x1xf32> to vector<8x16xf32>
    %296 = arith.mulf %291, %295 : vector<8x16xf32>
    %297 = vector.extract_strided_slice %246 {offsets = [0, 16], sizes = [16, 8], strides = [1, 1]} : vector<16x32xf32> to vector<16x8xf32>
    %cst_89 = arith.constant dense<0.000000e+00> : vector<8x8xf32>
    %298 = tpu.matmul %296, %297, %cst_89 {dimension_numbers = #tpu.dot_dimension_numbers<[1], [0], [0], [1], [0, 0, 1, 1], [], []>} : vector<8x16xf32>, vector<16x8xf32>, vector<8x8xf32> -> vector<8x8xf32>
    %299 = vector.extract_strided_slice %244 {offsets = [0, 24], sizes = [8, 8], strides = [1, 1]} : vector<8x32xf32> to vector<8x8xf32>
    %300 = vector.extract_strided_slice %245 {offsets = [0, 24], sizes = [16, 8], strides = [1, 1]} : vector<16x32xf32> to vector<16x8xf32>
    %cst_90 = arith.constant dense<0.000000e+00> : vector<8x16xf32>
    %301 = tpu.matmul %299, %300, %cst_90 {dimension_numbers = #tpu.dot_dimension_numbers<[1], [1], [0], [0], [0, 0, 1, 0], [], []>} : vector<8x8xf32>, vector<16x8xf32>, vector<8x16xf32> -> vector<8x16xf32>
    %302 = vector.broadcast %247 : vector<1x16xf32> to vector<8x16xf32>
    %303 = arith.addf %301, %302 : vector<8x16xf32>
    %cst_91 = arith.constant dense<0xFF800000> : vector<8xf32>
    %304 = vector.multi_reduction <maximumf>, %303, %cst_91 [1] : vector<8x16xf32> to vector<8xf32>
    %305 = vector.shape_cast %304 : vector<8xf32> to vector<8x1xf32>
    %306 = vector.broadcast %305 : vector<8x1xf32> to vector<8x16xf32>
    %307 = arith.subf %303, %306 : vector<8x16xf32>
    %308 = math.exp %307 : vector<8x16xf32>
    %cst_92 = arith.constant dense<0.000000e+00> : vector<8xf32>
    %309 = vector.multi_reduction <add>, %308, %cst_92 [1] : vector<8x16xf32> to vector<8xf32>
    %310 = vector.shape_cast %309 : vector<8xf32> to vector<8x1xf32>
    %311 = tpu.reciprocal %310 {approx = true} : vector<8x1xf32> -> vector<8x1xf32>
    %312 = vector.broadcast %311 : vector<8x1xf32> to vector<8x16xf32>
    %313 = arith.mulf %308, %312 : vector<8x16xf32>
    %314 = vector.extract_strided_slice %246 {offsets = [0, 24], sizes = [16, 8], strides = [1, 1]} : vector<16x32xf32> to vector<16x8xf32>
    %cst_93 = arith.constant dense<0.000000e+00> : vector<8x8xf32>
    %315 = tpu.matmul %313, %314, %cst_93 {dimension_numbers = #tpu.dot_dimension_numbers<[1], [0], [0], [1], [0, 0, 1, 1], [], []>} : vector<8x16xf32>, vector<16x8xf32>, vector<8x8xf32> -> vector<8x8xf32>
    %316 = tpu.concatenate %264, %281, %298, %315 in 1 : vector<8x8xf32>, vector<8x8xf32>, vector<8x8xf32>, vector<8x8xf32> -> vector<8x32xf32>
    %317 = vector.extract_strided_slice %239 {offsets = [8, 0], sizes = [8, 32], strides = [1, 1]} : vector<16x32xf32> to vector<8x32xf32>
    %318 = vector.extract_strided_slice %240 {offsets = [16, 0], sizes = [16, 32], strides = [1, 1]} : vector<32x32xf32> to vector<16x32xf32>
    %319 = vector.extract_strided_slice %241 {offsets = [16, 0], sizes = [16, 32], strides = [1, 1]} : vector<32x32xf32> to vector<16x32xf32>
    %320 = vector.extract_strided_slice %10 {offsets = [1, 0], sizes = [1, 16], strides = [1, 1]} : vector<2x16xf32> to vector<1x16xf32>
    %321 = vector.extract_strided_slice %317 {offsets = [0, 0], sizes = [8, 8], strides = [1, 1]} : vector<8x32xf32> to vector<8x8xf32>
    %322 = vector.extract_strided_slice %318 {offsets = [0, 0], sizes = [16, 8], strides = [1, 1]} : vector<16x32xf32> to vector<16x8xf32>
    %cst_94 = arith.constant dense<0.000000e+00> : vector<8x16xf32>
    %323 = tpu.matmul %321, %322, %cst_94 {dimension_numbers = #tpu.dot_dimension_numbers<[1], [1], [0], [0], [0, 0, 1, 0], [], []>} : vector<8x8xf32>, vector<16x8xf32>, vector<8x16xf32> -> vector<8x16xf32>
    %324 = vector.broadcast %320 : vector<1x16xf32> to vector<8x16xf32>
    %325 = arith.addf %323, %324 : vector<8x16xf32>
    %cst_95 = arith.constant dense<0xFF800000> : vector<8xf32>
    %326 = vector.multi_reduction <maximumf>, %325, %cst_95 [1] : vector<8x16xf32> to vector<8xf32>
    %327 = vector.shape_cast %326 : vector<8xf32> to vector<8x1xf32>
    %328 = vector.broadcast %327 : vector<8x1xf32> to vector<8x16xf32>
    %329 = arith.subf %325, %328 : vector<8x16xf32>
    %330 = math.exp %329 : vector<8x16xf32>
    %cst_96 = arith.constant dense<0.000000e+00> : vector<8xf32>
    %331 = vector.multi_reduction <add>, %330, %cst_96 [1] : vector<8x16xf32> to vector<8xf32>
    %332 = vector.shape_cast %331 : vector<8xf32> to vector<8x1xf32>
    %333 = tpu.reciprocal %332 {approx = true} : vector<8x1xf32> -> vector<8x1xf32>
    %334 = vector.broadcast %333 : vector<8x1xf32> to vector<8x16xf32>
    %335 = arith.mulf %330, %334 : vector<8x16xf32>
    %336 = vector.extract_strided_slice %319 {offsets = [0, 0], sizes = [16, 8], strides = [1, 1]} : vector<16x32xf32> to vector<16x8xf32>
    %cst_97 = arith.constant dense<0.000000e+00> : vector<8x8xf32>
    %337 = tpu.matmul %335, %336, %cst_97 {dimension_numbers = #tpu.dot_dimension_numbers<[1], [0], [0], [1], [0, 0, 1, 1], [], []>} : vector<8x16xf32>, vector<16x8xf32>, vector<8x8xf32> -> vector<8x8xf32>
    %338 = vector.extract_strided_slice %317 {offsets = [0, 8], sizes = [8, 8], strides = [1, 1]} : vector<8x32xf32> to vector<8x8xf32>
    %339 = vector.extract_strided_slice %318 {offsets = [0, 8], sizes = [16, 8], strides = [1, 1]} : vector<16x32xf32> to vector<16x8xf32>
    %cst_98 = arith.constant dense<0.000000e+00> : vector<8x16xf32>
    %340 = tpu.matmul %338, %339, %cst_98 {dimension_numbers = #tpu.dot_dimension_numbers<[1], [1], [0], [0], [0, 0, 1, 0], [], []>} : vector<8x8xf32>, vector<16x8xf32>, vector<8x16xf32> -> vector<8x16xf32>
    %341 = vector.broadcast %320 : vector<1x16xf32> to vector<8x16xf32>
    %342 = arith.addf %340, %341 : vector<8x16xf32>
    %cst_99 = arith.constant dense<0xFF800000> : vector<8xf32>
    %343 = vector.multi_reduction <maximumf>, %342, %cst_99 [1] : vector<8x16xf32> to vector<8xf32>
    %344 = vector.shape_cast %343 : vector<8xf32> to vector<8x1xf32>
    %345 = vector.broadcast %344 : vector<8x1xf32> to vector<8x16xf32>
    %346 = arith.subf %342, %345 : vector<8x16xf32>
    %347 = math.exp %346 : vector<8x16xf32>
    %cst_100 = arith.constant dense<0.000000e+00> : vector<8xf32>
    %348 = vector.multi_reduction <add>, %347, %cst_100 [1] : vector<8x16xf32> to vector<8xf32>
    %349 = vector.shape_cast %348 : vector<8xf32> to vector<8x1xf32>
    %350 = tpu.reciprocal %349 {approx = true} : vector<8x1xf32> -> vector<8x1xf32>
    %351 = vector.broadcast %350 : vector<8x1xf32> to vector<8x16xf32>
    %352 = arith.mulf %347, %351 : vector<8x16xf32>
    %353 = vector.extract_strided_slice %319 {offsets = [0, 8], sizes = [16, 8], strides = [1, 1]} : vector<16x32xf32> to vector<16x8xf32>
    %cst_101 = arith.constant dense<0.000000e+00> : vector<8x8xf32>
    %354 = tpu.matmul %352, %353, %cst_101 {dimension_numbers = #tpu.dot_dimension_numbers<[1], [0], [0], [1], [0, 0, 1, 1], [], []>} : vector<8x16xf32>, vector<16x8xf32>, vector<8x8xf32> -> vector<8x8xf32>
    %355 = vector.extract_strided_slice %317 {offsets = [0, 16], sizes = [8, 8], strides = [1, 1]} : vector<8x32xf32> to vector<8x8xf32>
    %356 = vector.extract_strided_slice %318 {offsets = [0, 16], sizes = [16, 8], strides = [1, 1]} : vector<16x32xf32> to vector<16x8xf32>
    %cst_102 = arith.constant dense<0.000000e+00> : vector<8x16xf32>
    %357 = tpu.matmul %355, %356, %cst_102 {dimension_numbers = #tpu.dot_dimension_numbers<[1], [1], [0], [0], [0, 0, 1, 0], [], []>} : vector<8x8xf32>, vector<16x8xf32>, vector<8x16xf32> -> vector<8x16xf32>
    %358 = vector.broadcast %320 : vector<1x16xf32> to vector<8x16xf32>
    %359 = arith.addf %357, %358 : vector<8x16xf32>
    %cst_103 = arith.constant dense<0xFF800000> : vector<8xf32>
    %360 = vector.multi_reduction <maximumf>, %359, %cst_103 [1] : vector<8x16xf32> to vector<8xf32>
    %361 = vector.shape_cast %360 : vector<8xf32> to vector<8x1xf32>
    %362 = vector.broadcast %361 : vector<8x1xf32> to vector<8x16xf32>
    %363 = arith.subf %359, %362 : vector<8x16xf32>
    %364 = math.exp %363 : vector<8x16xf32>
    %cst_104 = arith.constant dense<0.000000e+00> : vector<8xf32>
    %365 = vector.multi_reduction <add>, %364, %cst_104 [1] : vector<8x16xf32> to vector<8xf32>
    %366 = vector.shape_cast %365 : vector<8xf32> to vector<8x1xf32>
    %367 = tpu.reciprocal %366 {approx = true} : vector<8x1xf32> -> vector<8x1xf32>
    %368 = vector.broadcast %367 : vector<8x1xf32> to vector<8x16xf32>
    %369 = arith.mulf %364, %368 : vector<8x16xf32>
    %370 = vector.extract_strided_slice %319 {offsets = [0, 16], sizes = [16, 8], strides = [1, 1]} : vector<16x32xf32> to vector<16x8xf32>
    %cst_105 = arith.constant dense<0.000000e+00> : vector<8x8xf32>
    %371 = tpu.matmul %369, %370, %cst_105 {dimension_numbers = #tpu.dot_dimension_numbers<[1], [0], [0], [1], [0, 0, 1, 1], [], []>} : vector<8x16xf32>, vector<16x8xf32>, vector<8x8xf32> -> vector<8x8xf32>
    %372 = vector.extract_strided_slice %317 {offsets = [0, 24], sizes = [8, 8], strides = [1, 1]} : vector<8x32xf32> to vector<8x8xf32>
    %373 = vector.extract_strided_slice %318 {offsets = [0, 24], sizes = [16, 8], strides = [1, 1]} : vector<16x32xf32> to vector<16x8xf32>
    %cst_106 = arith.constant dense<0.000000e+00> : vector<8x16xf32>
    %374 = tpu.matmul %372, %373, %cst_106 {dimension_numbers = #tpu.dot_dimension_numbers<[1], [1], [0], [0], [0, 0, 1, 0], [], []>} : vector<8x8xf32>, vector<16x8xf32>, vector<8x16xf32> -> vector<8x16xf32>
    %375 = vector.broadcast %320 : vector<1x16xf32> to vector<8x16xf32>
    %376 = arith.addf %374, %375 : vector<8x16xf32>
    %cst_107 = arith.constant dense<0xFF800000> : vector<8xf32>
    %377 = vector.multi_reduction <maximumf>, %376, %cst_107 [1] : vector<8x16xf32> to vector<8xf32>
    %378 = vector.shape_cast %377 : vector<8xf32> to vector<8x1xf32>
    %379 = vector.broadcast %378 : vector<8x1xf32> to vector<8x16xf32>
    %380 = arith.subf %376, %379 : vector<8x16xf32>
    %381 = math.exp %380 : vector<8x16xf32>
    %cst_108 = arith.constant dense<0.000000e+00> : vector<8xf32>
    %382 = vector.multi_reduction <add>, %381, %cst_108 [1] : vector<8x16xf32> to vector<8xf32>
    %383 = vector.shape_cast %382 : vector<8xf32> to vector<8x1xf32>
    %384 = tpu.reciprocal %383 {approx = true} : vector<8x1xf32> -> vector<8x1xf32>
    %385 = vector.broadcast %384 : vector<8x1xf32> to vector<8x16xf32>
    %386 = arith.mulf %381, %385 : vector<8x16xf32>
    %387 = vector.extract_strided_slice %319 {offsets = [0, 24], sizes = [16, 8], strides = [1, 1]} : vector<16x32xf32> to vector<16x8xf32>
    %cst_109 = arith.constant dense<0.000000e+00> : vector<8x8xf32>
    %388 = tpu.matmul %386, %387, %cst_109 {dimension_numbers = #tpu.dot_dimension_numbers<[1], [0], [0], [1], [0, 0, 1, 1], [], []>} : vector<8x16xf32>, vector<16x8xf32>, vector<8x8xf32> -> vector<8x8xf32>
    %389 = tpu.concatenate %337, %354, %371, %388 in 1 : vector<8x8xf32>, vector<8x8xf32>, vector<8x8xf32>, vector<8x8xf32> -> vector<8x32xf32>
    %390 = tpu.concatenate %316, %389 in 0 : vector<8x32xf32>, vector<8x32xf32> -> vector<16x32xf32>
    %cst_110 = arith.constant dense<0.000000e+00> : vector<16x32xf32>
    %391 = tpu.matmul %390, %242, %cst_110 {dimension_numbers = #tpu.dot_dimension_numbers<[1], [0], [0], [1], [0, 0, 1, 1], [], []>} : vector<16x32xf32>, vector<32x32xf32>, vector<16x32xf32> -> vector<16x32xf32>
    %392 = vector.broadcast %243 : vector<1x32xf32> to vector<16x32xf32>
    %393 = arith.addf %391, %392 : vector<16x32xf32>
    %394 = arith.addf %393, %212 : vector<16x32xf32>
    %cst_111 = arith.constant dense<0.000000e+00> : vector<16xf32>
    %395 = vector.multi_reduction <add>, %394, %cst_111 [1] : vector<16x32xf32> to vector<16xf32>
    %396 = vector.shape_cast %395 : vector<16xf32> to vector<16x1xf32>
    %cst_112 = arith.constant 3.200000e+01 : f32
    %397 = vector.broadcast %cst_112 : f32 to vector<16x1xf32>
    %398 = arith.divf %396, %397 : vector<16x1xf32>
    %399 = vector.broadcast %398 : vector<16x1xf32> to vector<16x32xf32>
    %400 = arith.subf %394, %399 : vector<16x32xf32>
    %401 = arith.mulf %400, %400 : vector<16x32xf32>
    %cst_113 = arith.constant dense<0.000000e+00> : vector<16xf32>
    %402 = vector.multi_reduction <add>, %401, %cst_113 [1] : vector<16x32xf32> to vector<16xf32>
    %403 = vector.shape_cast %402 : vector<16xf32> to vector<16x1xf32>
    %cst_114 = arith.constant 3.200000e+01 : f32
    %404 = vector.broadcast %cst_114 : f32 to vector<16x1xf32>
    %405 = arith.divf %403, %404 : vector<16x1xf32>
    %406 = vector.broadcast %398 : vector<16x1xf32> to vector<16x32xf32>
    %407 = arith.subf %394, %406 : vector<16x32xf32>
    %cst_115 = arith.constant 9.99999997E-7 : f32
    %408 = vector.broadcast %cst_115 : f32 to vector<16x1xf32>
    %409 = arith.addf %405, %408 : vector<16x1xf32>
    %410 = math.rsqrt %409 : vector<16x1xf32>
    %411 = vector.broadcast %410 : vector<16x1xf32> to vector<16x32xf32>
    %412 = arith.mulf %407, %411 : vector<16x32xf32>
    %413 = vector.broadcast %16 : vector<1x32xf32> to vector<16x32xf32>
    %414 = arith.mulf %412, %413 : vector<16x32xf32>
    %415 = vector.broadcast %17 : vector<1x32xf32> to vector<16x32xf32>
    %416 = arith.addf %414, %415 : vector<16x32xf32>
    %c64_116 = arith.constant 64 : index
    %c0_117 = arith.constant 0 : index
    %417 = vector.load %arg2[%c64_116, %c0_117] : memref<288x128xf32, #tpu.memory_space<vmem>>, vector<32x32xf32>
    %cst_118 = arith.constant dense<0.000000e+00> : vector<16x32xf32>
    %418 = tpu.matmul %416, %417, %cst_118 {dimension_numbers = #tpu.dot_dimension_numbers<[1], [0], [0], [1], [0, 0, 1, 1], [], []>} : vector<16x32xf32>, vector<32x32xf32>, vector<16x32xf32> -> vector<16x32xf32>
    %c10_119 = arith.constant 10 : index
    %c0_120 = arith.constant 0 : index
    %419 = vector.load %arg3[%c10_119, %c0_120] : memref<16x128xf32, #tpu.memory_space<vmem>>, vector<1x32xf32>
    %420 = vector.broadcast %419 : vector<1x32xf32> to vector<16x32xf32>
    %421 = arith.addf %418, %420 : vector<16x32xf32>
    %422 = vector.extract_strided_slice %29 {offsets = [0, 0], sizes = [16, 32], strides = [1, 1]} : vector<16x64xf32> to vector<16x32xf32>
    %423 = vector.extract_strided_slice %29 {offsets = [0, 32], sizes = [16, 32], strides = [1, 1]} : vector<16x64xf32> to vector<16x32xf32>
    %c160 = arith.constant 160 : index
    %c0_121 = arith.constant 0 : index
    %424 = vector.load %arg2[%c160, %c0_121] : memref<288x128xf32, #tpu.memory_space<vmem>>, vector<32x32xf32>
    %c13 = arith.constant 13 : index
    %c0_122 = arith.constant 0 : index
    %425 = vector.load %arg3[%c13, %c0_122] : memref<16x128xf32, #tpu.memory_space<vmem>>, vector<1x32xf32>
    %426 = vector.extract_strided_slice %421 {offsets = [0, 0], sizes = [8, 32], strides = [1, 1]} : vector<16x32xf32> to vector<8x32xf32>
    %427 = vector.extract_strided_slice %422 {offsets = [0, 0], sizes = [8, 32], strides = [1, 1]} : vector<16x32xf32> to vector<8x32xf32>
    %428 = vector.extract_strided_slice %423 {offsets = [0, 0], sizes = [8, 32], strides = [1, 1]} : vector<16x32xf32> to vector<8x32xf32>
    %429 = vector.extract_strided_slice %11 {offsets = [0, 0], sizes = [1, 8], strides = [1, 1]} : vector<2x8xf32> to vector<1x8xf32>
    %430 = vector.extract_strided_slice %426 {offsets = [0, 0], sizes = [8, 8], strides = [1, 1]} : vector<8x32xf32> to vector<8x8xf32>
    %431 = vector.extract_strided_slice %427 {offsets = [0, 0], sizes = [8, 8], strides = [1, 1]} : vector<8x32xf32> to vector<8x8xf32>
    %cst_123 = arith.constant dense<0.000000e+00> : vector<8x8xf32>
    %432 = tpu.matmul %430, %431, %cst_123 {dimension_numbers = #tpu.dot_dimension_numbers<[1], [1], [0], [0], [0, 0, 1, 0], [], []>} : vector<8x8xf32>, vector<8x8xf32>, vector<8x8xf32> -> vector<8x8xf32>
    %433 = vector.broadcast %429 : vector<1x8xf32> to vector<8x8xf32>
    %434 = arith.addf %432, %433 : vector<8x8xf32>
    %cst_124 = arith.constant dense<0xFF800000> : vector<8xf32>
    %435 = vector.multi_reduction <maximumf>, %434, %cst_124 [1] : vector<8x8xf32> to vector<8xf32>
    %436 = vector.shape_cast %435 : vector<8xf32> to vector<8x1xf32>
    %437 = vector.broadcast %436 : vector<8x1xf32> to vector<8x8xf32>
    %438 = arith.subf %434, %437 : vector<8x8xf32>
    %439 = math.exp %438 : vector<8x8xf32>
    %cst_125 = arith.constant dense<0.000000e+00> : vector<8xf32>
    %440 = vector.multi_reduction <add>, %439, %cst_125 [1] : vector<8x8xf32> to vector<8xf32>
    %441 = vector.shape_cast %440 : vector<8xf32> to vector<8x1xf32>
    %442 = tpu.reciprocal %441 {approx = true} : vector<8x1xf32> -> vector<8x1xf32>
    %443 = vector.broadcast %442 : vector<8x1xf32> to vector<8x8xf32>
    %444 = arith.mulf %439, %443 : vector<8x8xf32>
    %445 = vector.extract_strided_slice %428 {offsets = [0, 0], sizes = [8, 8], strides = [1, 1]} : vector<8x32xf32> to vector<8x8xf32>
    %cst_126 = arith.constant dense<0.000000e+00> : vector<8x8xf32>
    %446 = tpu.matmul %444, %445, %cst_126 {dimension_numbers = #tpu.dot_dimension_numbers<[1], [0], [0], [1], [0, 0, 1, 1], [], []>} : vector<8x8xf32>, vector<8x8xf32>, vector<8x8xf32> -> vector<8x8xf32>
    %447 = vector.extract_strided_slice %426 {offsets = [0, 8], sizes = [8, 8], strides = [1, 1]} : vector<8x32xf32> to vector<8x8xf32>
    %448 = vector.extract_strided_slice %427 {offsets = [0, 8], sizes = [8, 8], strides = [1, 1]} : vector<8x32xf32> to vector<8x8xf32>
    %cst_127 = arith.constant dense<0.000000e+00> : vector<8x8xf32>
    %449 = tpu.matmul %447, %448, %cst_127 {dimension_numbers = #tpu.dot_dimension_numbers<[1], [1], [0], [0], [0, 0, 1, 0], [], []>} : vector<8x8xf32>, vector<8x8xf32>, vector<8x8xf32> -> vector<8x8xf32>
    %450 = vector.broadcast %429 : vector<1x8xf32> to vector<8x8xf32>
    %451 = arith.addf %449, %450 : vector<8x8xf32>
    %cst_128 = arith.constant dense<0xFF800000> : vector<8xf32>
    %452 = vector.multi_reduction <maximumf>, %451, %cst_128 [1] : vector<8x8xf32> to vector<8xf32>
    %453 = vector.shape_cast %452 : vector<8xf32> to vector<8x1xf32>
    %454 = vector.broadcast %453 : vector<8x1xf32> to vector<8x8xf32>
    %455 = arith.subf %451, %454 : vector<8x8xf32>
    %456 = math.exp %455 : vector<8x8xf32>
    %cst_129 = arith.constant dense<0.000000e+00> : vector<8xf32>
    %457 = vector.multi_reduction <add>, %456, %cst_129 [1] : vector<8x8xf32> to vector<8xf32>
    %458 = vector.shape_cast %457 : vector<8xf32> to vector<8x1xf32>
    %459 = tpu.reciprocal %458 {approx = true} : vector<8x1xf32> -> vector<8x1xf32>
    %460 = vector.broadcast %459 : vector<8x1xf32> to vector<8x8xf32>
    %461 = arith.mulf %456, %460 : vector<8x8xf32>
    %462 = vector.extract_strided_slice %428 {offsets = [0, 8], sizes = [8, 8], strides = [1, 1]} : vector<8x32xf32> to vector<8x8xf32>
    %cst_130 = arith.constant dense<0.000000e+00> : vector<8x8xf32>
    %463 = tpu.matmul %461, %462, %cst_130 {dimension_numbers = #tpu.dot_dimension_numbers<[1], [0], [0], [1], [0, 0, 1, 1], [], []>} : vector<8x8xf32>, vector<8x8xf32>, vector<8x8xf32> -> vector<8x8xf32>
    %464 = vector.extract_strided_slice %426 {offsets = [0, 16], sizes = [8, 8], strides = [1, 1]} : vector<8x32xf32> to vector<8x8xf32>
    %465 = vector.extract_strided_slice %427 {offsets = [0, 16], sizes = [8, 8], strides = [1, 1]} : vector<8x32xf32> to vector<8x8xf32>
    %cst_131 = arith.constant dense<0.000000e+00> : vector<8x8xf32>
    %466 = tpu.matmul %464, %465, %cst_131 {dimension_numbers = #tpu.dot_dimension_numbers<[1], [1], [0], [0], [0, 0, 1, 0], [], []>} : vector<8x8xf32>, vector<8x8xf32>, vector<8x8xf32> -> vector<8x8xf32>
    %467 = vector.broadcast %429 : vector<1x8xf32> to vector<8x8xf32>
    %468 = arith.addf %466, %467 : vector<8x8xf32>
    %cst_132 = arith.constant dense<0xFF800000> : vector<8xf32>
    %469 = vector.multi_reduction <maximumf>, %468, %cst_132 [1] : vector<8x8xf32> to vector<8xf32>
    %470 = vector.shape_cast %469 : vector<8xf32> to vector<8x1xf32>
    %471 = vector.broadcast %470 : vector<8x1xf32> to vector<8x8xf32>
    %472 = arith.subf %468, %471 : vector<8x8xf32>
    %473 = math.exp %472 : vector<8x8xf32>
    %cst_133 = arith.constant dense<0.000000e+00> : vector<8xf32>
    %474 = vector.multi_reduction <add>, %473, %cst_133 [1] : vector<8x8xf32> to vector<8xf32>
    %475 = vector.shape_cast %474 : vector<8xf32> to vector<8x1xf32>
    %476 = tpu.reciprocal %475 {approx = true} : vector<8x1xf32> -> vector<8x1xf32>
    %477 = vector.broadcast %476 : vector<8x1xf32> to vector<8x8xf32>
    %478 = arith.mulf %473, %477 : vector<8x8xf32>
    %479 = vector.extract_strided_slice %428 {offsets = [0, 16], sizes = [8, 8], strides = [1, 1]} : vector<8x32xf32> to vector<8x8xf32>
    %cst_134 = arith.constant dense<0.000000e+00> : vector<8x8xf32>
    %480 = tpu.matmul %478, %479, %cst_134 {dimension_numbers = #tpu.dot_dimension_numbers<[1], [0], [0], [1], [0, 0, 1, 1], [], []>} : vector<8x8xf32>, vector<8x8xf32>, vector<8x8xf32> -> vector<8x8xf32>
    %481 = vector.extract_strided_slice %426 {offsets = [0, 24], sizes = [8, 8], strides = [1, 1]} : vector<8x32xf32> to vector<8x8xf32>
    %482 = vector.extract_strided_slice %427 {offsets = [0, 24], sizes = [8, 8], strides = [1, 1]} : vector<8x32xf32> to vector<8x8xf32>
    %cst_135 = arith.constant dense<0.000000e+00> : vector<8x8xf32>
    %483 = tpu.matmul %481, %482, %cst_135 {dimension_numbers = #tpu.dot_dimension_numbers<[1], [1], [0], [0], [0, 0, 1, 0], [], []>} : vector<8x8xf32>, vector<8x8xf32>, vector<8x8xf32> -> vector<8x8xf32>
    %484 = vector.broadcast %429 : vector<1x8xf32> to vector<8x8xf32>
    %485 = arith.addf %483, %484 : vector<8x8xf32>
    %cst_136 = arith.constant dense<0xFF800000> : vector<8xf32>
    %486 = vector.multi_reduction <maximumf>, %485, %cst_136 [1] : vector<8x8xf32> to vector<8xf32>
    %487 = vector.shape_cast %486 : vector<8xf32> to vector<8x1xf32>
    %488 = vector.broadcast %487 : vector<8x1xf32> to vector<8x8xf32>
    %489 = arith.subf %485, %488 : vector<8x8xf32>
    %490 = math.exp %489 : vector<8x8xf32>
    %cst_137 = arith.constant dense<0.000000e+00> : vector<8xf32>
    %491 = vector.multi_reduction <add>, %490, %cst_137 [1] : vector<8x8xf32> to vector<8xf32>
    %492 = vector.shape_cast %491 : vector<8xf32> to vector<8x1xf32>
    %493 = tpu.reciprocal %492 {approx = true} : vector<8x1xf32> -> vector<8x1xf32>
    %494 = vector.broadcast %493 : vector<8x1xf32> to vector<8x8xf32>
    %495 = arith.mulf %490, %494 : vector<8x8xf32>
    %496 = vector.extract_strided_slice %428 {offsets = [0, 24], sizes = [8, 8], strides = [1, 1]} : vector<8x32xf32> to vector<8x8xf32>
    %cst_138 = arith.constant dense<0.000000e+00> : vector<8x8xf32>
    %497 = tpu.matmul %495, %496, %cst_138 {dimension_numbers = #tpu.dot_dimension_numbers<[1], [0], [0], [1], [0, 0, 1, 1], [], []>} : vector<8x8xf32>, vector<8x8xf32>, vector<8x8xf32> -> vector<8x8xf32>
    %498 = tpu.concatenate %446, %463, %480, %497 in 1 : vector<8x8xf32>, vector<8x8xf32>, vector<8x8xf32>, vector<8x8xf32> -> vector<8x32xf32>
    %499 = vector.extract_strided_slice %421 {offsets = [8, 0], sizes = [8, 32], strides = [1, 1]} : vector<16x32xf32> to vector<8x32xf32>
    %500 = vector.extract_strided_slice %422 {offsets = [8, 0], sizes = [8, 32], strides = [1, 1]} : vector<16x32xf32> to vector<8x32xf32>
    %501 = vector.extract_strided_slice %423 {offsets = [8, 0], sizes = [8, 32], strides = [1, 1]} : vector<16x32xf32> to vector<8x32xf32>
    %502 = vector.extract_strided_slice %11 {offsets = [1, 0], sizes = [1, 8], strides = [1, 1]} : vector<2x8xf32> to vector<1x8xf32>
    %503 = vector.extract_strided_slice %499 {offsets = [0, 0], sizes = [8, 8], strides = [1, 1]} : vector<8x32xf32> to vector<8x8xf32>
    %504 = vector.extract_strided_slice %500 {offsets = [0, 0], sizes = [8, 8], strides = [1, 1]} : vector<8x32xf32> to vector<8x8xf32>
    %cst_139 = arith.constant dense<0.000000e+00> : vector<8x8xf32>
    %505 = tpu.matmul %503, %504, %cst_139 {dimension_numbers = #tpu.dot_dimension_numbers<[1], [1], [0], [0], [0, 0, 1, 0], [], []>} : vector<8x8xf32>, vector<8x8xf32>, vector<8x8xf32> -> vector<8x8xf32>
    %506 = vector.broadcast %502 : vector<1x8xf32> to vector<8x8xf32>
    %507 = arith.addf %505, %506 : vector<8x8xf32>
    %cst_140 = arith.constant dense<0xFF800000> : vector<8xf32>
    %508 = vector.multi_reduction <maximumf>, %507, %cst_140 [1] : vector<8x8xf32> to vector<8xf32>
    %509 = vector.shape_cast %508 : vector<8xf32> to vector<8x1xf32>
    %510 = vector.broadcast %509 : vector<8x1xf32> to vector<8x8xf32>
    %511 = arith.subf %507, %510 : vector<8x8xf32>
    %512 = math.exp %511 : vector<8x8xf32>
    %cst_141 = arith.constant dense<0.000000e+00> : vector<8xf32>
    %513 = vector.multi_reduction <add>, %512, %cst_141 [1] : vector<8x8xf32> to vector<8xf32>
    %514 = vector.shape_cast %513 : vector<8xf32> to vector<8x1xf32>
    %515 = tpu.reciprocal %514 {approx = true} : vector<8x1xf32> -> vector<8x1xf32>
    %516 = vector.broadcast %515 : vector<8x1xf32> to vector<8x8xf32>
    %517 = arith.mulf %512, %516 : vector<8x8xf32>
    %518 = vector.extract_strided_slice %501 {offsets = [0, 0], sizes = [8, 8], strides = [1, 1]} : vector<8x32xf32> to vector<8x8xf32>
    %cst_142 = arith.constant dense<0.000000e+00> : vector<8x8xf32>
    %519 = tpu.matmul %517, %518, %cst_142 {dimension_numbers = #tpu.dot_dimension_numbers<[1], [0], [0], [1], [0, 0, 1, 1], [], []>} : vector<8x8xf32>, vector<8x8xf32>, vector<8x8xf32> -> vector<8x8xf32>
    %520 = vector.extract_strided_slice %499 {offsets = [0, 8], sizes = [8, 8], strides = [1, 1]} : vector<8x32xf32> to vector<8x8xf32>
    %521 = vector.extract_strided_slice %500 {offsets = [0, 8], sizes = [8, 8], strides = [1, 1]} : vector<8x32xf32> to vector<8x8xf32>
    %cst_143 = arith.constant dense<0.000000e+00> : vector<8x8xf32>
    %522 = tpu.matmul %520, %521, %cst_143 {dimension_numbers = #tpu.dot_dimension_numbers<[1], [1], [0], [0], [0, 0, 1, 0], [], []>} : vector<8x8xf32>, vector<8x8xf32>, vector<8x8xf32> -> vector<8x8xf32>
    %523 = vector.broadcast %502 : vector<1x8xf32> to vector<8x8xf32>
    %524 = arith.addf %522, %523 : vector<8x8xf32>
    %cst_144 = arith.constant dense<0xFF800000> : vector<8xf32>
    %525 = vector.multi_reduction <maximumf>, %524, %cst_144 [1] : vector<8x8xf32> to vector<8xf32>
    %526 = vector.shape_cast %525 : vector<8xf32> to vector<8x1xf32>
    %527 = vector.broadcast %526 : vector<8x1xf32> to vector<8x8xf32>
    %528 = arith.subf %524, %527 : vector<8x8xf32>
    %529 = math.exp %528 : vector<8x8xf32>
    %cst_145 = arith.constant dense<0.000000e+00> : vector<8xf32>
    %530 = vector.multi_reduction <add>, %529, %cst_145 [1] : vector<8x8xf32> to vector<8xf32>
    %531 = vector.shape_cast %530 : vector<8xf32> to vector<8x1xf32>
    %532 = tpu.reciprocal %531 {approx = true} : vector<8x1xf32> -> vector<8x1xf32>
    %533 = vector.broadcast %532 : vector<8x1xf32> to vector<8x8xf32>
    %534 = arith.mulf %529, %533 : vector<8x8xf32>
    %535 = vector.extract_strided_slice %501 {offsets = [0, 8], sizes = [8, 8], strides = [1, 1]} : vector<8x32xf32> to vector<8x8xf32>
    %cst_146 = arith.constant dense<0.000000e+00> : vector<8x8xf32>
    %536 = tpu.matmul %534, %535, %cst_146 {dimension_numbers = #tpu.dot_dimension_numbers<[1], [0], [0], [1], [0, 0, 1, 1], [], []>} : vector<8x8xf32>, vector<8x8xf32>, vector<8x8xf32> -> vector<8x8xf32>
    %537 = vector.extract_strided_slice %499 {offsets = [0, 16], sizes = [8, 8], strides = [1, 1]} : vector<8x32xf32> to vector<8x8xf32>
    %538 = vector.extract_strided_slice %500 {offsets = [0, 16], sizes = [8, 8], strides = [1, 1]} : vector<8x32xf32> to vector<8x8xf32>
    %cst_147 = arith.constant dense<0.000000e+00> : vector<8x8xf32>
    %539 = tpu.matmul %537, %538, %cst_147 {dimension_numbers = #tpu.dot_dimension_numbers<[1], [1], [0], [0], [0, 0, 1, 0], [], []>} : vector<8x8xf32>, vector<8x8xf32>, vector<8x8xf32> -> vector<8x8xf32>
    %540 = vector.broadcast %502 : vector<1x8xf32> to vector<8x8xf32>
    %541 = arith.addf %539, %540 : vector<8x8xf32>
    %cst_148 = arith.constant dense<0xFF800000> : vector<8xf32>
    %542 = vector.multi_reduction <maximumf>, %541, %cst_148 [1] : vector<8x8xf32> to vector<8xf32>
    %543 = vector.shape_cast %542 : vector<8xf32> to vector<8x1xf32>
    %544 = vector.broadcast %543 : vector<8x1xf32> to vector<8x8xf32>
    %545 = arith.subf %541, %544 : vector<8x8xf32>
    %546 = math.exp %545 : vector<8x8xf32>
    %cst_149 = arith.constant dense<0.000000e+00> : vector<8xf32>
    %547 = vector.multi_reduction <add>, %546, %cst_149 [1] : vector<8x8xf32> to vector<8xf32>
    %548 = vector.shape_cast %547 : vector<8xf32> to vector<8x1xf32>
    %549 = tpu.reciprocal %548 {approx = true} : vector<8x1xf32> -> vector<8x1xf32>
    %550 = vector.broadcast %549 : vector<8x1xf32> to vector<8x8xf32>
    %551 = arith.mulf %546, %550 : vector<8x8xf32>
    %552 = vector.extract_strided_slice %501 {offsets = [0, 16], sizes = [8, 8], strides = [1, 1]} : vector<8x32xf32> to vector<8x8xf32>
    %cst_150 = arith.constant dense<0.000000e+00> : vector<8x8xf32>
    %553 = tpu.matmul %551, %552, %cst_150 {dimension_numbers = #tpu.dot_dimension_numbers<[1], [0], [0], [1], [0, 0, 1, 1], [], []>} : vector<8x8xf32>, vector<8x8xf32>, vector<8x8xf32> -> vector<8x8xf32>
    %554 = vector.extract_strided_slice %499 {offsets = [0, 24], sizes = [8, 8], strides = [1, 1]} : vector<8x32xf32> to vector<8x8xf32>
    %555 = vector.extract_strided_slice %500 {offsets = [0, 24], sizes = [8, 8], strides = [1, 1]} : vector<8x32xf32> to vector<8x8xf32>
    %cst_151 = arith.constant dense<0.000000e+00> : vector<8x8xf32>
    %556 = tpu.matmul %554, %555, %cst_151 {dimension_numbers = #tpu.dot_dimension_numbers<[1], [1], [0], [0], [0, 0, 1, 0], [], []>} : vector<8x8xf32>, vector<8x8xf32>, vector<8x8xf32> -> vector<8x8xf32>
    %557 = vector.broadcast %502 : vector<1x8xf32> to vector<8x8xf32>
    %558 = arith.addf %556, %557 : vector<8x8xf32>
    %cst_152 = arith.constant dense<0xFF800000> : vector<8xf32>
    %559 = vector.multi_reduction <maximumf>, %558, %cst_152 [1] : vector<8x8xf32> to vector<8xf32>
    %560 = vector.shape_cast %559 : vector<8xf32> to vector<8x1xf32>
    %561 = vector.broadcast %560 : vector<8x1xf32> to vector<8x8xf32>
    %562 = arith.subf %558, %561 : vector<8x8xf32>
    %563 = math.exp %562 : vector<8x8xf32>
    %cst_153 = arith.constant dense<0.000000e+00> : vector<8xf32>
    %564 = vector.multi_reduction <add>, %563, %cst_153 [1] : vector<8x8xf32> to vector<8xf32>
    %565 = vector.shape_cast %564 : vector<8xf32> to vector<8x1xf32>
    %566 = tpu.reciprocal %565 {approx = true} : vector<8x1xf32> -> vector<8x1xf32>
    %567 = vector.broadcast %566 : vector<8x1xf32> to vector<8x8xf32>
    %568 = arith.mulf %563, %567 : vector<8x8xf32>
    %569 = vector.extract_strided_slice %501 {offsets = [0, 24], sizes = [8, 8], strides = [1, 1]} : vector<8x32xf32> to vector<8x8xf32>
    %cst_154 = arith.constant dense<0.000000e+00> : vector<8x8xf32>
    %570 = tpu.matmul %568, %569, %cst_154 {dimension_numbers = #tpu.dot_dimension_numbers<[1], [0], [0], [1], [0, 0, 1, 1], [], []>} : vector<8x8xf32>, vector<8x8xf32>, vector<8x8xf32> -> vector<8x8xf32>
    %571 = tpu.concatenate %519, %536, %553, %570 in 1 : vector<8x8xf32>, vector<8x8xf32>, vector<8x8xf32>, vector<8x8xf32> -> vector<8x32xf32>
    %572 = tpu.concatenate %498, %571 in 0 : vector<8x32xf32>, vector<8x32xf32> -> vector<16x32xf32>
    %cst_155 = arith.constant dense<0.000000e+00> : vector<16x32xf32>
    %573 = tpu.matmul %572, %424, %cst_155 {dimension_numbers = #tpu.dot_dimension_numbers<[1], [0], [0], [1], [0, 0, 1, 1], [], []>} : vector<16x32xf32>, vector<32x32xf32>, vector<16x32xf32> -> vector<16x32xf32>
    %574 = vector.broadcast %425 : vector<1x32xf32> to vector<16x32xf32>
    %575 = arith.addf %573, %574 : vector<16x32xf32>
    %576 = arith.addf %575, %394 : vector<16x32xf32>
    %cst_156 = arith.constant dense<0.000000e+00> : vector<16xf32>
    %577 = vector.multi_reduction <add>, %576, %cst_156 [1] : vector<16x32xf32> to vector<16xf32>
    %578 = vector.shape_cast %577 : vector<16xf32> to vector<16x1xf32>
    %cst_157 = arith.constant 3.200000e+01 : f32
    %579 = vector.broadcast %cst_157 : f32 to vector<16x1xf32>
    %580 = arith.divf %578, %579 : vector<16x1xf32>
    %581 = vector.broadcast %580 : vector<16x1xf32> to vector<16x32xf32>
    %582 = arith.subf %576, %581 : vector<16x32xf32>
    %583 = arith.mulf %582, %582 : vector<16x32xf32>
    %cst_158 = arith.constant dense<0.000000e+00> : vector<16xf32>
    %584 = vector.multi_reduction <add>, %583, %cst_158 [1] : vector<16x32xf32> to vector<16xf32>
    %585 = vector.shape_cast %584 : vector<16xf32> to vector<16x1xf32>
    %cst_159 = arith.constant 3.200000e+01 : f32
    %586 = vector.broadcast %cst_159 : f32 to vector<16x1xf32>
    %587 = arith.divf %585, %586 : vector<16x1xf32>
    %588 = vector.broadcast %580 : vector<16x1xf32> to vector<16x32xf32>
    %589 = arith.subf %576, %588 : vector<16x32xf32>
    %cst_160 = arith.constant 9.99999997E-7 : f32
    %590 = vector.broadcast %cst_160 : f32 to vector<16x1xf32>
    %591 = arith.addf %587, %590 : vector<16x1xf32>
    %592 = math.rsqrt %591 : vector<16x1xf32>
    %593 = vector.broadcast %592 : vector<16x1xf32> to vector<16x32xf32>
    %594 = arith.mulf %589, %593 : vector<16x32xf32>
    %595 = vector.broadcast %18 : vector<1x32xf32> to vector<16x32xf32>
    %596 = arith.mulf %594, %595 : vector<16x32xf32>
    %597 = vector.broadcast %19 : vector<1x32xf32> to vector<16x32xf32>
    %598 = arith.addf %596, %597 : vector<16x32xf32>
    %c192 = arith.constant 192 : index
    %c0_161 = arith.constant 0 : index
    %599 = vector.load %arg2[%c192, %c0_161] : memref<288x128xf32, #tpu.memory_space<vmem>>, vector<32x64xf32>
    %cst_162 = arith.constant dense<0.000000e+00> : vector<16x64xf32>
    %600 = tpu.matmul %598, %599, %cst_162 {dimension_numbers = #tpu.dot_dimension_numbers<[1], [0], [0], [1], [0, 0, 1, 1], [], []>} : vector<16x32xf32>, vector<32x64xf32>, vector<16x64xf32> -> vector<16x64xf32>
    %c14 = arith.constant 14 : index
    %c0_163 = arith.constant 0 : index
    %601 = vector.load %arg3[%c14, %c0_163] : memref<16x128xf32, #tpu.memory_space<vmem>>, vector<1x64xf32>
    %602 = vector.broadcast %601 : vector<1x64xf32> to vector<16x64xf32>
    %603 = arith.addf %600, %602 : vector<16x64xf32>
    %cst_164 = arith.constant 0.000000e+00 : f32
    %604 = vector.broadcast %cst_164 : f32 to vector<16x64xf32>
    %605 = arith.maximumf %603, %604 : vector<16x64xf32>
    %c224 = arith.constant 224 : index
    %c0_165 = arith.constant 0 : index
    %606 = vector.load %arg2[%c224, %c0_165] : memref<288x128xf32, #tpu.memory_space<vmem>>, vector<64x32xf32>
    %cst_166 = arith.constant dense<0.000000e+00> : vector<16x32xf32>
    %607 = tpu.matmul %605, %606, %cst_166 {dimension_numbers = #tpu.dot_dimension_numbers<[1], [0], [0], [1], [0, 0, 1, 1], [], []>} : vector<16x64xf32>, vector<64x32xf32>, vector<16x32xf32> -> vector<16x32xf32>
    %c15 = arith.constant 15 : index
    %c0_167 = arith.constant 0 : index
    %608 = vector.load %arg3[%c15, %c0_167] : memref<16x128xf32, #tpu.memory_space<vmem>>, vector<1x32xf32>
    %609 = vector.broadcast %608 : vector<1x32xf32> to vector<16x32xf32>
    %610 = arith.addf %607, %609 : vector<16x32xf32>
    %611 = arith.addf %610, %576 : vector<16x32xf32>
    %c0_168 = arith.constant 0 : index
    %c0_169 = arith.constant 0 : index
    %612 = vector.load %arg4[%c0_168, %c0_169] : memref<16x32xf32, #tpu.memory_space<vmem>>, vector<16x32xf32>
    tpu.vector_store %arg4[%c0_168, %c0_169], %611 {strides = array<i32>} : memref<16x32xf32, #tpu.memory_space<vmem>>, vector<16x32xf32>,
    return
  }
}

</mosaic_0001>

<bundles_post_ra>
// kernel: atransformer_encoder_layer.1
= control target key start
LH: loop header
LB: loop body
LE: loop exit
PB: predicated region body
PF: predicated region fallthrough
CT: control target
= control target key end

     0   :  { %vm66_vm0 = vcmask 261120   ;;  %s7291_s0 = inlined_call_operand.vmem [shape: f32[64,32], index: 0, kind: input, shape index: {}]   ;;  %s7292_s1 = inlined_call_operand.vmem [shape: f32[2,32], index: 1, kind: input, shape index: {}]   ;;  %s7293_s2 = inlined_call_operand.vmem [shape: f32[288,128], index: 2, kind: input, shape index: {}]   ;;  %s7294_s3 = inlined_call_operand.vmem [shape: f32[16,128], index: 3, kind: input, shape index: {}]   ;;  %s7295_s4 = inlined_call_operand.hbm [shape: f32[16,32], index: 4, kind: output, shape index: {}]  }
   0x1   :  { %v6410_v0 = vld [vmem:[%s7291_s0] sm:$0xff]  ;;  %v6415_v1 = vld [vmem:[%s7291_s0 + $0x8] sm:$0xff] }
   0x2   :  { %9 = vsyncpa [#allocation3], 0  ;;  %v274_v2 = vsel %vm66_vm0, %v6410_v0, 0.0  ;;  %v277_v3 = vsel %vm66_vm0, %v6415_v1, 0.0  ;;  %v313_v14 = vld [vmem:[%s7293_s2] sm:$0xff]  ;;  %v314_v15 = vld [vmem:[%s7293_s2 + $0x8] sm:$0xff] }
   0x3   :  { %275 = vadd.xlane.f32.xlu0 %v274_v2  ;;  %v315_v16 = vld [vmem:[%s7293_s2 + $0x10] sm:$0xff]  ;;  %v5986_v17 = vpack.c.bf16 %v314_v15, %v313_v14  ;;  %v316_v18 = vld [vmem:[%s7293_s2 + $0x18] sm:$0xff]  ;;  %v6440_v20 = vld [vmem:[%s7293_s2 + $0x20] sm:$0xff]  ;;  %s6363_s13 = smov 96   ;;  %v6364_v55 = vmov 0.0   ;;  %vm6365_vm1 = vmmov 0  }
   0x4   :  { %v5990_v19 = vpack.c.bf16 %v316_v18, %v315_v16  ;;  %v6445_v21 = vld [vmem:[%s7293_s2 + $0x28] sm:$0xff]  ;;  %v6450_v22 = vld [vmem:[%s7293_s2 + $0x30] sm:$0xff]  ;;  %v6457_v24 = vld [vmem:[%s7293_s2 + $0x38] sm:$0xff]  ;;  %s6366_s10 = smov 88   ;;  %s6368_s11 = smov 120   ;;  %vm415_vm2 = vcmask 64512  }
   0x5   :  { %5987 = vmatprep.subr.bf16.mxu0 %v5986_v17  ;;  %v6133_v23 = vpack.i.bf16 %v6445_v21, %v6440_v20  ;;  %v164_v25 = vld [vmem:[%s7293_s2 + $0x40] sm:$0xff]  ;;  %v165_v26 = vld [vmem:[%s7293_s2 + $0x48] sm:$0xff]  ;;  %v6138_v27 = vpack.i.bf16 %v6457_v24, %v6450_v22  ;;  %v166_v29 = vld [vmem:[%s7293_s2 + $0x50] sm:$0xff]  ;;  %s6369_s12 = smov 72   ;;  %s6370_s14 = smov 112   ;;  %vm1085_vm4 = vcmask 130048  }
   0x6   :  { %5989 = vmatpush3.bf16.msra.mxu0 %v5986_v17  ;;  %v6143_v28 = vpack.i.bf16 %v165_v26, %v164_v25  ;;  %v167_v30 = vld [vmem:[%s7293_s2 + $0x58] sm:$0xff]  ;;  %v5289_v39 = vld [vmem:[%s7294_s3] ss:$0 sm:$0xff]  ;;  %v5290_v41 = vld [vmem:[%s7294_s3 + $0x1] ss:$0 sm:$0xff]  ;;  %s6371_s15 = smov 104  }
   0x7   :  { %278 = vadd.xlane.f32.xlu0 %v277_v3  ;;  %5991 = vmatprep.subr.bf16.mxu0 %v5990_v19  ;;  %v6148_v31 = vpack.i.bf16 %v167_v30, %v166_v29  ;;  %v20_v50 = vld [vmem:[%s7291_s0 + $0x10] sm:$0xff]  ;;  %v21_v3 = vld [vmem:[%s7291_s0 + $0x18] sm:$0xff]  ;;  %s6373_s18 = smov 48   ;;  %s6374_s19 = smov 40   ;;  %vm1087_vm5 = vcmask 195584   ;;  %vm6772_vm6 = vmpackc.low %vm415_vm2, %vm415_vm2  ;;  %vm5179_vm7 = vcmask 523264  }
   0x8   :  { %5585 = vmatprep.mubr.msk.f32.mxu1 %vm66_vm0, %v20_v50  ;;  %s6375_s20 = smov 56   ;;  %s6376_s21 = smov 8  }
   0x9   :  { %s6377_s26 = smov 16   ;;  %s6378_s5 = smov 24  }
   0xa   :  { %5993 = vmatpush3.bf16.msra.mxu0 %v5990_v19 }
   0xb   :  { %5623 = vmatprep.subr.mxu0 %v6364_v55 }
  0x1d   :  { %6134 = vrot.lane.b32.xlu0 %v6133_v23, %s6363_s13 }
  0x90   :  { %v276_v4 = vpop.xlane.xlu0 %275 }
  0x91   :  { %v281_v5 = vmul.f32 0.03125, %v276_v4 }
  0x93   :  { %v283_v6 = vsub.f32 %v6410_v0, %v281_v5  ;;  %v22_v5 = vld [vmem:[%s7291_s0 + $0x20] sm:$0xff] }
  0x94   :  { %v279_v7 = vpop.xlane.xlu0 %278 }
  0x95   :  { %v282_v8 = vmul.f32 0.03125, %v279_v7  ;;  %v285_v9 = vmul.f32 %v283_v6, %v283_v6  ;;  %v24_v7 = vld [vmem:[%s7291_s0 + $0x30] sm:$0xff] }
  0x97   :  { %v284_v10 = vsub.f32 %v6415_v1, %v282_v8  ;;  %v287_v11 = vsel %vm66_vm0, %v285_v9, 0.0  ;;  %v25_v8 = vld [vmem:[%s7291_s0 + $0x38] sm:$0xff]  ;;  %v5291_v9 = vld [vmem:[%s7294_s3 + $0x8] ss:$0 sm:$0xff] }
  0x98   :  { %288 = vadd.xlane.f32.xlu1 %v287_v11  ;;  %v6135_v48 = vpop.permute.xlu0 %6134 }
  0x99   :  { %v286_v12 = vmul.f32 %v284_v10, %v284_v10  ;;  %v6137_v53 = vunpack.i.h.bf16 %v6135_v48  ;;  %v6136_v54 = vunpack.i.l.bf16 %v6135_v48 }
  0x9b   :  { %v290_v13 = vsel %vm66_vm0, %v286_v12, 0.0  ;;  %v5970_v56 = vpack.c.bf16 %v6137_v53, %v6136_v54 }
  0x9c   :  { %291 = vadd.xlane.f32.xlu1 %v290_v13 }
  0x9d   :  { %5971 = vmatprep.subr.bf16.mxu1 %v5970_v56 }
  0x9e   :  { %5973 = vmatpush3.bf16.msra.mxu1 %v5970_v56 }
  0xad   :  { %6139 = vrot.lane.b32.xlu1 %v6138_v27, %s6363_s13 }
  0xb1   :  { %6144 = vrot.lane.b32.xlu1 %v6143_v28, %s6363_s13 }
  0xb5   :  { %6149 = vrot.lane.b32.xlu1 %v6148_v31, %s6363_s13 }
 0x125   :  { %v289_v32 = vpop.xlane.xlu1 %288 }
 0x126   :  { %v293_v33 = vmul.f32 0.03125, %v289_v32 }
 0x128   :  { %v295_v34 = vadd.f32 1e-06, %v293_v33 }
 0x129   :  { %v292_v35 = vpop.xlane.xlu1 %291 }
 0x12a   :  { %6223 = vrsqrt.f32 %v295_v34  ;;  %v294_v36 = vmul.f32 0.03125, %v292_v35 }
 0x12c   :  { %v296_v37 = vadd.f32 1e-06, %v294_v36 }
 0x12d   :  { %v6140_v49 = vpop.permute.xlu1 %6139 }
 0x12e   :  { %6225 = vrsqrt.f32 %v296_v37  ;;  %v6142_v51 = vunpack.i.h.bf16 %v6140_v49  ;;  %v6141_v52 = vunpack.i.l.bf16 %v6140_v49 }
 0x130   :  { %v5974_v57 = vpack.c.bf16 %v6142_v51, %v6141_v52 }
 0x131   :  { %v6145_v58 = vpop.permute.xlu1 %6144 }
 0x132   :  { %v6147_v59 = vunpack.i.h.bf16 %v6145_v58  ;;  %v6146_v60 = vunpack.i.l.bf16 %v6145_v58  ;;  %5975 = vmatprep.subr.bf16.mxu1 %v5974_v57 }
 0x133   :  { %5977 = vmatpush3.bf16.msra.mxu1 %v5974_v57 }
 0x134   :  { %v6224_v38 = vpop.eup %6223  ;;  %v5978_v61 = vpack.c.bf16 %v6147_v59, %v6146_v60 }
 0x135   :  { %v299_v40 = vmul.f32 %v6224_v38, %v283_v6  ;;  %v6150_v62 = vpop.permute.xlu1 %6149  ;;  %v23_v6 = vld [vmem:[%s7291_s0 + $0x28] sm:$0xff]  ;;  %s6367_s0 = smov 80   ;;  %v408_v38 = vlaneseq }
 0x136   :  { %v6152_v63 = vunpack.i.h.bf16 %v6150_v62  ;;  %v6151_v2 = vunpack.i.l.bf16 %v6150_v62  ;;  %5979 = vmatprep.subr.bf16.mxu1 %v5978_v61  ;;  %5586 = vmatmul.mubr.msk.f32.vlgmr.msra.gmra.mrb[0].mxu1 %vm66_vm0, %v21_v3 }
 0x137   :  { %v305_v42 = vmul.f32 %v5289_v39, %v299_v40  ;;  %5981 = vmatpush3.bf16.msra.mxu1 %v5978_v61  ;;  %5588 = vmatprep.mubr.msk.f32.mxu1 %vm66_vm0, %v22_v5  ;;  %v409_v40 = vshrl.u32 %v408_v38, 7 }
 0x138   :  { %v6226_v43 = vpop.eup %6225  ;;  %v5982_v4 = vpack.c.bf16 %v6152_v63, %v6151_v2 }
 0x139   :  { %v300_v44 = vmul.f32 %v6226_v43, %v284_v10  ;;  %v311_v45 = vadd.f32 %v5290_v41, %v305_v42  ;;  %v1091_v56 = vsub.s32 1, %v409_v40 }
 0x13a   :  { %5983 = vmatprep.subr.bf16.mxu1 %v5982_v4  ;;  %5589 = vmatmul.mubr.msk.f32.gmra.mrb[2].mxu1 %vm66_vm0, %v23_v6 }
 0x13b   :  { %v306_v46 = vmul.f32 %v5289_v39, %v300_v44  ;;  %5610 = vmatprep.mubr.msk.f32.mxu0 %vm66_vm0, %v311_v45  ;;  %5985 = vmatpush3.bf16.msra.mxu1 %v5982_v4  ;;  %v26_v39 = vld [vmem:[%s7292_s1] sm:$0x3]  ;;  %s6372_s1 = smov 64  }
 0x13c   :  { %5599 = vmatprep.mubr.msk.f32.mxu1 %vm66_vm0, %v24_v7  ;;  %5613 = vmatprep.subr.mxu1 %v6364_v55  ;;  %vm27_vm3 = vcmp.gt.f32.partialorder %v26_v39, 0.5 }
 0x13d   :  { %v312_v47 = vadd.f32 %v5290_v41, %v306_v46  ;;  %v410_v41 = vsub.s32 0, %v409_v40  ;;  %v28_v42 = vsel %vm27_vm3, -1e+18, %v6364_v55 }
 0x13e   :  { %5600 = vmatmul.mubr.msk.f32.vlgmr.msra.gmra.mrb[4].mxu1 %vm66_vm0, %v25_v8  ;;  %v6617_v61 = vrot.slane %v28_v42, %v1091_v56 }
 0x13f   :  { %5611 = vmatmul.mubr.msk.f32.vlgmr.msra.gmra.mrb[0].mxu0 %vm66_vm0, %v312_v47  ;;  %5615 = vmatprep.mubr.msk.f32.mxu1 %vm6365_vm1, %v6364_v55  ;;  %v6605_v43 = vrot.slane %v28_v42, %v410_v41 }
 0x140   :  { %5625 = vmatprep.mubr.msk.f32.mxu0 %vm6365_vm1, %v6364_v55 }
 0x209   :  { %v6562_v18 = vpop.f32.mrb[0].mxu1 }
 0x20a   :  { %v6565_v19 = vpop.f32.mrb[1].mxu1 }
 0x20d   :  { %v6571_v26 = vpop.f32.mrb[2].mxu1 }
 0x20e   :  { %v6574_v27 = vpop.f32.mrb[3].mxu1 }
 0x211   :  { %v6597_v36 = vpop.f32.mrb[4].mxu1 }
 0x212   :  { %v5612_v10 = vpop.f32.mrb[0].mxu0  ;;  %v6599_v37 = vpop.f32.mrb[5].mxu1 }
 0x213   :  { %v394_v11 = vpop.f32.mrb[1].mxu0  ;;  %v6532_v13 = vadd.f32 %v5612_v10, %v5291_v9 }
 0x214   :  { %v6518_v12 = vadd.f32 %v5291_v9, %v394_v11 }
 0x216   :  { %579 = vrot.lane.b32.xlu1 %v6518_v12, %s6366_s10  ;;  %413 = vrot.lane.b32.xlu0 %v6518_v12, %s6363_s13 }
 0x21a   :  { %744 = vrot.lane.b32.xlu1 %v6518_v12, %s6367_s0  ;;  %577 = vrot.lane.b32.xlu0 %v6518_v12, %s6368_s11 }
 0x21e   :  { %909 = vrot.lane.b32.xlu1 %v6518_v12, %s6369_s12  ;;  %742 = vrot.lane.b32.xlu0 %v6518_v12, %s6370_s14 }
 0x222   :  { %1094 = vrot.lane.b32.xlu1 %v6532_v13, %s6363_s13  ;;  %907 = vrot.lane.b32.xlu0 %v6518_v12, %s6371_s15 }
 0x226   :  { %1257 = vrot.lane.b32.xlu1 %v6532_v13, %s6368_s11  ;;  %1259 = vrot.lane.b32.xlu0 %v6532_v13, %s6366_s10 }
 0x22a   :  { %1422 = vrot.lane.b32.xlu1 %v6532_v13, %s6370_s14  ;;  %1424 = vrot.lane.b32.xlu0 %v6532_v13, %s6367_s0 }
 0x22e   :  { %1587 = vrot.lane.b32.xlu1 %v6532_v13, %s6371_s15  ;;  %1589 = vrot.lane.b32.xlu0 %v6532_v13, %s6369_s12 }
 0x288   :  { %v580_v14 = vpop.permute.xlu1 %579  ;;  %v414_v15 = vpop.permute.xlu0 %413 }
 0x289   :  { %5614 = vmatpush3.xpose.msk.msra.mxu1 %vm415_vm2, %v414_v15  ;;  %5624 = vmatpush3.xpose.msk.msra.mxu0 %vm415_vm2, %v580_v14 }
 0x28a   :  { %5633 = vmatprep.subr.mxu0 %v6364_v55  ;;  %5618 = vmatprep.subr.mxu1 %v6364_v55 }
 0x28c   :  { %v745_v16 = vpop.permute.xlu1 %744  ;;  %v578_v17 = vpop.permute.xlu0 %577  ;;  %5616 = vmatmul.mubr.msk.f32.vlgmr.msra.gmra.mrb[6].mxu1 %vm415_vm2, %v6518_v12 }
 0x28d   :  { %5626 = vmatmul.mubr.msk.f32.vlgmr.msra.gmra.mrb[2].mxu0 %vm415_vm2, %v578_v17  ;;  %5620 = vmatprep.mubr.msk.f32.mxu1 %vm6365_vm1, %v6364_v55 }
 0x28e   :  { %5634 = vmatpush3.xpose.msk.msra.mxu0 %vm415_vm2, %v745_v16  ;;  %5635 = vmatprep.mubr.msk.f32.mxu0 %vm6365_vm1, %v6364_v55 }
 0x28f   :  { %5643 = vmatprep.subr.mxu0 %v6364_v55 }
 0x290   :  { %v910_v23 = vpop.permute.xlu1 %909  ;;  %v743_v25 = vpop.permute.xlu0 %742 }
 0x291   :  { %5636 = vmatmul.mubr.msk.f32.vlgmr.msra.gmra.mrb[4].mxu0 %vm415_vm2, %v743_v25 }
 0x292   :  { %5644 = vmatpush3.xpose.msk.msra.mxu0 %vm415_vm2, %v910_v23  ;;  %5645 = vmatprep.mubr.msk.f32.mxu0 %vm6365_vm1, %v6364_v55 }
 0x293   :  { %5653 = vmatprep.subr.mxu0 %v6364_v55 }
 0x294   :  { %v1095_v28 = vpop.permute.xlu1 %1094  ;;  %v908_v29 = vpop.permute.xlu0 %907 }
 0x295   :  { %5646 = vmatmul.mubr.msk.f32.vlgmr.msra.gmra.mrb[6].mxu0 %vm415_vm2, %v908_v29 }
 0x296   :  { %5654 = vmatpush3.xpose.msk.msra.mxu0 %vm415_vm2, %v1095_v28  ;;  %5655 = vmatprep.mubr.msk.f32.mxu0 %vm6365_vm1, %v6364_v55 }
 0x297   :  { %5663 = vmatprep.subr.mxu0 %v6364_v55 }
 0x298   :  { %v1258_v30 = vpop.permute.xlu1 %1257  ;;  %v1260_v31 = vpop.permute.xlu0 %1259 }
 0x299   :  { %5656 = vmatmul.mubr.msk.f32.vlgmr.msra.gmra.mrb[8].mxu0 %vm415_vm2, %v6532_v13 }
 0x29a   :  { %5664 = vmatpush3.xpose.msk.msra.mxu0 %vm415_vm2, %v1260_v31  ;;  %5665 = vmatprep.mubr.msk.f32.mxu0 %vm6365_vm1, %v6364_v55 }
 0x29b   :  { %5673 = vmatprep.subr.mxu0 %v6364_v55 }
 0x29c   :  { %v1425_v32 = vpop.permute.xlu0 %1424  ;;  %v1423_v33 = vpop.permute.xlu1 %1422 }
 0x29d   :  { %5666 = vmatmul.mubr.msk.f32.vlgmr.msra.gmra.mrb[10].mxu0 %vm415_vm2, %v1258_v30 }
 0x29e   :  { %5674 = vmatpush3.xpose.msk.msra.mxu0 %vm415_vm2, %v1425_v32  ;;  %5675 = vmatprep.mubr.msk.f32.mxu0 %vm6365_vm1, %v6364_v55 }
 0x29f   :  { %5683 = vmatprep.subr.mxu0 %v6364_v55 }
 0x2a0   :  { %v1590_v34 = vpop.permute.xlu0 %1589  ;;  %v1588_v35 = vpop.permute.xlu1 %1587 }
 0x2a1   :  { %5676 = vmatmul.mubr.msk.f32.vlgmr.msra.gmra.mrb[12].mxu0 %vm415_vm2, %v1423_v33 }
 0x2a2   :  { %5684 = vmatpush3.xpose.msk.msra.mxu0 %vm415_vm2, %v1590_v34  ;;  %5685 = vmatprep.mubr.msk.f32.mxu0 %vm6365_vm1, %v6364_v55 }
 0x2a5   :  { %5686 = vmatmul.mubr.msk.f32.vlgmr.msra.gmra.mrb[14].mxu0 %vm415_vm2, %v1588_v35 }
 0x35f   :  { %v486_v44 = vpop.f32.mrb[6].mxu1 }
 0x360   :  { %v487_v45 = vadd.f32 %v486_v44, %v6605_v43  ;;  %v5617_v46 = vpop.f32.mrb[7].mxu1  ;;  %v651_v47 = vpop.f32.mrb[2].mxu0 }
 0x361   :  { %v652_v48 = vadd.f32 %v651_v47, %v6605_v43  ;;  %v5627_v49 = vpop.f32.mrb[3].mxu0 }
 0x362   :  { %v490_v50 = vsel %vm415_vm2, %v487_v45, -inf }
 0x363   :  { %491 = vmax.xlane.f32.xlu0 %v490_v50  ;;  %v655_v51 = vsel %vm415_vm2, %v652_v48, -inf }
 0x364   :  { %656 = vmax.xlane.f32.xlu1 %v655_v51  ;;  %v816_v52 = vpop.f32.mrb[4].mxu0 }
 0x365   :  { %v6612_v53 = vadd.f32 %v816_v52, %v6605_v43  ;;  %v5637_v54 = vpop.f32.mrb[5].mxu0 }
 0x367   :  { %v820_v57 = vsel %vm415_vm2, %v6612_v53, -inf }
 0x368   :  { %v981_v58 = vpop.f32.mrb[6].mxu0  ;;  %821 = vmax.xlane.f32.xlu0 %v820_v57 }
 0x369   :  { %v982_v59 = vadd.f32 %v981_v58, %v6605_v43  ;;  %v5647_v60 = vpop.f32.mrb[7].mxu0 }
 0x36b   :  { %v985_v62 = vsel %vm415_vm2, %v982_v59, -inf }
 0x36c   :  { %v1166_v63 = vpop.f32.mrb[8].mxu0  ;;  %986 = vmax.xlane.f32.xlu0 %v985_v62 }
 0x36d   :  { %v1167_v2 = vadd.f32 %v1166_v63, %v6617_v61  ;;  %v5657_v3 = vpop.f32.mrb[9].mxu0 }
 0x36f   :  { %v1170_v4 = vsel %vm415_vm2, %v1167_v2, -inf }
 0x370   :  { %v1331_v5 = vpop.f32.mrb[10].mxu0  ;;  %1171 = vmax.xlane.f32.xlu0 %v1170_v4 }
 0x371   :  { %v1332_v6 = vadd.f32 %v1331_v5, %v6617_v61  ;;  %v5667_v7 = vpop.f32.mrb[11].mxu0 }
 0x373   :  { %v1335_v8 = vsel %vm415_vm2, %v1332_v6, -inf }
 0x374   :  { %1336 = vmax.xlane.f32.xlu1 %v1335_v8  ;;  %v1496_v9 = vpop.f32.mrb[12].mxu0 }
 0x375   :  { %v1497_v10 = vadd.f32 %v1496_v9, %v6617_v61  ;;  %v5677_v11 = vpop.f32.mrb[13].mxu0 }
 0x377   :  { %v1500_v14 = vsel %vm415_vm2, %v1497_v10, -inf }
 0x378   :  { %v1661_v15 = vpop.f32.mrb[14].mxu0  ;;  %1501 = vmax.xlane.f32.xlu0 %v1500_v14 }
 0x379   :  { %v5687_v16 = vpop.f32.mrb[15].mxu0  ;;  %v1662_v17 = vadd.f32 %v1661_v15, %v6617_v61 }
 0x37b   :  { %v1665_v23 = vsel %vm415_vm2, %v1662_v17, -inf }
 0x385   :  { %501 = vrot.lane.b32.xlu1 %v6518_v12, %s6372_s1 }
 0x3a9   :  { %1666 = vmax.xlane.f32.xlu1 %v1665_v23 }
 0x3ba   :  { %831 = vrot.lane.b32.xlu1 %v6518_v12, %s6373_s18 }
 0x3be   :  { %996 = vrot.lane.b32.xlu1 %v6518_v12, %s6374_s19 }
 0x3c2   :  { %1181 = vrot.lane.b32.xlu1 %v6532_v13, %s6372_s1 }
 0x3f0   :  { %v492_v25 = vpop.xlane.xlu0 %491 }
 0x3f1   :  { %v493_v28 = vsub.f32 %v487_v45, %v492_v25  ;;  %v657_v29 = vpop.xlane.xlu1 %656 }
 0x3f2   :  { %v658_v30 = vsub.f32 %v652_v48, %v657_v29 }
 0x3f3   :  { %v494_v31 = vmul.f32 1.442695, %v493_v28 }
 0x3f4   :  { %v659_v32 = vmul.f32 1.442695, %v658_v30 }
 0x3f5   :  { %6227 = vpow2.f32 %v494_v31  ;;  %v822_v33 = vpop.xlane.xlu0 %821 }
 0x3f6   :  { %6229 = vpow2.f32 %v659_v32  ;;  %v823_v48 = vsub.f32 %v6612_v53, %v822_v33 }
 0x3f8   :  { %v824_v50 = vmul.f32 1.442695, %v823_v48 }
 0x3f9   :  { %v987_v34 = vpop.xlane.xlu0 %986 }
 0x3fa   :  { %v988_v35 = vsub.f32 %v982_v59, %v987_v34 }
 0x3fc   :  { %v989_v38 = vmul.f32 1.442695, %v988_v35 }
 0x3fd   :  { %v1172_v49 = vpop.xlane.xlu0 %1171 }
 0x3fe   :  { %6231 = vpow2.f32 %v989_v38  ;;  %v1173_v51 = vsub.f32 %v1167_v2, %v1172_v49 }
 0x3ff   :  { %v6228_v39 = vpop.eup %6227  ;;  %6233 = vpow2.f32 %v824_v50 }
 0x400   :  { %v6634_v40 = vpop.eup %6229  ;;  %v496_v41 = vsel %vm415_vm2, %v6228_v39, 0.0  ;;  %v1174_v54 = vmul.f32 1.442695, %v1173_v51 }
 0x401   :  { %v1337_v42 = vpop.xlane.xlu1 %1336  ;;  %497 = vadd.xlane.f32.xlu0 %v496_v41  ;;  %v661_v44 = vsel %vm415_vm2, %v6634_v40, 0.0 }
 0x402   :  { %662 = vadd.xlane.f32.xlu1 %v661_v44  ;;  %v1338_v57 = vsub.f32 %v1332_v6, %v1337_v42  ;;  %6235 = vpow2.f32 %v1174_v54 }
 0x404   :  { %v1339_v59 = vmul.f32 1.442695, %v1338_v57 }
 0x405   :  { %v502_v45 = vpop.permute.xlu1 %501  ;;  %v1502_v52 = vpop.xlane.xlu0 %1501 }
 0x406   :  { %5619 = vmatpush3.msra.mxu1 %v502_v45  ;;  %v1503_v56 = vsub.f32 %v1497_v10, %v1502_v52 }
 0x407   :  { %5628 = vmatprep.subr.mxu1 %v6364_v55 }
 0x408   :  { %v6640_v46 = vpop.eup %6231  ;;  %v1504_v58 = vmul.f32 1.442695, %v1503_v56 }
 0x409   :  { %v991_v47 = vsel %vm415_vm2, %v6640_v46, 0.0  ;;  %v6234_v60 = vpop.eup %6233 }
 0x40a   :  { %992 = vadd.xlane.f32.xlu1 %v991_v47  ;;  %6237 = vpow2.f32 %v1504_v58 }
 0x40b   :  { %6239 = vpow2.f32 %v1339_v59  ;;  %v403_v59 = vld [vmem:[%s7293_s2 + $0x60] sm:$0xff] }
 0x40c   :  { %v6648_v62 = vpop.eup %6235 }
 0x40d   :  { %v1176_v2 = vsel %vm415_vm2, %v6648_v62, 0.0 }
 0x414   :  { %v6652_v4 = vpop.eup %6237 }
 0x415   :  { %v6654_v5 = vpop.eup %6239  ;;  %v1506_v6 = vsel %vm415_vm2, %v6652_v4, 0.0 }
 0x416   :  { %v1341_v7 = vsel %vm415_vm2, %v6654_v5, 0.0 }
 0x417   :  { %666 = vrot.lane.b32.xlu0 %v6518_v12, %s6375_s20  ;;  %v826_v12 = vsel %vm415_vm2, %v6234_v60, 0.0 }
 0x41b   :  { %1346 = vrot.lane.b32.xlu1 %v6532_v13, %s6375_s20 }
 0x436   :  { %v1667_v63 = vpop.xlane.xlu1 %1666  ;;  %827 = vadd.xlane.f32.xlu0 %v826_v12 }
 0x437   :  { %v1668_v53 = vsub.f32 %v1662_v17, %v1667_v63 }
 0x439   :  { %v1669_v3 = vmul.f32 1.442695, %v1668_v53  ;;  %v405_v53 = vld [vmem:[%s7293_s2 + $0x70] sm:$0xff] }
 0x43a   :  { %1177 = vadd.xlane.f32.xlu0 %v1176_v2  ;;  %v832_v10 = vpop.permute.xlu1 %831 }
 0x43b   :  { %6241 = vpow2.f32 %v1669_v3  ;;  %v406_v3 = vld [vmem:[%s7293_s2 + $0x78] sm:$0xff] }
 0x43e   :  { %1507 = vadd.xlane.f32.xlu0 %v1506_v6  ;;  %v997_v11 = vpop.permute.xlu1 %996 }
 0x43f   :  { %1342 = vadd.xlane.f32.xlu1 %v1341_v7 }
 0x442   :  { %v1182_v14 = vpop.permute.xlu1 %1181 }
 0x445   :  { %v6660_v8 = vpop.eup %6241 }
 0x446   :  { %v1671_v9 = vsel %vm415_vm2, %v6660_v8, 0.0 }
 0x447   :  { %1672 = vadd.xlane.f32.xlu0 %v1671_v9 }
 0x450   :  { %1676 = vrot.lane.b32.xlu1 %v6532_v13, %s6374_s19 }
 0x45d   :  { %1511 = vrot.lane.b32.xlu0 %v6532_v13, %s6373_s18 }
 0x48e   :  { %v498_v15 = vpop.xlane.xlu0 %497 }
 0x48f   :  { %6243 = vrcp.f32 %v498_v15  ;;  %v663_v16 = vpop.xlane.xlu1 %662 }
 0x490   :  { %6245 = vrcp.f32 %v663_v16 }
 0x492   :  { %v667_v28 = vpop.permute.xlu0 %666 }
 0x497   :  { %v993_v29 = vpop.xlane.xlu1 %992 }
 0x499   :  { %v6244_v17 = vpop.eup %6243 }
 0x49a   :  { %v500_v23 = vmul.f32 %v6244_v17, %v6228_v39  ;;  %v6246_v25 = vpop.eup %6245 }
 0x49b   :  { %v665_v13 = vmul.f32 %v6246_v25, %v6634_v40  ;;  %v1347_v32 = vpop.permute.xlu1 %1346 }
 0x49c   :  { %5621 = vmatmul.mubr.msk.f32.vlgmr.msra.gmra.mrb[8].mxu1 %vm415_vm2, %v500_v23 }
 0x49d   :  { %5629 = vmatpush3.msra.mxu1 %v667_v28  ;;  %5630 = vmatprep.mubr.msk.f32.mxu1 %vm6365_vm1, %v6364_v55 }
 0x49e   :  { %5638 = vmatprep.subr.mxu1 %v6364_v55 }
 0x4a0   :  { %5631 = vmatmul.mubr.msk.f32.vlgmr.msra.gmra.mrb[10].mxu1 %vm415_vm2, %v665_v13 }
 0x4a1   :  { %5639 = vmatpush3.msra.mxu1 %v832_v10  ;;  %5640 = vmatprep.mubr.msk.f32.mxu1 %vm6365_vm1, %v6364_v55 }
 0x4a2   :  { %5648 = vmatprep.subr.mxu1 %v6364_v55 }
 0x4c3   :  { %v828_v30 = vpop.xlane.xlu0 %827 }
 0x4c4   :  { %6247 = vrcp.f32 %v828_v30 }
 0x4c5   :  { %6249 = vrcp.f32 %v993_v29 }
 0x4c7   :  { %v1178_v31 = vpop.xlane.xlu0 %1177 }
 0x4c8   :  { %6251 = vrcp.f32 %v1178_v31 }
 0x4cb   :  { %v1508_v35 = vpop.xlane.xlu0 %1507 }
 0x4cc   :  { %v1343_v33 = vpop.xlane.xlu1 %1342 }
 0x4cd   :  { %6253 = vrcp.f32 %v1343_v33 }
 0x4ce   :  { %v6248_v34 = vpop.eup %6247  ;;  %6255 = vrcp.f32 %v1508_v35  ;;  %v5318_v35 = vld [vmem:[%s7294_s3 + $0xb] ss:$0 sm:$0xff] }
 0x4cf   :  { %v830_v38 = vmul.f32 %v6248_v34, %v6234_v60  ;;  %v6250_v39 = vpop.eup %6249  ;;  %v404_v60 = vld [vmem:[%s7293_s2 + $0x68] sm:$0xff] }
 0x4d0   :  { %v995_v40 = vmul.f32 %v6250_v39, %v6640_v46  ;;  %v1677_v51 = vpop.permute.xlu1 %1676 }
 0x4d1   :  { %5641 = vmatmul.mubr.msk.f32.vlgmr.msra.gmra.mrb[12].mxu1 %vm415_vm2, %v830_v38 }
 0x4d2   :  { %5649 = vmatpush3.msra.mxu1 %v997_v11  ;;  %5650 = vmatprep.mubr.msk.f32.mxu1 %vm6365_vm1, %v6364_v55  ;;  %v6252_v41 = vpop.eup %6251 }
 0x4d3   :  { %5658 = vmatprep.subr.mxu1 %v6364_v55  ;;  %v1180_v44 = vmul.f32 %v6252_v41, %v6648_v62  ;;  %v5994_v62 = vpack.c.bf16 %v404_v60, %v403_v59  ;;  %v6002_v59 = vpack.c.bf16 %v6445_v21, %v6440_v20  ;;  %v6006_v60 = vpack.c.bf16 %v6457_v24, %v6450_v22 }
 0x4d4   :  { %v1673_v42 = vpop.xlane.xlu0 %1672 }
 0x4d5   :  { %5651 = vmatmul.mubr.msk.f32.vlgmr.msra.gmra.mrb[14].mxu1 %vm415_vm2, %v995_v40  ;;  %6257 = vrcp.f32 %v1673_v42  ;;  %5995 = vmatprep.subr.bf16.mxu0 %v5994_v62 }
 0x4d6   :  { %5659 = vmatpush3.msra.mxu1 %v1182_v14  ;;  %5660 = vmatprep.mubr.msk.f32.mxu1 %vm6365_vm1, %v6364_v55 }
 0x4d7   :  { %5668 = vmatprep.subr.mxu1 %v6364_v55  ;;  %v6254_v45 = vpop.eup %6253  ;;  %5997 = vmatpush3.bf16.msra.mxu0 %v5994_v62 }
 0x4d8   :  { %v1345_v46 = vmul.f32 %v6254_v45, %v6654_v5  ;;  %v6256_v47 = vpop.eup %6255  ;;  %v1512_v48 = vpop.permute.xlu0 %1511 }
 0x4d9   :  { %5661 = vmatmul.mubr.msk.f32.vlgmr.msra.gmra.mrb[16].mxu1 %vm415_vm2, %v1180_v44  ;;  %v1510_v49 = vmul.f32 %v6256_v47, %v6652_v4  ;;  %v5998_v4 = vpack.c.bf16 %v406_v3, %v405_v53 }
 0x4da   :  { %5669 = vmatpush3.msra.mxu1 %v1347_v32  ;;  %5670 = vmatprep.mubr.msk.f32.mxu1 %vm6365_vm1, %v6364_v55 }
 0x4db   :  { %5678 = vmatprep.subr.mxu1 %v6364_v55  ;;  %5999 = vmatprep.subr.bf16.mxu0 %v5998_v4 }
 0x4dc   :  { %6001 = vmatpush3.bf16.msra.mxu0 %v5998_v4 }
 0x4dd   :  { %5671 = vmatmul.mubr.msk.f32.vlgmr.msra.gmra.mrb[18].mxu1 %vm415_vm2, %v1345_v46 }
 0x4de   :  { %5679 = vmatpush3.msra.mxu1 %v1512_v48  ;;  %5680 = vmatprep.mubr.msk.f32.mxu1 %vm6365_vm1, %v6364_v55 }
 0x4df   :  { %5688 = vmatprep.subr.mxu1 %v6364_v55  ;;  %v6258_v50 = vpop.eup %6257 }
 0x4e0   :  { %v1675_v52 = vmul.f32 %v6258_v50, %v6660_v8 }
 0x4e1   :  { %5681 = vmatmul.mubr.msk.f32.vlgmr.msra.gmra.mrb[20].mxu1 %vm415_vm2, %v1510_v49 }
 0x4e2   :  { %5689 = vmatpush3.msra.mxu1 %v1677_v51  ;;  %5690 = vmatprep.mubr.msk.f32.mxu1 %vm6365_vm1, %v6364_v55 }
 0x4e3   :  { %6003 = vmatprep.subr.bf16.mxu1 %v6002_v59 }
 0x4e5   :  { %5691 = vmatmul.mubr.msk.f32.vlgmr.msra.gmra.mrb[22].mxu1 %vm415_vm2, %v1675_v52 }
 0x4e6   :  { %6005 = vmatpush3.bf16.msra.mxu1 %v6002_v59 }
 0x4e7   :  { %6007 = vmatprep.subr.bf16.mxu1 %v6006_v60 }
 0x4ea   :  { %6009 = vmatpush3.bf16.msra.mxu1 %v6006_v60 }
 0x56f   :  { %v573_v54 = vpop.f32.mrb[8].mxu1 }
 0x570   :  { %v5622_v56 = vpop.f32.mrb[9].mxu1 }
 0x573   :  { %v738_v57 = vpop.f32.mrb[10].mxu1 }
 0x574   :  { %1073 = vrot.lane.b32.xlu0 %v738_v57, %s6376_s21  ;;  %v5632_v58 = vpop.f32.mrb[11].mxu1  ;;  %v6752_v57 = vld [vmem:[%s7294_s3 + $0x9] ss:$0 sm:$0xff] }
 0x575   :  { %v6379_v58 = vmov 0.0|0.0  }
 0x576   :  { %6010 = vmatprep.subr.bf16.mxu0 %v6379_v58  ;;  %6014 = vmatprep.subr.bf16.mxu1 %v6379_v58 }
 0x5a4   :  { %v903_v12 = vpop.f32.mrb[12].mxu1 }
 0x5a5   :  { %1077 = vrot.lane.b32.xlu1 %v903_v12, %s6377_s26  ;;  %v5642_v63 = vpop.f32.mrb[13].mxu1 }
 0x5a8   :  { %v1068_v2 = vpop.f32.mrb[14].mxu1 }
 0x5a9   :  { %1081 = vrot.lane.b32.xlu1 %v1068_v2, %s6378_s5  ;;  %v5652_v5 = vpop.f32.mrb[15].mxu1 }
 0x5ac   :  { %v1253_v6 = vpop.f32.mrb[16].mxu1 }
 0x5ad   :  { %v5662_v7 = vpop.f32.mrb[17].mxu1 }
 0x5b0   :  { %v1418_v8 = vpop.f32.mrb[18].mxu1 }
 0x5b1   :  { %1753 = vrot.lane.b32.xlu0 %v1418_v8, %s6376_s21  ;;  %v5672_v9 = vpop.f32.mrb[19].mxu1 }
 0x5b2   :  { %v5322_v9 = vld [vmem:[%s7294_s3 + $0x3] ss:$0 sm:$0xff] }
 0x5b4   :  { %v1583_v10 = vpop.f32.mrb[20].mxu1 }
 0x5b5   :  { %1757 = vrot.lane.b32.xlu0 %v1583_v10, %s6377_s26  ;;  %v5682_v11 = vpop.f32.mrb[21].mxu1 }
 0x5b8   :  { %v1748_v14 = vpop.f32.mrb[22].mxu1 }
 0x5b9   :  { %1761 = vrot.lane.b32.xlu1 %v1748_v14, %s6378_s5  ;;  %v5692_v15 = vpop.f32.mrb[23].mxu1 }
 0x5e6   :  { %v1074_v16 = vpop.permute.xlu0 %1073 }
 0x5e7   :  { %v1084_v23 = vsel %vm415_vm2, %v573_v54, %v1074_v16 }
 0x617   :  { %v1078_v17 = vpop.permute.xlu1 %1077 }
 0x618   :  { %v1086_v25 = vsel %vm1085_vm4, %v1084_v23, %v1078_v17 }
 0x61b   :  { %v1082_v28 = vpop.permute.xlu1 %1081 }
 0x61c   :  { %v1088_v13 = vsel %vm1087_vm5, %v1086_v25, %v1082_v28 }
 0x61d   :  { %5701 = vmatprep.mubr.msk.f32.mxu0 %vm66_vm0, %v1088_v13 }
 0x623   :  { %v1754_v29 = vpop.permute.xlu0 %1753 }
 0x624   :  { %v1764_v31 = vsel %vm415_vm2, %v1253_v6, %v1754_v29 }
 0x627   :  { %v1758_v30 = vpop.permute.xlu0 %1757 }
 0x628   :  { %v1765_v32 = vsel %vm1085_vm4, %v1764_v31, %v1758_v30 }
 0x62b   :  { %v1762_v33 = vpop.permute.xlu1 %1761 }
 0x62c   :  { %v1766_v34 = vsel %vm1087_vm5, %v1765_v32, %v1762_v33 }
 0x62d   :  { %5702 = vmatmul.mubr.msk.f32.vlgmr.msra.gmra.mrb[16].mxu0 %vm66_vm0, %v1766_v34 }
 0x62e   :  { %5719 = vmatprep.mubr.msk.f32.mxu0 %vm6365_vm1, %v6364_v55 }
 0x700   :  { %v5703_v38 = vpop.f32.mrb[16].mxu0 }
 0x701   :  { %v1849_v39 = vadd.f32 %v5703_v38, %v5318_v35  ;;  %v1843_v40 = vpop.f32.mrb[17].mxu0 }
 0x702   :  { %v1844_v41 = vadd.f32 %v5318_v35, %v1843_v40 }
 0x703   :  { %v6734_v42 = vadd.f32 %v1849_v39, %v6415_v1 }
 0x704   :  { %v6737_v44 = vadd.f32 %v1844_v41, %v6410_v0 }
 0x705   :  { %v1857_v45 = vsel %vm66_vm0, %v6734_v42, 0.0 }
 0x706   :  { %1858 = vadd.xlane.f32.xlu1 %v1857_v45  ;;  %v1854_v46 = vsel %vm66_vm0, %v6737_v44, 0.0 }
 0x707   :  { %1855 = vadd.xlane.f32.xlu0 %v1854_v46 }
 0x717   :  { %1979 = vrot.lane.b32.xlu1 %v6605_v43, %s6368_s11 }
 0x793   :  { %v1859_v47 = vpop.xlane.xlu1 %1858 }
 0x794   :  { %v1861_v48 = vmul.f32 0.03125, %v1859_v47  ;;  %v1856_v49 = vpop.xlane.xlu0 %1855 }
 0x795   :  { %v1860_v50 = vmul.f32 0.03125, %v1856_v49 }
 0x796   :  { %v1863_v1 = vsub.f32 %v6734_v42, %v1861_v48 }
 0x797   :  { %v1862_v0 = vsub.f32 %v6737_v44, %v1860_v50  ;;  %v6806_v13 = vpop.permute.xlu1 %1979 }
 0x798   :  { %v1865_v54 = vmul.f32 %v1863_v1, %v1863_v1 }
 0x799   :  { %v1864_v51 = vmul.f32 %v1862_v0, %v1862_v0 }
 0x79a   :  { %v1869_v56 = vsel %vm66_vm0, %v1865_v54, 0.0 }
 0x79b   :  { %v1866_v52 = vsel %vm66_vm0, %v1864_v51, 0.0 }
 0x79c   :  { %1867 = vadd.xlane.f32.xlu0 %v1866_v52 }
 0x7a0   :  { %1870 = vadd.xlane.f32.xlu0 %v1869_v56 }
 0x7b6   :  { %63 = vrot.lane.b32.xlu0 %v6752_v57, %s6363_s13 }
 0x829   :  { %v1868_v12 = vpop.xlane.xlu0 %1867 }
 0x82a   :  { %v1872_v62 = vmul.f32 0.03125, %v1868_v12 }
 0x82c   :  { %v1874_v63 = vadd.f32 1e-06, %v1872_v62 }
 0x82d   :  { %v1871_v53 = vpop.xlane.xlu0 %1870 }
 0x82e   :  { %6259 = vrsqrt.f32 %v1874_v63  ;;  %v1873_v3 = vmul.f32 0.03125, %v1871_v53 }
 0x830   :  { %v1875_v2 = vadd.f32 1e-06, %v1873_v3 }
 0x831   :  { %v64_v4 = vpop.permute.xlu0 %63 }
 0x832   :  { %6261 = vrsqrt.f32 %v1875_v2  ;;  %v146_v20 = vadd.f32 %v6565_v19, %v64_v4  ;;  %v151_v21 = vadd.f32 %v6562_v18, %v64_v4  ;;  %v6765_v22 = vadd.f32 %v6574_v27, %v64_v4  ;;  %v5321_v27 = vld [vmem:[%s7294_s3 + $0x2] ss:$0 sm:$0xff] }
 0x833   :  { %v6768_v24 = vadd.f32 %v6571_v26, %v64_v4 }
 0x834   :  { %v6011_v6 = vpack.c.bf16 %v151_v21, %v146_v20  ;;  %v6776_v7 = vpack.i.bf16 %v151_v21, %v146_v20 }
 0x835   :  { %v6039_v18 = vpack.c.bf16 %v6768_v24, %v6765_v22  ;;  %v6784_v19 = vpack.i.bf16 %v6768_v24, %v6765_v22 }
 0x836   :  { %6013 = vmatpush3.bf16.xpose.msk.msra.mxu0 %vm6772_vm6, %v6011_v6 }
 0x837   :  { %6021 = vmatprep.subr.bf16.mxu0 %v6379_v58 }
 0x838   :  { %v6260_v26 = vpop.eup %6259 }
 0x839   :  { %v1878_v8 = vmul.f32 %v6260_v26, %v1862_v0 }
 0x83b   :  { %v1884_v10 = vmul.f32 %v5321_v27, %v1878_v8 }
 0x83c   :  { %v6262_v11 = vpop.eup %6261 }
 0x83d   :  { %v1879_v14 = vmul.f32 %v6262_v11, %v1863_v1  ;;  %v1890_v15 = vadd.f32 %v5322_v9, %v1884_v10 }
 0x83f   :  { %v1885_v16 = vmul.f32 %v5321_v27, %v1879_v14  ;;  %5712 = vmatprep.mubr.msk.f32.mxu1 %vm66_vm0, %v1890_v15 }
 0x841   :  { %v1891_v17 = vadd.f32 %v5322_v9, %v1885_v16 }
 0x843   :  { %5713 = vmatmul.mubr.msk.f32.vlgmr.msra.gmra.mrb[24].mxu1 %vm66_vm0, %v1891_v17 }
 0x844   :  { %5726 = vmatprep.mubr.msk.f32.mxu1 %vm6365_vm1, %v6364_v55 }
 0x916   :  { %v6797_v23 = vpop.f32.mrb[24].mxu1 }
 0x917   :  { %v1964_v25 = vpop.f32.mrb[25].mxu1 }
 0x918   :  { %v6800_v28 = vadd.f32 %v6752_v57, %v1964_v25 }
 0x91a   :  { %5720 = vmatmul.mubr.msk.f32.vlgmr.msra.gmra.mrb[18].mxu0 %vm415_vm2, %v6800_v28 }
 0x91b   :  { %5740 = vmatprep.mubr.msk.f32.mxu0 %vm6365_vm1, %v6364_v55 }
 0x9ed   :  { %v2057_v29 = vpop.f32.mrb[18].mxu0 }
 0x9ee   :  { %v2058_v30 = vadd.f32 %v2057_v29, %v6806_v13  ;;  %v5721_v31 = vpop.f32.mrb[19].mxu0 }
 0x9f0   :  { %v2061_v32 = vsel %vm1085_vm4, %v2058_v30, -inf }
 0x9f1   :  { %2062 = vmax.xlane.f32.xlu1 %v2061_v32 }
 0xa02   :  { %6159 = vrot.lane.b32.xlu1 %v6776_v7, %s6368_s11 }
 0xa06   :  { %2151 = vrot.lane.b32.xlu1 %v6800_v28, %s6368_s11 }
 0xa7e   :  { %v2063_v33 = vpop.xlane.xlu1 %2062 }
 0xa7f   :  { %v2064_v34 = vsub.f32 %v2058_v30, %v2063_v33 }
 0xa81   :  { %v2065_v35 = vmul.f32 1.442695, %v2064_v34 }
 0xa82   :  { %v6160_v48 = vpop.permute.xlu1 %6159 }
 0xa83   :  { %6263 = vpow2.f32 %v2065_v35  ;;  %v6162_v50 = vunpack.i.h.bf16 %v6160_v48  ;;  %v6161_v1 = vunpack.i.l.bf16 %v6160_v48 }
 0xa85   :  { %v6018_v51 = vpack.c.bf16 %v6162_v50, %v6161_v1 }
 0xa86   :  { %v2152_v52 = vpop.permute.xlu1 %2151 }
 0xa8d   :  { %v6264_v38 = vpop.eup %6263 }
 0xa8e   :  { %v2067_v39 = vsel %vm1085_vm4, %v6264_v38, 0.0 }
 0xa8f   :  { %2068 = vadd.xlane.f32.xlu0 %v2067_v39 }
 0xaa5   :  { %6154 = vrot.lane.b32.xlu0 %v6776_v7, %s6363_s13 }
 0xb1c   :  { %v2069_v40 = vpop.xlane.xlu0 %2068 }
 0xb1d   :  { %6265 = vrcp.f32 %v2069_v40 }
 0xb20   :  { %v6155_v41 = vpop.permute.xlu0 %6154 }
 0xb21   :  { %v6157_v45 = vunpack.i.h.bf16 %v6155_v41  ;;  %v6156_v46 = vunpack.i.l.bf16 %v6155_v41 }
 0xb23   :  { %v6015_v47 = vpack.c.bf16 %v6157_v45, %v6156_v46 }
 0xb25   :  { %6016 = vmatpush3.bf16.msra.mxu1 %v6015_v47 }
 0xb26   :  { %6017 = vmatprep.subr.bf16.mxu1 %v6379_v58 }
 0xb27   :  { %v6266_v49 = vpop.eup %6265 }
 0xb28   :  { %v2071_v0 = vmul.f32 %v6266_v49, %v6264_v38 }
 0xb2a   :  { %5727 = vmatmul.mubr.msk.f32.vlgmr.msra.gmra.mrb[26].mxu1 %vm1085_vm4, %v2071_v0 }
 0xb2b   :  { %5733 = vmatprep.mubr.msk.f32.mxu1 %vm6365_vm1, %v6364_v55 }
 0xb2e   :  { %6020 = vmatpush3.bf16.xpose.msk.msra.mxu1 %vm6772_vm6, %v6018_v51 }
 0xb2f   :  { %6028 = vmatprep.subr.bf16.mxu1 %v6379_v58 }
 0xb35   :  { %5734 = vmatmul.mubr.msk.f32.vlgmr.msra.gmra.mrb[28].mxu1 %vm415_vm2, %v2152_v52 }
 0xb36   :  { %5754 = vmatprep.mubr.msk.f32.mxu1 %vm6365_vm1, %v6364_v55 }
 0xbfd   :  { %v6827_v54 = vpop.f32.mrb[26].mxu1 }
 0xbfe   :  { %v5728_v56 = vpop.f32.mrb[27].mxu1 }
 0xc08   :  { %v2229_v59 = vpop.f32.mrb[28].mxu1 }
 0xc09   :  { %v2230_v60 = vadd.f32 %v2229_v59, %v6806_v13  ;;  %v5735_v12 = vpop.f32.mrb[29].mxu1 }
 0xc0b   :  { %v2233_v62 = vsel %vm1085_vm4, %v2230_v60, -inf }
 0xc0c   :  { %2234 = vmax.xlane.f32.xlu1 %v2233_v62 }
 0xc1d   :  { %6169 = vrot.lane.b32.xlu1 %v6776_v7, %s6370_s14 }
 0xc21   :  { %2323 = vrot.lane.b32.xlu1 %v6800_v28, %s6370_s14 }
 0xc99   :  { %v2235_v63 = vpop.xlane.xlu1 %2234 }
 0xc9a   :  { %v2236_v53 = vsub.f32 %v2230_v60, %v2235_v63 }
 0xc9c   :  { %v2237_v3 = vmul.f32 1.442695, %v2236_v53 }
 0xc9d   :  { %v6170_v8 = vpop.permute.xlu1 %6169 }
 0xc9e   :  { %6267 = vpow2.f32 %v2237_v3  ;;  %v6172_v10 = vunpack.i.h.bf16 %v6170_v8  ;;  %v6171_v11 = vunpack.i.l.bf16 %v6170_v8 }
 0xca0   :  { %v6025_v15 = vpack.c.bf16 %v6172_v10, %v6171_v11 }
 0xca1   :  { %v2324_v16 = vpop.permute.xlu1 %2323 }
 0xca8   :  { %v6268_v2 = vpop.eup %6267 }
 0xca9   :  { %v2239_v4 = vsel %vm1085_vm4, %v6268_v2, 0.0 }
 0xcaa   :  { %2240 = vadd.xlane.f32.xlu0 %v2239_v4 }
 0xcc0   :  { %6164 = vrot.lane.b32.xlu0 %v6776_v7, %s6366_s10 }
 0xd37   :  { %v2241_v20 = vpop.xlane.xlu0 %2240 }
 0xd38   :  { %6269 = vrcp.f32 %v2241_v20 }
 0xd3b   :  { %v6165_v21 = vpop.permute.xlu0 %6164 }
 0xd3c   :  { %v6167_v6 = vunpack.i.h.bf16 %v6165_v21  ;;  %v6166_v26 = vunpack.i.l.bf16 %v6165_v21 }
 0xd3e   :  { %v6022_v27 = vpack.c.bf16 %v6167_v6, %v6166_v26 }
 0xd40   :  { %6023 = vmatpush3.bf16.msra.mxu0 %v6022_v27 }
 0xd41   :  { %6024 = vmatprep.subr.bf16.mxu0 %v6379_v58 }
 0xd42   :  { %v6270_v9 = vpop.eup %6269 }
 0xd43   :  { %v2243_v14 = vmul.f32 %v6270_v9, %v6268_v2 }
 0xd45   :  { %5741 = vmatmul.mubr.msk.f32.vlgmr.msra.gmra.mrb[20].mxu0 %vm1085_vm4, %v2243_v14 }
 0xd46   :  { %5747 = vmatprep.mubr.msk.f32.mxu0 %vm6365_vm1, %v6364_v55 }
 0xd49   :  { %6027 = vmatpush3.bf16.xpose.msk.msra.mxu0 %vm6772_vm6, %v6025_v15 }
 0xd4a   :  { %6035 = vmatprep.subr.bf16.mxu0 %v6379_v58 }
 0xd50   :  { %5748 = vmatmul.mubr.msk.f32.vlgmr.msra.gmra.mrb[22].mxu0 %vm415_vm2, %v2324_v16 }
 0xd51   :  { %5768 = vmatprep.mubr.msk.f32.mxu0 %vm6365_vm1, %v6364_v55 }
 0xe18   :  { %v6848_v17 = vpop.f32.mrb[20].mxu0 }
 0xe19   :  { %v5742_v25 = vpop.f32.mrb[21].mxu0 }
 0xe23   :  { %v2401_v29 = vpop.f32.mrb[22].mxu0 }
 0xe24   :  { %v2402_v30 = vadd.f32 %v2401_v29, %v6806_v13  ;;  %v5749_v31 = vpop.f32.mrb[23].mxu0 }
 0xe26   :  { %v2405_v32 = vsel %vm1085_vm4, %v2402_v30, -inf }
 0xe27   :  { %2406 = vmax.xlane.f32.xlu0 %v2405_v32 }
 0xe3d   :  { %6174 = vrot.lane.b32.xlu0 %v6776_v7, %s6367_s0 }
 0xe41   :  { %2495 = vrot.lane.b32.xlu0 %v6800_v28, %s6371_s15 }
 0xeb4   :  { %v2407_v33 = vpop.xlane.xlu0 %2406 }
 0xeb5   :  { %v2408_v34 = vsub.f32 %v2402_v30, %v2407_v33 }
 0xeb7   :  { %v2409_v35 = vmul.f32 1.442695, %v2408_v34 }
 0xeb8   :  { %v6175_v38 = vpop.permute.xlu0 %6174 }
 0xeb9   :  { %6271 = vpow2.f32 %v2409_v35  ;;  %v6177_v39 = vunpack.i.h.bf16 %v6175_v38  ;;  %v6176_v40 = vunpack.i.l.bf16 %v6175_v38 }
 0xebb   :  { %v6029_v41 = vpack.c.bf16 %v6177_v39, %v6176_v40 }
 0xebc   :  { %v2496_v51 = vpop.permute.xlu0 %2495 }
 0xebd   :  { %6030 = vmatpush3.bf16.msra.mxu1 %v6029_v41 }
 0xebe   :  { %6031 = vmatprep.subr.bf16.mxu1 %v6379_v58 }
 0xec3   :  { %v6272_v45 = vpop.eup %6271 }
 0xec4   :  { %v2411_v46 = vsel %vm1085_vm4, %v6272_v45, 0.0 }
 0xec5   :  { %2412 = vadd.xlane.f32.xlu1 %v2411_v46 }
 0xed6   :  { %6179 = vrot.lane.b32.xlu1 %v6776_v7, %s6371_s15 }
 0xf52   :  { %v2413_v47 = vpop.xlane.xlu1 %2412 }
 0xf53   :  { %6273 = vrcp.f32 %v2413_v47 }
 0xf56   :  { %v6180_v28 = vpop.permute.xlu1 %6179 }
 0xf57   :  { %v6182_v48 = vunpack.i.h.bf16 %v6180_v28  ;;  %v6181_v49 = vunpack.i.l.bf16 %v6180_v28 }
 0xf59   :  { %v6032_v0 = vpack.c.bf16 %v6182_v48, %v6181_v49 }
 0xf5d   :  { %v6274_v50 = vpop.eup %6273 }
 0xf5e   :  { %v2415_v1 = vmul.f32 %v6274_v50, %v6272_v45 }
 0xf60   :  { %5755 = vmatmul.mubr.msk.f32.vlgmr.msra.gmra.mrb[30].mxu1 %vm1085_vm4, %v2415_v1 }
 0xf61   :  { %6034 = vmatpush3.bf16.xpose.msk.msra.mxu1 %vm6772_vm6, %v6032_v0  ;;  %5761 = vmatprep.mubr.msk.f32.mxu1 %vm6365_vm1, %v6364_v55 }
 0xf62   :  { %6042 = vmatprep.subr.bf16.mxu1 %v6379_v58 }
 0xf68   :  { %5762 = vmatmul.mubr.msk.f32.vlgmr.msra.gmra.mrb[32].mxu1 %vm415_vm2, %v2496_v51 }
 0xf69   :  { %5782 = vmatprep.mubr.msk.f32.mxu1 %vm6365_vm1, %v6364_v55 }
0x1033   :  { %v6869_v52 = vpop.f32.mrb[30].mxu1 }
0x1034   :  { %v5756_v56 = vpop.f32.mrb[31].mxu1 }
0x103b   :  { %v2573_v59 = vpop.f32.mrb[32].mxu1 }
0x103c   :  { %v2574_v60 = vadd.f32 %v2573_v59, %v6806_v13  ;;  %v5763_v12 = vpop.f32.mrb[33].mxu1 }
0x103e   :  { %v2577_v62 = vsel %vm1085_vm4, %v2574_v60, -inf }
0x103f   :  { %2578 = vmax.xlane.f32.xlu1 %v2577_v62 }
0x1050   :  { %2683 = vrot.lane.b32.xlu1 %v6617_v61, %s6368_s11 }
0x10cc   :  { %v2579_v63 = vpop.xlane.xlu1 %2578 }
0x10cd   :  { %v2580_v53 = vsub.f32 %v2574_v60, %v2579_v63 }
0x10cf   :  { %v2581_v3 = vmul.f32 1.442695, %v2580_v53 }
0x10d0   :  { %v6898_v11 = vpop.permute.xlu1 %2683 }
0x10d1   :  { %6275 = vpow2.f32 %v2581_v3 }
0x10db   :  { %v6276_v2 = vpop.eup %6275 }
0x10dc   :  { %v2583_v4 = vsel %vm1085_vm4, %v6276_v2, 0.0 }
0x10dd   :  { %2584 = vadd.xlane.f32.xlu0 %v2583_v4 }
0x10f3   :  { %6184 = vrot.lane.b32.xlu0 %v6776_v7, %s6369_s12  ;;  %v6890_v7 = vadd.f32 %v6797_v23, %v6752_v57 }
0x116a   :  { %v2585_v20 = vpop.xlane.xlu0 %2584 }
0x116b   :  { %6277 = vrcp.f32 %v2585_v20 }
0x116e   :  { %v6185_v13 = vpop.permute.xlu0 %6184 }
0x116f   :  { %v6187_v21 = vunpack.i.h.bf16 %v6185_v13  ;;  %v6186_v6 = vunpack.i.l.bf16 %v6185_v13 }
0x1171   :  { %v6036_v26 = vpack.c.bf16 %v6187_v21, %v6186_v6 }
0x1173   :  { %6037 = vmatpush3.bf16.msra.mxu0 %v6036_v26 }
0x1174   :  { %6038 = vmatprep.subr.bf16.mxu0 %v6379_v58 }
0x1175   :  { %v6278_v27 = vpop.eup %6277 }
0x1176   :  { %v2587_v8 = vmul.f32 %v6278_v27, %v6276_v2 }
0x1178   :  { %5769 = vmatmul.mubr.msk.f32.vlgmr.msra.gmra.mrb[24].mxu0 %vm1085_vm4, %v2587_v8 }
0x1179   :  { %5775 = vmatprep.mubr.msk.f32.mxu0 %vm6365_vm1, %v6364_v55 }
0x117c   :  { %6041 = vmatpush3.bf16.xpose.msk.msra.mxu0 %vm6772_vm6, %v6039_v18 }
0x117d   :  { %6049 = vmatprep.subr.bf16.mxu0 %v6379_v58 }
0x1183   :  { %5776 = vmatmul.mubr.msk.f32.vlgmr.msra.gmra.mrb[26].mxu0 %vm415_vm2, %v6890_v7 }
0x1184   :  { %5796 = vmatprep.mubr.msk.f32.mxu0 %vm6365_vm1, %v6364_v55 }
0x124b   :  { %v6896_v9 = vpop.f32.mrb[24].mxu0 }
0x124c   :  { %v5770_v10 = vpop.f32.mrb[25].mxu0 }
0x1256   :  { %v2761_v22 = vpop.f32.mrb[26].mxu0 }
0x1257   :  { %v2762_v24 = vadd.f32 %v2761_v22, %v6898_v11  ;;  %v5777_v18 = vpop.f32.mrb[27].mxu0 }
0x1259   :  { %v2765_v14 = vsel %vm1085_vm4, %v2762_v24, -inf }
0x125a   :  { %2766 = vmax.xlane.f32.xlu1 %v2765_v14 }
0x126b   :  { %6194 = vrot.lane.b32.xlu1 %v6784_v19, %s6368_s11 }
0x126f   :  { %2855 = vrot.lane.b32.xlu1 %v6890_v7, %s6368_s11 }
0x12e7   :  { %v2767_v57 = vpop.xlane.xlu1 %2766 }
0x12e8   :  { %v2768_v23 = vsub.f32 %v2762_v24, %v2767_v57 }
0x12ea   :  { %v2769_v15 = vmul.f32 1.442695, %v2768_v23 }
0x12eb   :  { %v6195_v34 = vpop.permute.xlu1 %6194 }
0x12ec   :  { %6279 = vpow2.f32 %v2769_v15  ;;  %v6197_v38 = vunpack.i.h.bf16 %v6195_v34  ;;  %v6196_v39 = vunpack.i.l.bf16 %v6195_v34 }
0x12ee   :  { %v6046_v41 = vpack.c.bf16 %v6197_v38, %v6196_v39 }
0x12ef   :  { %v2856_v45 = vpop.permute.xlu1 %2855 }
0x12f6   :  { %v6280_v16 = vpop.eup %6279 }
0x12f7   :  { %v2771_v25 = vsel %vm1085_vm4, %v6280_v16, 0.0 }
0x12f8   :  { %2772 = vadd.xlane.f32.xlu0 %v2771_v25 }
0x130e   :  { %6189 = vrot.lane.b32.xlu0 %v6784_v19, %s6363_s13 }
0x1385   :  { %v2773_v29 = vpop.xlane.xlu0 %2772 }
0x1386   :  { %6281 = vrcp.f32 %v2773_v29 }
0x1389   :  { %v6190_v30 = vpop.permute.xlu0 %6189 }
0x138a   :  { %v6192_v31 = vunpack.i.h.bf16 %v6190_v30  ;;  %v6191_v32 = vunpack.i.l.bf16 %v6190_v30 }
0x138c   :  { %v6043_v33 = vpack.c.bf16 %v6192_v31, %v6191_v32 }
0x138e   :  { %6044 = vmatpush3.bf16.msra.mxu1 %v6043_v33 }
0x138f   :  { %6045 = vmatprep.subr.bf16.mxu1 %v6379_v58 }
0x1390   :  { %v6282_v35 = vpop.eup %6281 }
0x1391   :  { %v2775_v40 = vmul.f32 %v6282_v35, %v6280_v16 }
0x1393   :  { %5783 = vmatmul.mubr.msk.f32.vlgmr.msra.gmra.mrb[34].mxu1 %vm1085_vm4, %v2775_v40 }
0x1394   :  { %5789 = vmatprep.mubr.msk.f32.mxu1 %vm6365_vm1, %v6364_v55 }
0x1397   :  { %6048 = vmatpush3.bf16.xpose.msk.msra.mxu1 %vm6772_vm6, %v6046_v41 }
0x1398   :  { %6056 = vmatprep.subr.bf16.mxu1 %v6379_v58 }
0x139e   :  { %5790 = vmatmul.mubr.msk.f32.vlgmr.msra.gmra.mrb[36].mxu1 %vm415_vm2, %v2856_v45 }
0x139f   :  { %5810 = vmatprep.mubr.msk.f32.mxu1 %vm6365_vm1, %v6364_v55 }
0x1466   :  { %v6919_v46 = vpop.f32.mrb[34].mxu1 }
0x1467   :  { %v5784_v47 = vpop.f32.mrb[35].mxu1 }
0x1471   :  { %v2933_v28 = vpop.f32.mrb[36].mxu1 }
0x1472   :  { %v2934_v48 = vadd.f32 %v2933_v28, %v6898_v11  ;;  %v5791_v49 = vpop.f32.mrb[37].mxu1 }
0x1474   :  { %v2937_v50 = vsel %vm1085_vm4, %v2934_v48, -inf }
0x1475   :  { %2938 = vmax.xlane.f32.xlu0 %v2937_v50 }
0x148b   :  { %6199 = vrot.lane.b32.xlu0 %v6784_v19, %s6366_s10 }
0x148f   :  { %3027 = vrot.lane.b32.xlu0 %v6890_v7, %s6370_s14 }
0x1502   :  { %v2939_v1 = vpop.xlane.xlu0 %2938 }
0x1503   :  { %v2940_v0 = vsub.f32 %v2934_v48, %v2939_v1 }
0x1505   :  { %v2941_v51 = vmul.f32 1.442695, %v2940_v0 }
0x1506   :  { %v6200_v56 = vpop.permute.xlu0 %6199 }
0x1507   :  { %6283 = vpow2.f32 %v2941_v51  ;;  %v6202_v59 = vunpack.i.h.bf16 %v6200_v56  ;;  %v6201_v60 = vunpack.i.l.bf16 %v6200_v56 }
0x1509   :  { %v6050_v12 = vpack.c.bf16 %v6202_v59, %v6201_v60 }
0x150a   :  { %v3028_v6 = vpop.permute.xlu0 %3027 }
0x150b   :  { %6051 = vmatpush3.bf16.msra.mxu0 %v6050_v12 }
0x150c   :  { %6052 = vmatprep.subr.bf16.mxu0 %v6379_v58 }
0x1511   :  { %v6284_v62 = vpop.eup %6283 }
0x1512   :  { %v2943_v63 = vsel %vm1085_vm4, %v6284_v62, 0.0 }
0x1513   :  { %2944 = vadd.xlane.f32.xlu1 %v2943_v63 }
0x1524   :  { %6204 = vrot.lane.b32.xlu1 %v6784_v19, %s6370_s14 }
0x15a0   :  { %v2945_v53 = vpop.xlane.xlu1 %2944 }
0x15a1   :  { %6285 = vrcp.f32 %v2945_v53  ;;  %v1973_v53 = vld [vmem:[%s7293_s2 + $0x80] sm:$0xff] }
0x15a4   :  { %v6205_v3 = vpop.permute.xlu1 %6204 }
0x15a5   :  { %v6207_v2 = vunpack.i.h.bf16 %v6205_v3  ;;  %v6206_v4 = vunpack.i.l.bf16 %v6205_v3  ;;  %v1974_v3 = vld [vmem:[%s7293_s2 + $0x88] sm:$0xff] }
0x15a7   :  { %v6053_v21 = vpack.c.bf16 %v6207_v2, %v6206_v4  ;;  %v6066_v2 = vpack.c.bf16 %v1974_v3, %v1973_v53  ;;  %v1976_v4 = vld [vmem:[%s7293_s2 + $0x98] sm:$0xff] }
0x15ab   :  { %v6286_v20 = vpop.eup %6285 }
0x15ac   :  { %v2947_v13 = vmul.f32 %v6286_v20, %v6284_v62 }
0x15ae   :  { %5797 = vmatmul.mubr.msk.f32.vlgmr.msra.gmra.mrb[28].mxu0 %vm1085_vm4, %v2947_v13 }
0x15af   :  { %6055 = vmatpush3.bf16.xpose.msk.msra.mxu0 %vm6772_vm6, %v6053_v21  ;;  %5803 = vmatprep.mubr.msk.f32.mxu0 %vm6365_vm1, %v6364_v55 }
0x15b0   :  { %6063 = vmatprep.subr.bf16.mxu0 %v6379_v58 }
0x15b6   :  { %5804 = vmatmul.mubr.msk.f32.vlgmr.msra.gmra.mrb[30].mxu0 %vm415_vm2, %v3028_v6 }
0x15b7   :  { %5824 = vmatprep.mubr.msk.f32.mxu0 %vm6365_vm1, %v6364_v55 }
0x1681   :  { %v3023_v26 = vpop.f32.mrb[28].mxu0 }
0x1682   :  { %v5798_v27 = vpop.f32.mrb[29].mxu0 }
0x1689   :  { %v3105_v8 = vpop.f32.mrb[30].mxu0 }
0x168a   :  { %v3106_v10 = vadd.f32 %v3105_v8, %v6898_v11  ;;  %v5805_v22 = vpop.f32.mrb[31].mxu0 }
0x168c   :  { %v3109_v24 = vsel %vm1085_vm4, %v3106_v10, -inf }
0x168d   :  { %3110 = vmax.xlane.f32.xlu1 %v3109_v24  ;;  %v5357_v24 = vld [vmem:[%s7294_s3 + $0xc] ss:$0 sm:$0xff] }
0x169e   :  { %6214 = vrot.lane.b32.xlu1 %v6784_v19, %s6371_s15 }
0x16a2   :  { %3199 = vrot.lane.b32.xlu1 %v6890_v7, %s6371_s15 }
0x171a   :  { %v3111_v18 = vpop.xlane.xlu1 %3110 }
0x171b   :  { %v3112_v14 = vsub.f32 %v3106_v10, %v3111_v18 }
0x171d   :  { %v3113_v57 = vmul.f32 1.442695, %v3112_v14 }
0x171e   :  { %v6215_v32 = vpop.permute.xlu1 %6214 }
0x171f   :  { %6287 = vpow2.f32 %v3113_v57  ;;  %v6217_v33 = vunpack.i.h.bf16 %v6215_v32  ;;  %v6216_v34 = vunpack.i.l.bf16 %v6215_v32 }
0x1721   :  { %v6060_v38 = vpack.c.bf16 %v6217_v33, %v6216_v34 }
0x1722   :  { %v3200_v39 = vpop.permute.xlu1 %3199 }
0x1729   :  { %v6288_v23 = vpop.eup %6287 }
0x172a   :  { %v3115_v15 = vsel %vm1085_vm4, %v6288_v23, 0.0 }
0x172b   :  { %3116 = vadd.xlane.f32.xlu0 %v3115_v15 }
0x1741   :  { %6209 = vrot.lane.b32.xlu0 %v6784_v19, %s6367_s0 }
0x17b8   :  { %v3117_v16 = vpop.xlane.xlu0 %3116 }
0x17b9   :  { %6289 = vrcp.f32 %v3117_v16 }
0x17bc   :  { %v6210_v25 = vpop.permute.xlu0 %6209 }
0x17bd   :  { %v6212_v29 = vunpack.i.h.bf16 %v6210_v25  ;;  %v6211_v30 = vunpack.i.l.bf16 %v6210_v25 }
0x17bf   :  { %v6057_v31 = vpack.c.bf16 %v6212_v29, %v6211_v30  ;;  %v7012_v29 = vld [vmem:[%s7294_s3 + $0xa] ss:$0 sm:$0xff] }
0x17c1   :  { %6058 = vmatpush3.bf16.msra.mxu1 %v6057_v31 }
0x17c2   :  { %6059 = vmatprep.subr.bf16.mxu1 %v6379_v58 }
0x17c3   :  { %v6290_v7 = vpop.eup %6289 }
0x17c4   :  { %v3119_v35 = vmul.f32 %v6290_v7, %v6288_v23 }
0x17c6   :  { %5811 = vmatmul.mubr.msk.f32.vlgmr.msra.gmra.mrb[38].mxu1 %vm1085_vm4, %v3119_v35 }
0x17c7   :  { %5817 = vmatprep.mubr.msk.f32.mxu1 %vm6365_vm1, %v6364_v55 }
0x17ca   :  { %6062 = vmatpush3.bf16.xpose.msk.msra.mxu1 %vm6772_vm6, %v6060_v38 }
0x17d1   :  { %5818 = vmatmul.mubr.msk.f32.vlgmr.msra.gmra.mrb[40].mxu1 %vm415_vm2, %v3200_v39 }
0x1899   :  { %v3195_v40 = vpop.f32.mrb[38].mxu1 }
0x189a   :  { %v5812_v41 = vpop.f32.mrb[39].mxu1 }
0x189b   :  { %v6336_v41 = vld [vmem:[%s7293_s2 + $0x48] sm:$0xff] }
0x18a4   :  { %v3277_v45 = vpop.f32.mrb[40].mxu1 }
0x18a5   :  { %v3278_v58 = vadd.f32 %v3277_v45, %v6898_v11  ;;  %v5819_v47 = vpop.f32.mrb[41].mxu1 }
0x18a6   :  { %v6337_v47 = vld [vmem:[%s7293_s2 + $0x50] sm:$0xff] }
0x18a7   :  { %v3281_v28 = vsel %vm1085_vm4, %v3278_v58, -inf }
0x18a8   :  { %3282 = vmax.xlane.f32.xlu0 %v3281_v28  ;;  %v6338_v28 = vld [vmem:[%s7293_s2 + $0x58] sm:$0xff] }
0x18be   :  { %6219 = vrot.lane.b32.xlu0 %v6784_v19, %s6369_s12 }
0x18c2   :  { %2672 = vrot.lane.b32.xlu0 %v6869_v52, %s6377_s26 }
0x18c6   :  { %2676 = vrot.lane.b32.xlu0 %v6896_v9, %s6378_s5 }
0x1935   :  { %v3283_v5 = vpop.xlane.xlu0 %3282 }
0x1936   :  { %v3284_v48 = vsub.f32 %v3278_v58, %v3283_v5  ;;  %v6078_v5 = vpack.c.bf16 %v6338_v28, %v6337_v47 }
0x1938   :  { %v3285_v49 = vmul.f32 1.442695, %v3284_v48 }
0x1939   :  { %v6220_v50 = vpop.permute.xlu0 %6219 }
0x193a   :  { %6291 = vpow2.f32 %v3285_v49  ;;  %v6222_v1 = vunpack.i.h.bf16 %v6220_v50  ;;  %v6221_v11 = vunpack.i.l.bf16 %v6220_v50 }
0x193c   :  { %v6064_v0 = vpack.c.bf16 %v6222_v1, %v6221_v11 }
0x193d   :  { %v2673_v9 = vpop.permute.xlu0 %2672 }
0x193e   :  { %6065 = vmatpush3.bf16.msra.mxu0 %v6064_v0 }
0x193f   :  { %6067 = vmatprep.subr.bf16.mxu0 %v6066_v2 }
0x1941   :  { %v2677_v63 = vpop.permute.xlu0 %2676 }
0x1944   :  { %v6292_v51 = vpop.eup %6291 }
0x1945   :  { %v3287_v56 = vsel %vm1085_vm4, %v6292_v51, 0.0 }
0x1946   :  { %3288 = vadd.xlane.f32.xlu1 %v3287_v56 }
0x1957   :  { %2668 = vrot.lane.b32.xlu1 %v6848_v17, %s6376_s21 }
0x195b   :  { %3372 = vrot.lane.b32.xlu1 %v3023_v26, %s6376_s21 }
0x195f   :  { %3376 = vrot.lane.b32.xlu1 %v3195_v40, %s6377_s26 }
0x19d3   :  { %v3289_v19 = vpop.xlane.xlu1 %3288 }
0x19d4   :  { %6293 = vrcp.f32 %v3289_v19  ;;  %v5361_v19 = vld [vmem:[%s7294_s3 + $0x5] ss:$0 sm:$0xff] }
0x19d7   :  { %v2669_v52 = vpop.permute.xlu1 %2668 }
0x19d8   :  { %v2679_v59 = vsel %vm415_vm2, %v6827_v54, %v2669_v52  ;;  %v1975_v54 = vld [vmem:[%s7293_s2 + $0x90] sm:$0xff] }
0x19d9   :  { %v2680_v12 = vsel %vm1085_vm4, %v2679_v59, %v2673_v9  ;;  %v6070_v20 = vpack.c.bf16 %v1976_v4, %v1975_v54 }
0x19da   :  { %v2681_v17 = vsel %vm1087_vm5, %v2680_v12, %v2677_v63 }
0x19db   :  { %v3373_v6 = vpop.permute.xlu1 %3372 }
0x19dc   :  { %v3383_v27 = vsel %vm415_vm2, %v6919_v46, %v3373_v6 }
0x19de   :  { %v6294_v60 = vpop.eup %6293 }
0x19df   :  { %v3291_v62 = vmul.f32 %v6294_v60, %v6292_v51  ;;  %v3377_v26 = vpop.permute.xlu1 %3376  ;;  %v5360_v51 = vld [vmem:[%s7294_s3 + $0x4] ss:$0 sm:$0xff] }
0x19e0   :  { %v3384_v8 = vsel %vm1085_vm4, %v3383_v27, %v3377_v26 }
0x19e1   :  { %5825 = vmatmul.mubr.msk.f32.vlgmr.msra.gmra.mrb[32].mxu0 %vm1085_vm4, %v3291_v62 }
0x19e2   :  { %5835 = vmatprep.mubr.msk.f32.mxu0 %vm66_vm0, %v2681_v17  ;;  %6069 = vmatpush3.bf16.msra.mxu0 %v6066_v2 }
0x19e3   :  { %6071 = vmatprep.subr.bf16.mxu0 %v6070_v20 }
0x19e6   :  { %6073 = vmatpush3.bf16.msra.mxu0 %v6070_v20 }
0x19e7   :  { %5849 = vmatprep.subr.mxu0 %v6364_v55 }
0x1ab4   :  { %v3367_v13 = vpop.f32.mrb[32].mxu0 }
0x1ab5   :  { %3380 = vrot.lane.b32.xlu0 %v3367_v13, %s6378_s5  ;;  %v5826_v21 = vpop.f32.mrb[33].mxu0 }
0x1b27   :  { %v3381_v10 = vpop.permute.xlu0 %3380 }
0x1b28   :  { %v3385_v22 = vsel %vm1087_vm5, %v3384_v8, %v3381_v10 }
0x1b29   :  { %5836 = vmatmul.mubr.msk.f32.vlgmr.msra.gmra.mrb[34].mxu0 %vm66_vm0, %v3385_v22 }
0x1b2a   :  { %5851 = vmatprep.mubr.msk.f32.mxu0 %vm6365_vm1, %v6364_v55 }
0x1bfc   :  { %v5837_v18 = vpop.f32.mrb[34].mxu0 }
0x1bfd   :  { %v3468_v14 = vadd.f32 %v5837_v18, %v5357_v24  ;;  %v3462_v57 = vpop.f32.mrb[35].mxu0 }
0x1bfe   :  { %v3463_v23 = vadd.f32 %v5357_v24, %v3462_v57 }
0x1bff   :  { %v7000_v46 = vadd.f32 %v3468_v14, %v6734_v42 }
0x1c00   :  { %v7003_v15 = vadd.f32 %v3463_v23, %v6737_v44 }
0x1c01   :  { %v3476_v16 = vsel %vm66_vm0, %v7000_v46, 0.0 }
0x1c02   :  { %3477 = vadd.xlane.f32.xlu0 %v3476_v16  ;;  %v3473_v25 = vsel %vm66_vm0, %v7003_v15, 0.0 }
0x1c03   :  { %3474 = vadd.xlane.f32.xlu1 %v3473_v25 }
0x1c14   :  { %190 = vrot.lane.b32.xlu1 %v7012_v29, %s6363_s13 }
0x1c8f   :  { %v3478_v42 = vpop.xlane.xlu0 %3477 }
0x1c90   :  { %v3480_v30 = vmul.f32 0.03125, %v3478_v42  ;;  %v3475_v44 = vpop.xlane.xlu1 %3474 }
0x1c91   :  { %v3479_v31 = vmul.f32 0.03125, %v3475_v44 }
0x1c92   :  { %v3482_v32 = vsub.f32 %v7000_v46, %v3480_v30 }
0x1c93   :  { %v3481_v7 = vsub.f32 %v7003_v15, %v3479_v31 }
0x1c94   :  { %v191_v33 = vpop.permute.xlu1 %190  ;;  %v3484_v39 = vmul.f32 %v3482_v32, %v3482_v32 }
0x1c95   :  { %v7019_v34 = vadd.f32 %v6599_v37, %v191_v33  ;;  %v3483_v35 = vmul.f32 %v3481_v7, %v3481_v7  ;;  %v6335_v37 = vld [vmem:[%s7293_s2 + $0x40] sm:$0xff]  ;;  %v7039_v58 = vadd.f32 %v6597_v36, %v191_v33 }
0x1c96   :  { %v3488_v40 = vsel %vm66_vm0, %v3484_v39, 0.0  ;;  %v6074_v45 = vpack.c.bf16 %v6336_v41, %v6335_v37 }
0x1c97   :  { %3930 = vrot.lane.b32.xlu1 %v7019_v34, %s6370_s14  ;;  %5850 = vmatpush3.xpose.msk.msra.mxu0 %vm415_vm2, %v7019_v34  ;;  %v3485_v38 = vsel %vm66_vm0, %v3483_v35, 0.0 }
0x1c98   :  { %3486 = vadd.xlane.f32.xlu0 %v3485_v38  ;;  %5859 = vmatprep.subr.mxu0 %v6364_v55 }
0x1c99   :  { %6075 = vmatprep.subr.bf16.mxu1 %v6074_v45 }
0x1c9a   :  { %6077 = vmatpush3.bf16.msra.mxu1 %v6074_v45 }
0x1c9b   :  { %6079 = vmatprep.subr.bf16.mxu1 %v6078_v5 }
0x1c9c   :  { %3489 = vadd.xlane.f32.xlu0 %v3488_v40 }
0x1c9e   :  { %6081 = vmatpush3.bf16.msra.mxu1 %v6078_v5 }
0x1c9f   :  { %5854 = vmatprep.subr.mxu1 %v6364_v55 }
0x1cb2   :  { %3765 = vrot.lane.b32.xlu0 %v7019_v34, %s6368_s11 }
0x1cb6   :  { %4095 = vrot.lane.b32.xlu0 %v7019_v34, %s6371_s15 }
0x1cba   :  { %4441 = vrot.lane.b32.xlu0 %v7039_v58, %s6368_s11 }
0x1cbe   :  { %4606 = vrot.lane.b32.xlu0 %v7039_v58, %s6370_s14 }
0x1cc2   :  { %4771 = vrot.lane.b32.xlu0 %v7039_v58, %s6371_s15 }
0x1cc6   :  { %3597 = vrot.lane.b32.xlu0 %v6605_v43, %s6371_s15 }
0x1d09   :  { %v3931_v54 = vpop.permute.xlu1 %3930 }
0x1d25   :  { %v3487_v36 = vpop.xlane.xlu0 %3486 }
0x1d26   :  { %v3491_v48 = vmul.f32 0.03125, %v3487_v36 }
0x1d28   :  { %v3493_v49 = vadd.f32 1e-06, %v3491_v48 }
0x1d29   :  { %v3490_v50 = vpop.xlane.xlu0 %3489 }
0x1d2a   :  { %6295 = vrsqrt.f32 %v3493_v49  ;;  %v3492_v1 = vmul.f32 0.03125, %v3490_v50 }
0x1d2c   :  { %v3494_v11 = vadd.f32 1e-06, %v3492_v1 }
0x1d2d   :  { %v3766_v53 = vpop.permute.xlu0 %3765 }
0x1d2e   :  { %6297 = vrsqrt.f32 %v3494_v11 }
0x1d31   :  { %v4096_v4 = vpop.permute.xlu0 %4095 }
0x1d34   :  { %v6296_v0 = vpop.eup %6295 }
0x1d35   :  { %v3497_v56 = vmul.f32 %v6296_v0, %v3481_v7  ;;  %v4442_v13 = vpop.permute.xlu0 %4441 }
0x1d37   :  { %v3503_v52 = vmul.f32 %v5360_v51, %v3497_v56 }
0x1d38   :  { %v6298_v43 = vpop.eup %6297 }
0x1d39   :  { %v3498_v9 = vmul.f32 %v6298_v43, %v3482_v32  ;;  %v3509_v59 = vadd.f32 %v5361_v19, %v3503_v52  ;;  %v4607_v6 = vpop.permute.xlu0 %4606 }
0x1d3b   :  { %v3504_v60 = vmul.f32 %v5360_v51, %v3498_v9  ;;  %5846 = vmatprep.mubr.msk.f32.mxu1 %vm66_vm0, %v3509_v59 }
0x1d3d   :  { %v3510_v12 = vadd.f32 %v5361_v19, %v3504_v60  ;;  %v4772_v27 = vpop.permute.xlu0 %4771 }
0x1d3f   :  { %5847 = vmatmul.mubr.msk.f32.vlgmr.msra.gmra.mrb[42].mxu1 %vm66_vm0, %v3510_v12 }
0x1d40   :  { %5856 = vmatprep.mubr.msk.f32.mxu1 %vm6365_vm1, %v6364_v55 }
0x1d41   :  { %v3598_v10 = vpop.permute.xlu0 %3597 }
0x1e12   :  { %v5848_v62 = vpop.f32.mrb[42].mxu1 }
0x1e13   :  { %v3583_v63 = vpop.f32.mrb[43].mxu1  ;;  %v3589_v3 = vadd.f32 %v5848_v62, %v7012_v29 }
0x1e14   :  { %v3584_v17 = vadd.f32 %v7012_v29, %v3583_v63 }
0x1e16   :  { %3763 = vrot.lane.b32.xlu1 %v3584_v17, %s6368_s11  ;;  %5852 = vmatmul.mubr.msk.f32.vlgmr.msra.gmra.mrb[36].mxu0 %vm415_vm2, %v3584_v17 }
0x1e17   :  { %5860 = vmatpush3.xpose.msk.msra.mxu0 %vm415_vm2, %v3766_v53  ;;  %5861 = vmatprep.mubr.msk.f32.mxu0 %vm6365_vm1, %v6364_v55 }
0x1e18   :  { %5869 = vmatprep.subr.mxu0 %v6364_v55 }
0x1e1a   :  { %3928 = vrot.lane.b32.xlu1 %v3584_v17, %s6370_s14 }
0x1e1e   :  { %4093 = vrot.lane.b32.xlu1 %v3584_v17, %s6371_s15 }
0x1e22   :  { %4439 = vrot.lane.b32.xlu1 %v3589_v3, %s6368_s11 }
0x1e26   :  { %4604 = vrot.lane.b32.xlu1 %v3589_v3, %s6370_s14 }
0x1e2a   :  { %4769 = vrot.lane.b32.xlu1 %v3589_v3, %s6371_s15 }
0x1e2e   :  { %4273 = vrot.lane.b32.xlu1 %v6617_v61, %s6371_s15 }
0x1e88   :  { %v3764_v2 = vpop.permute.xlu1 %3763 }
0x1e89   :  { %5862 = vmatmul.mubr.msk.f32.vlgmr.msra.gmra.mrb[38].mxu0 %vm415_vm2, %v3764_v2 }
0x1e8a   :  { %5870 = vmatpush3.xpose.msk.msra.mxu0 %vm415_vm2, %v3931_v54  ;;  %5871 = vmatprep.mubr.msk.f32.mxu0 %vm6365_vm1, %v6364_v55 }
0x1e8b   :  { %5879 = vmatprep.subr.mxu0 %v6364_v55 }
0x1e8c   :  { %v3929_v20 = vpop.permute.xlu1 %3928 }
0x1e8d   :  { %5872 = vmatmul.mubr.msk.f32.vlgmr.msra.gmra.mrb[40].mxu0 %vm415_vm2, %v3929_v20 }
0x1e8e   :  { %5880 = vmatpush3.xpose.msk.msra.mxu0 %vm415_vm2, %v4096_v4  ;;  %5881 = vmatprep.mubr.msk.f32.mxu0 %vm6365_vm1, %v6364_v55 }
0x1e8f   :  { %5889 = vmatprep.subr.mxu0 %v6364_v55 }
0x1e90   :  { %v4094_v61 = vpop.permute.xlu1 %4093 }
0x1e91   :  { %5882 = vmatmul.mubr.msk.f32.vlgmr.msra.gmra.mrb[42].mxu0 %vm415_vm2, %v4094_v61 }
0x1e92   :  { %5890 = vmatpush3.xpose.msk.msra.mxu0 %vm415_vm2, %v7039_v58  ;;  %5891 = vmatprep.mubr.msk.f32.mxu0 %vm6365_vm1, %v6364_v55 }
0x1e93   :  { %5899 = vmatprep.subr.mxu0 %v6364_v55 }
0x1e94   :  { %v4440_v21 = vpop.permute.xlu1 %4439 }
0x1e95   :  { %5892 = vmatmul.mubr.msk.f32.vlgmr.msra.gmra.mrb[44].mxu0 %vm415_vm2, %v3589_v3 }
0x1e96   :  { %5900 = vmatpush3.xpose.msk.msra.mxu0 %vm415_vm2, %v4442_v13  ;;  %5901 = vmatprep.mubr.msk.f32.mxu0 %vm6365_vm1, %v6364_v55 }
0x1e97   :  { %5909 = vmatprep.subr.mxu0 %v6364_v55 }
0x1e98   :  { %v4605_v26 = vpop.permute.xlu1 %4604 }
0x1e99   :  { %5902 = vmatmul.mubr.msk.f32.vlgmr.msra.gmra.mrb[46].mxu0 %vm415_vm2, %v4440_v21 }
0x1e9a   :  { %5910 = vmatpush3.xpose.msk.msra.mxu0 %vm415_vm2, %v4607_v6  ;;  %5911 = vmatprep.mubr.msk.f32.mxu0 %vm6365_vm1, %v6364_v55 }
0x1e9b   :  { %5919 = vmatprep.subr.mxu0 %v6364_v55 }
0x1e9c   :  { %v4770_v8 = vpop.permute.xlu1 %4769 }
0x1e9d   :  { %5912 = vmatmul.mubr.msk.f32.vlgmr.msra.gmra.mrb[48].mxu0 %vm415_vm2, %v4605_v26 }
0x1e9e   :  { %5920 = vmatpush3.xpose.msk.msra.mxu0 %vm415_vm2, %v4772_v27  ;;  %5921 = vmatprep.mubr.msk.f32.mxu0 %vm6365_vm1, %v6364_v55 }
0x1ea0   :  { %v4274_v33 = vpop.permute.xlu1 %4273 }
0x1ea1   :  { %5922 = vmatmul.mubr.msk.f32.vlgmr.msra.gmra.mrb[50].mxu0 %vm415_vm2, %v4770_v8 }
0x1ee9   :  { %v3672_v22 = vpop.f32.mrb[36].mxu0 }
0x1eea   :  { %v3673_v24 = vadd.f32 %v3672_v22, %v3598_v10  ;;  %v5853_v18 = vpop.f32.mrb[37].mxu0 }
0x1eec   :  { %v3676_v14 = vsel %vm415_vm2, %v3673_v24, -inf }
0x1eed   :  { %3677 = vmax.xlane.f32.xlu0 %v3676_v14 }
0x1f5c   :  { %v3837_v57 = vpop.f32.mrb[38].mxu0 }
0x1f5d   :  { %v3838_v23 = vadd.f32 %v3837_v57, %v3598_v10  ;;  %v5863_v16 = vpop.f32.mrb[39].mxu0 }
0x1f5f   :  { %v3841_v25 = vsel %vm415_vm2, %v3838_v23, -inf }
0x1f60   :  { %3842 = vmax.xlane.f32.xlu1 %v3841_v25  ;;  %v4002_v29 = vpop.f32.mrb[40].mxu0 }
0x1f61   :  { %v4003_v42 = vadd.f32 %v4002_v29, %v3598_v10  ;;  %v5873_v30 = vpop.f32.mrb[41].mxu0 }
0x1f63   :  { %v4006_v44 = vsel %vm415_vm2, %v4003_v42, -inf }
0x1f64   :  { %4007 = vmax.xlane.f32.xlu0 %v4006_v44  ;;  %v4167_v31 = vpop.f32.mrb[42].mxu0 }
0x1f65   :  { %v4168_v32 = vadd.f32 %v4167_v31, %v3598_v10  ;;  %v5883_v7 = vpop.f32.mrb[43].mxu0 }
0x1f67   :  { %v4171_v35 = vsel %vm415_vm2, %v4168_v32, -inf }
0x1f68   :  { %4172 = vmax.xlane.f32.xlu0 %v4171_v35  ;;  %v4348_v38 = vpop.f32.mrb[44].mxu0 }
0x1f69   :  { %v4349_v39 = vadd.f32 %v4348_v38, %v4274_v33  ;;  %v5893_v40 = vpop.f32.mrb[45].mxu0 }
0x1f6b   :  { %v4352_v37 = vsel %vm415_vm2, %v4349_v39, -inf }
0x1f6c   :  { %4353 = vmax.xlane.f32.xlu0 %v4352_v37  ;;  %v4513_v41 = vpop.f32.mrb[46].mxu0 }
0x1f6d   :  { %v7117_v45 = vadd.f32 %v4513_v41, %v4274_v33  ;;  %v5903_v47 = vpop.f32.mrb[47].mxu0 }
0x1f6f   :  { %v4517_v28 = vsel %vm415_vm2, %v7117_v45, -inf }
0x1f70   :  { %4518 = vmax.xlane.f32.xlu1 %v4517_v28  ;;  %v4678_v5 = vpop.f32.mrb[48].mxu0 }
0x1f71   :  { %v4679_v36 = vadd.f32 %v4678_v5, %v4274_v33  ;;  %v5913_v48 = vpop.f32.mrb[49].mxu0 }
0x1f73   :  { %v4682_v49 = vsel %vm415_vm2, %v4679_v36, -inf }
0x1f74   :  { %4683 = vmax.xlane.f32.xlu0 %v4682_v49  ;;  %v4843_v50 = vpop.f32.mrb[50].mxu0 }
0x1f75   :  { %v5923_v1 = vpop.f32.mrb[51].mxu0  ;;  %v4844_v52 = vadd.f32 %v4843_v50, %v4274_v33 }
0x1f77   :  { %v4847_v43 = vsel %vm415_vm2, %v4844_v52, -inf }
0x1f7a   :  { %v3678_v11 = vpop.xlane.xlu0 %3677 }
0x1f7b   :  { %v3679_v0 = vsub.f32 %v3673_v24, %v3678_v11 }
0x1f7d   :  { %v3680_v51 = vmul.f32 1.442695, %v3679_v0 }
0x1f7f   :  { %6299 = vpow2.f32 %v3680_v51 }
0x1f81   :  { %3687 = vrot.lane.b32.xlu1 %v7019_v34, %s6363_s13 }
0x1f89   :  { %v6300_v56 = vpop.eup %6299 }
0x1f8a   :  { %v3682_v19 = vsel %vm415_vm2, %v6300_v56, 0.0 }
0x1f8b   :  { %3683 = vadd.xlane.f32.xlu0 %v3682_v19 }
0x1fa1   :  { %3852 = vrot.lane.b32.xlu0 %v7019_v34, %s6366_s10 }
0x1fa5   :  { %4848 = vmax.xlane.f32.xlu1 %v4847_v43 }
0x1fb6   :  { %4017 = vrot.lane.b32.xlu1 %v7019_v34, %s6367_s0 }
0x1fba   :  { %4182 = vrot.lane.b32.xlu1 %v7019_v34, %s6369_s12 }
0x1fbe   :  { %4363 = vrot.lane.b32.xlu1 %v7039_v58, %s6363_s13 }
0x1fed   :  { %v3843_v9 = vpop.xlane.xlu1 %3842 }
0x1fee   :  { %v3844_v59 = vsub.f32 %v3838_v23, %v3843_v9 }
0x1ff0   :  { %v3845_v60 = vmul.f32 1.442695, %v3844_v59 }
0x1ff1   :  { %v4008_v12 = vpop.xlane.xlu0 %4007 }
0x1ff2   :  { %6301 = vpow2.f32 %v3845_v60  ;;  %v4009_v62 = vsub.f32 %v4003_v42, %v4008_v12 }
0x1ff4   :  { %v4010_v63 = vmul.f32 1.442695, %v4009_v62 }
0x1ff5   :  { %v4173_v17 = vpop.xlane.xlu0 %4172 }
0x1ff6   :  { %6303 = vpow2.f32 %v4010_v63  ;;  %v4174_v53 = vsub.f32 %v4168_v32, %v4173_v17 }
0x1ff8   :  { %v4175_v3 = vmul.f32 1.442695, %v4174_v53 }
0x1ff9   :  { %v4354_v54 = vpop.xlane.xlu0 %4353 }
0x1ffa   :  { %6305 = vpow2.f32 %v4175_v3  ;;  %v4355_v2 = vsub.f32 %v4349_v39, %v4354_v54 }
0x1ffc   :  { %v6302_v4 = vpop.eup %6301  ;;  %v4356_v20 = vmul.f32 1.442695, %v4355_v2 }
0x1ffd   :  { %v4519_v34 = vpop.xlane.xlu1 %4518  ;;  %v3847_v61 = vsel %vm415_vm2, %v6302_v4, 0.0 }
0x1ffe   :  { %6307 = vpow2.f32 %v4356_v20  ;;  %3848 = vadd.xlane.f32.xlu1 %v3847_v61  ;;  %v4520_v29 = vsub.f32 %v7117_v45, %v4519_v34 }
0x2000   :  { %v6304_v13 = vpop.eup %6303  ;;  %v4521_v30 = vmul.f32 1.442695, %v4520_v29 }
0x2001   :  { %v3688_v21 = vpop.permute.xlu1 %3687  ;;  %v4684_v6 = vpop.xlane.xlu0 %4683  ;;  %v4012_v26 = vsel %vm415_vm2, %v6304_v13, 0.0 }
0x2002   :  { %v4685_v27 = vsub.f32 %v4679_v36, %v4684_v6  ;;  %5855 = vmatpush3.msra.mxu1 %v3688_v21  ;;  %4013 = vadd.xlane.f32.xlu0 %v4012_v26  ;;  %v3593_v21 = vld [vmem:[%s7293_s2 + $0xa8] sm:$0xff]  ;;  %v3594_v26 = vld [vmem:[%s7293_s2 + $0xb0] sm:$0xff] }
0x2003   :  { %5864 = vmatprep.subr.mxu1 %v6364_v55 }
0x2004   :  { %v6306_v8 = vpop.eup %6305  ;;  %v4686_v10 = vmul.f32 1.442695, %v4685_v27  ;;  %v3595_v27 = vld [vmem:[%s7293_s2 + $0xb8] sm:$0xff] }
0x2005   :  { %v4177_v22 = vsel %vm415_vm2, %v6306_v8, 0.0 }
0x2006   :  { %6309 = vpow2.f32 %v4686_v10  ;;  %4178 = vadd.xlane.f32.xlu1 %v4177_v22 }
0x2008   :  { %v6308_v24 = vpop.eup %6307 }
0x2009   :  { %v4358_v18 = vsel %vm415_vm2, %v6308_v24, 0.0 }
0x200a   :  { %4359 = vadd.xlane.f32.xlu0 %v4358_v18 }
0x2010   :  { %v7139_v14 = vpop.eup %6309 }
0x2011   :  { %v4688_v57 = vsel %vm415_vm2, %v7139_v14, 0.0 }
0x2012   :  { %4689 = vadd.xlane.f32.xlu0 %v4688_v57 }
0x2017   :  { %4528 = vrot.lane.b32.xlu1 %v7039_v58, %s6366_s10 }
0x2018   :  { %v3684_v23 = vpop.xlane.xlu0 %3683 }
0x2019   :  { %6311 = vrcp.f32 %v3684_v23 }
0x201a   :  { %6313 = vpow2.f32 %v4521_v30 }
0x201c   :  { %v3853_v42 = vpop.permute.xlu0 %3852 }
0x2023   :  { %v6312_v16 = vpop.eup %6311 }
0x2024   :  { %v3686_v25 = vmul.f32 %v6312_v16, %v6300_v56  ;;  %v6314_v7 = vpop.eup %6313 }
0x2025   :  { %v4523_v33 = vsel %vm415_vm2, %v6314_v7, 0.0 }
0x2026   :  { %5857 = vmatmul.mubr.msk.f32.vlgmr.msra.gmra.mrb[44].mxu1 %vm415_vm2, %v3686_v25 }
0x2027   :  { %5865 = vmatpush3.msra.mxu1 %v3853_v42  ;;  %5866 = vmatprep.mubr.msk.f32.mxu1 %vm6365_vm1, %v6364_v55 }
0x2028   :  { %5874 = vmatprep.subr.mxu1 %v6364_v55 }
0x2032   :  { %v4849_v44 = vpop.xlane.xlu1 %4848 }
0x2033   :  { %v4850_v31 = vsub.f32 %v4844_v52, %v4849_v44 }
0x2035   :  { %v4851_v32 = vmul.f32 1.442695, %v4850_v31 }
0x2036   :  { %v4018_v39 = vpop.permute.xlu1 %4017 }
0x2037   :  { %6315 = vpow2.f32 %v4851_v32 }
0x203a   :  { %v4183_v40 = vpop.permute.xlu1 %4182 }
0x203b   :  { %4524 = vadd.xlane.f32.xlu1 %v4523_v33 }
0x203e   :  { %v4364_v37 = vpop.permute.xlu1 %4363 }
0x2041   :  { %v6316_v35 = vpop.eup %6315 }
0x2042   :  { %v4853_v38 = vsel %vm415_vm2, %v6316_v35, 0.0 }
0x2043   :  { %4854 = vadd.xlane.f32.xlu0 %v4853_v38  ;;  %v5388_v38 = vld [vmem:[%s7294_s3 + $0xd] ss:$0 sm:$0xff] }
0x204c   :  { %4858 = vrot.lane.b32.xlu1 %v7039_v58, %s6369_s12 }
0x2059   :  { %4693 = vrot.lane.b32.xlu0 %v7039_v58, %s6367_s0 }
0x208b   :  { %v3849_v41 = vpop.xlane.xlu1 %3848 }
0x208c   :  { %6317 = vrcp.f32 %v3849_v41 }
0x208f   :  { %v4014_v45 = vpop.xlane.xlu0 %4013 }
0x2090   :  { %6319 = vrcp.f32 %v4014_v45 }
0x2093   :  { %v4179_v47 = vpop.xlane.xlu1 %4178 }
0x2094   :  { %6321 = vrcp.f32 %v4179_v47 }
0x2096   :  { %v6318_v28 = vpop.eup %6317 }
0x2097   :  { %v3851_v5 = vmul.f32 %v6318_v28, %v6302_v4  ;;  %v4360_v36 = vpop.xlane.xlu0 %4359  ;;  %v4529_v0 = vpop.permute.xlu1 %4528 }
0x2098   :  { %6323 = vrcp.f32 %v4360_v36 }
0x2099   :  { %5867 = vmatmul.mubr.msk.f32.vlgmr.msra.gmra.mrb[46].mxu1 %vm415_vm2, %v3851_v5 }
0x209a   :  { %v6320_v48 = vpop.eup %6319  ;;  %5875 = vmatpush3.msra.mxu1 %v4018_v39  ;;  %5876 = vmatprep.mubr.msk.f32.mxu1 %vm6365_vm1, %v6364_v55 }
0x209b   :  { %v4016_v58 = vmul.f32 %v6320_v48, %v6304_v13  ;;  %5884 = vmatprep.subr.mxu1 %v6364_v55 }
0x209d   :  { %5877 = vmatmul.mubr.msk.f32.vlgmr.msra.gmra.mrb[48].mxu1 %vm415_vm2, %v4016_v58 }
0x209e   :  { %v6322_v49 = vpop.eup %6321  ;;  %5885 = vmatpush3.msra.mxu1 %v4183_v40  ;;  %5886 = vmatprep.mubr.msk.f32.mxu1 %vm6365_vm1, %v6364_v55 }
0x209f   :  { %v4181_v50 = vmul.f32 %v6322_v49, %v6306_v8  ;;  %5894 = vmatprep.subr.mxu1 %v6364_v55  ;;  %v4690_v51 = vpop.xlane.xlu0 %4689  ;;  %v6086_v8 = vpack.c.bf16 %v3595_v27, %v3594_v26  ;;  %v5392_v26 = vld [vmem:[%s7294_s3 + $0x7] ss:$0 sm:$0xff] }
0x20a1   :  { %5887 = vmatmul.mubr.msk.f32.vlgmr.msra.gmra.mrb[50].mxu1 %vm415_vm2, %v4181_v50 }
0x20a2   :  { %v6324_v1 = vpop.eup %6323  ;;  %5895 = vmatpush3.msra.mxu1 %v4364_v37  ;;  %5896 = vmatprep.mubr.msk.f32.mxu1 %vm6365_vm1, %v6364_v55 }
0x20a3   :  { %v4362_v11 = vmul.f32 %v6324_v1, %v6308_v24  ;;  %5904 = vmatprep.subr.mxu1 %v6364_v55 }
0x20a5   :  { %5897 = vmatmul.mubr.msk.f32.vlgmr.msra.gmra.mrb[52].mxu1 %vm415_vm2, %v4362_v11 }
0x20a6   :  { %5905 = vmatpush3.msra.mxu1 %v4529_v0  ;;  %5906 = vmatprep.mubr.msk.f32.mxu1 %vm6365_vm1, %v6364_v55 }
0x20a7   :  { %5914 = vmatprep.subr.mxu1 %v6364_v55 }
0x20c8   :  { %v4525_v56 = vpop.xlane.xlu1 %4524 }
0x20c9   :  { %6325 = vrcp.f32 %v4525_v56  ;;  %v5075_v56 = vld [vmem:[%s7293_s2 + $0xc8] sm:$0xff] }
0x20ca   :  { %6327 = vrcp.f32 %v4690_v51  ;;  %v5074_v51 = vld [vmem:[%s7293_s2 + $0xc0] sm:$0xff] }
0x20cc   :  { %v4859_v12 = vpop.permute.xlu1 %4858 }
0x20d0   :  { %v4855_v19 = vpop.xlane.xlu0 %4854 }
0x20d1   :  { %6329 = vrcp.f32 %v4855_v19  ;;  %v6090_v19 = vpack.c.bf16 %v5075_v56, %v5074_v51 }
0x20d3   :  { %v6326_v52 = vpop.eup %6325 }
0x20d4   :  { %v4527_v43 = vmul.f32 %v6326_v52, %v6314_v7  ;;  %v4694_v9 = vpop.permute.xlu0 %4693  ;;  %v6328_v59 = vpop.eup %6327  ;;  %v5076_v52 = vld [vmem:[%s7293_s2 + $0xd0] sm:$0xff] }
0x20d5   :  { %v4692_v60 = vmul.f32 %v6328_v59, %v7139_v14  ;;  %v5166_v59 = vld [vmem:[%s7293_s2 + $0xe0] sm:$0xff] }
0x20d6   :  { %5907 = vmatmul.mubr.msk.f32.vlgmr.msra.gmra.mrb[54].mxu1 %vm415_vm2, %v4527_v43  ;;  %v5077_v43 = vld [vmem:[%s7293_s2 + $0xd8] sm:$0xff] }
0x20d7   :  { %5915 = vmatpush3.msra.mxu1 %v4694_v9  ;;  %5916 = vmatprep.mubr.msk.f32.mxu1 %vm6365_vm1, %v6364_v55  ;;  %v6094_v9 = vpack.c.bf16 %v5077_v43, %v5076_v52 }
0x20d8   :  { %5924 = vmatprep.subr.mxu1 %v6364_v55 }
0x20da   :  { %5917 = vmatmul.mubr.msk.f32.vlgmr.msra.gmra.mrb[56].mxu1 %vm415_vm2, %v4692_v60  ;;  %v5167_v60 = vld [vmem:[%s7293_s2 + $0xe8] sm:$0xff] }
0x20db   :  { %v6330_v62 = vpop.eup %6329  ;;  %5925 = vmatpush3.msra.mxu1 %v4859_v12  ;;  %5926 = vmatprep.mubr.msk.f32.mxu1 %vm6365_vm1, %v6364_v55  ;;  %v3592_v55 = vld [vmem:[%s7293_s2 + $0xa0] sm:$0xff]  ;;  %v5168_v12 = vld [vmem:[%s7293_s2 + $0xf0] sm:$0xff] }
0x20dc   :  { %v4857_v63 = vmul.f32 %v6330_v62, %v6316_v35  ;;  %v6082_v6 = vpack.c.bf16 %v3593_v21, %v3592_v55  ;;  %6091 = vmatprep.subr.bf16.mxu1 %v6090_v19  ;;  %v6098_v62 = vpack.c.bf16 %v5167_v60, %v5166_v59  ;;  %v5391_v21 = vld [vmem:[%s7294_s3 + $0x6] ss:$0 sm:$0xff] }
0x20de   :  { %5927 = vmatmul.mubr.msk.f32.vlgmr.msra.gmra.mrb[58].mxu1 %vm415_vm2, %v4857_v63  ;;  %6083 = vmatprep.subr.bf16.mxu0 %v6082_v6  ;;  %v5169_v63 = vld [vmem:[%s7293_s2 + $0xf8] sm:$0xff] }
0x20df   :  { %6085 = vmatpush3.bf16.msra.mxu0 %v6082_v6  ;;  %6093 = vmatpush3.bf16.msra.mxu1 %v6090_v19 }
0x20e0   :  { %6087 = vmatprep.subr.bf16.mxu0 %v6086_v8  ;;  %6095 = vmatprep.subr.bf16.mxu1 %v6094_v9 }
0x20e3   :  { %6089 = vmatpush3.bf16.msra.mxu0 %v6086_v8  ;;  %6097 = vmatpush3.bf16.msra.mxu1 %v6094_v9 }
0x20e4   :  { %6099 = vmatprep.subr.bf16.mxu0 %v6098_v62 }
0x20f9   :  { %v3759_v17 = vpop.f32.mrb[44].mxu1 }
0x20fa   :  { %v5858_v53 = vpop.f32.mrb[45].mxu1 }
0x20fb   :  { %v5170_v53 = vld [vmem:[%s7293_s2 + $0x100] sm:$0xff] }
0x216c   :  { %v3924_v3 = vpop.f32.mrb[46].mxu1 }
0x216d   :  { %4259 = vrot.lane.b32.xlu0 %v3924_v3, %s6376_s21  ;;  %v5868_v54 = vpop.f32.mrb[47].mxu1  ;;  %v5171_v3 = vld [vmem:[%s7293_s2 + $0x108] sm:$0xff] }
0x216e   :  { %v6106_v54 = vpack.c.bf16 %v5171_v3, %v5170_v53 }
0x2170   :  { %v4089_v2 = vpop.f32.mrb[48].mxu1 }
0x2171   :  { %4263 = vrot.lane.b32.xlu1 %v4089_v2, %s6377_s26  ;;  %v5878_v4 = vpop.f32.mrb[49].mxu1 }
0x2174   :  { %v4254_v20 = vpop.f32.mrb[50].mxu1 }
0x2175   :  { %4267 = vrot.lane.b32.xlu1 %v4254_v20, %s6378_s5  ;;  %v5888_v34 = vpop.f32.mrb[51].mxu1 }
0x2178   :  { %v4435_v61 = vpop.f32.mrb[52].mxu1 }
0x2179   :  { %v5898_v13 = vpop.f32.mrb[53].mxu1 }
0x21a9   :  { %v4600_v10 = vpop.f32.mrb[54].mxu1 }
0x21aa   :  { %4935 = vrot.lane.b32.xlu0 %v4600_v10, %s6376_s21  ;;  %v5908_v22 = vpop.f32.mrb[55].mxu1 }
0x21ad   :  { %v4765_v24 = vpop.f32.mrb[56].mxu1 }
0x21ae   :  { %4939 = vrot.lane.b32.xlu0 %v4765_v24, %s6377_s26  ;;  %v5918_v18 = vpop.f32.mrb[57].mxu1 }
0x21b1   :  { %v4930_v14 = vpop.f32.mrb[58].mxu1 }
0x21b2   :  { %4943 = vrot.lane.b32.xlu1 %v4930_v14, %s6378_s5  ;;  %v5928_v57 = vpop.f32.mrb[59].mxu1  ;;  %v5172_v14 = vld [vmem:[%s7293_s2 + $0x110] sm:$0xff] }
0x21b3   :  { %v5173_v57 = vld [vmem:[%s7293_s2 + $0x118] sm:$0xff]  ;;  %s6380_s2 = smov [#allocation2]  }
0x21b4   :  { %s5270_s8 = sshll.u32 %s6380_s2, 4  ;;  %s5271_s8 = int_to_ptr.vmem [resolvable:$true] %s5270_s8 }
0x21b5   :  { %s6339_s9 = scalar_lea.vmem %s5271_s8, 256  ;;  %p6344_p1 = scmp.lt.s32.totalorder %s5271_s8, %s5271_s8 }
0x21b6   :  { %p6340_p0 = scmp.ne.s32.totalorder %s5271_s8, %s6339_s9  ;;  %p6345_p2 = scmp.lt.s32.totalorder %s6339_s9, %s6339_s9 }
0x21b8   :  { %p6346_p3 = por %p6345_p2, %p6344_p1 }
0x21ba   :  { %p6347_p4 = pnand %p6346_p3, %p6340_p0 }
0x21df   :  { %v4260_v23 = vpop.permute.xlu0 %4259 }
0x21e0   :  { %v4270_v25 = vsel %vm415_vm2, %v3759_v17, %v4260_v23  ;;  %v6102_v17 = vpack.c.bf16 %v5169_v63, %v5168_v12  ;;  %v6110_v23 = vpack.c.bf16 %v5173_v57, %v5172_v14 }
0x21e3   :  { %v4264_v16 = vpop.permute.xlu1 %4263 }
0x21e4   :  { %v4271_v29 = vsel %vm1085_vm4, %v4270_v25, %v4264_v16  ;;  %v5393_v16 = vld [vmem:[%s7294_s3 + $0xe] ss:$0 sm:$0xff] }
0x21e7   :  { %v4268_v42 = vpop.permute.xlu1 %4267 }
0x21e8   :  { %v4272_v30 = vsel %vm1087_vm5, %v4271_v29, %v4268_v42 }
0x21e9   :  { %5937 = vmatprep.mubr.msk.f32.mxu0 %vm66_vm0, %v4272_v30 }
0x221c   :  { %v4936_v44 = vpop.permute.xlu0 %4935 }
0x221d   :  { %v4946_v32 = vsel %vm415_vm2, %v4435_v61, %v4936_v44 }
0x2220   :  { %v4940_v31 = vpop.permute.xlu0 %4939 }
0x2221   :  { %v4947_v7 = vsel %vm1085_vm4, %v4946_v32, %v4940_v31  ;;  %v5396_v32 = vld [vmem:[%s7294_s3 + $0xf] ss:$0 sm:$0xff] }
0x2224   :  { %v4944_v33 = vpop.permute.xlu1 %4943 }
0x2225   :  { %v4948_v35 = vsel %vm1087_vm5, %v4947_v7, %v4944_v33 }
0x2226   :  { %5938 = vmatmul.mubr.msk.f32.vlgmr.msra.gmra.mrb[52].mxu0 %vm66_vm0, %v4948_v35 }
0x2227   :  { %6101 = vmatpush3.bf16.msra.mxu0 %v6098_v62 }
0x2228   :  { %6103 = vmatprep.subr.bf16.mxu0 %v6102_v17 }
0x222b   :  { %6105 = vmatpush3.bf16.msra.mxu0 %v6102_v17 }
0x222c   :  { %6107 = vmatprep.subr.bf16.mxu0 %v6106_v54 }
0x222f   :  { %6109 = vmatpush3.bf16.msra.mxu0 %v6106_v54 }
0x2230   :  { %6111 = vmatprep.subr.bf16.mxu0 %v6110_v23 }
0x2233   :  { %6113 = vmatpush3.bf16.msra.mxu0 %v6110_v23 }
0x22f9   :  { %v5939_v39 = vpop.f32.mrb[52].mxu0 }
0x22fa   :  { %v5031_v40 = vadd.f32 %v5939_v39, %v5388_v38  ;;  %v5025_v37 = vpop.f32.mrb[53].mxu0 }
0x22fb   :  { %v5026_v41 = vadd.f32 %v5388_v38, %v5025_v37 }
0x22fc   :  { %v7211_v45 = vadd.f32 %v5031_v40, %v7000_v46 }
0x22fd   :  { %v7214_v47 = vadd.f32 %v5026_v41, %v7003_v15 }
0x22fe   :  { %v5039_v28 = vsel %vm66_vm0, %v7211_v45, 0.0 }
0x22ff   :  { %5040 = vadd.xlane.f32.xlu1 %v5039_v28  ;;  %v5036_v5 = vsel %vm66_vm0, %v7214_v47, 0.0 }
0x2300   :  { %5037 = vadd.xlane.f32.xlu0 %v5036_v5 }
0x238c   :  { %v5041_v36 = vpop.xlane.xlu1 %5040 }
0x238d   :  { %v5043_v48 = vmul.f32 0.03125, %v5041_v36  ;;  %v5038_v58 = vpop.xlane.xlu0 %5037 }
0x238e   :  { %v5042_v49 = vmul.f32 0.03125, %v5038_v58 }
0x238f   :  { %v5045_v50 = vsub.f32 %v7211_v45, %v5043_v48 }
0x2390   :  { %v5044_v46 = vsub.f32 %v7214_v47, %v5042_v49 }
0x2391   :  { %v5047_v11 = vmul.f32 %v5045_v50, %v5045_v50 }
0x2392   :  { %v5046_v1 = vmul.f32 %v5044_v46, %v5044_v46 }
0x2393   :  { %v5051_v0 = vsel %vm66_vm0, %v5047_v11, 0.0 }
0x2394   :  { %v5048_v15 = vsel %vm66_vm0, %v5046_v1, 0.0 }
0x2395   :  { %5049 = vadd.xlane.f32.xlu0 %v5048_v15 }
0x2399   :  { %5052 = vadd.xlane.f32.xlu0 %v5051_v0 }
0x2422   :  { %v5050_v2 = vpop.xlane.xlu0 %5049 }
0x2423   :  { %v5054_v4 = vmul.f32 0.03125, %v5050_v2 }
0x2425   :  { %v5056_v20 = vadd.f32 1e-06, %v5054_v4 }
0x2426   :  { %v5053_v34 = vpop.xlane.xlu0 %5052 }
0x2427   :  { %6331 = vrsqrt.f32 %v5056_v20  ;;  %v5055_v61 = vmul.f32 0.03125, %v5053_v34 }
0x2429   :  { %v5057_v13 = vadd.f32 1e-06, %v5055_v61 }
0x242b   :  { %6333 = vrsqrt.f32 %v5057_v13 }
0x2431   :  { %v6332_v55 = vpop.eup %6331 }
0x2432   :  { %v5060_v6 = vmul.f32 %v6332_v55, %v5044_v46 }
0x2434   :  { %v5066_v27 = vmul.f32 %v5391_v21, %v5060_v6 }
0x2435   :  { %v6334_v8 = vpop.eup %6333 }
0x2436   :  { %v5061_v10 = vmul.f32 %v6334_v8, %v5045_v50  ;;  %v5072_v22 = vadd.f32 %v5392_v26, %v5066_v27 }
0x2438   :  { %v5067_v24 = vmul.f32 %v5391_v21, %v5061_v10  ;;  %5948 = vmatprep.mubr.msk.f32.mxu1 %vm66_vm0, %v5072_v22 }
0x243a   :  { %v5073_v18 = vadd.f32 %v5392_v26, %v5067_v24 }
0x243c   :  { %5949 = vmatmul.mubr.msk.f32.vlgmr.msra.gmra.mrb[60].mxu1 %vm66_vm0, %v5073_v18 }
0x250f   :  { %v5950_v25 = vpop.f32.mrb[60].mxu1 }
0x2510   :  { %v5161_v29 = vadd.f32 %v5950_v25, %v5393_v16  ;;  %v5155_v42 = vpop.f32.mrb[61].mxu1 }
0x2511   :  { %v5156_v30 = vadd.f32 %v5393_v16, %v5155_v42 }
0x2512   :  { %v5165_v31 = vmax.f32 %v5161_v29, 0.0 }
0x2513   :  { %v5164_v44 = vmax.f32 %v5156_v30, 0.0 }
0x2515   :  { %5967 = vmatprep.mubr.msk.f32.mxu0 %vm5179_vm7, %v5164_v44 }
0x2516   :  { %5968 = vmatmul.mubr.msk.f32.vlgmr.msra.gmra.mrb[54].mxu0 %vm5179_vm7, %v5165_v31 }
0x25e9   :  { %v5969_v7 = vpop.f32.mrb[54].mxu0 }
0x25ea   :  { %v5258_v33 = vadd.f32 %v5969_v7, %v5396_v32  ;;  %v5252_v35 = vpop.f32.mrb[55].mxu0 }
0x25eb   :  { %v5253_v38 = vadd.f32 %v5396_v32, %v5252_v35 }
0x25ec   :  { %v5262_v39 = vadd.f32 %v5258_v33, %v7211_v45 }
0x25ed   :  { %v5261_v40 = vadd.f32 %v5253_v38, %v7214_v47 }
0x25ee   :  { %5264 = vst.msk [vmem:[#allocation2 + $0x8] sm:$0xff] %vm66_vm0, %v5262_v39 }
0x25ef   :  { %5263 = vst.msk [vmem:[#allocation2] sm:$0xff] %vm66_vm0, %v5261_v40 }
0x25f0   :  { %6350 = shalt.err (!%p6347_p4)
}
0x25f1   :  { %s6351_s17 = scalar_lea.hbm %s7295_s4, 256 }
0x25f2   :  { %p6352_p5 = scmp.ne.s32.totalorder %s7295_s4, %s6351_s17  ;;  %p6355_p6 = scmp.lt.u32.totalorder %s6351_s17, %s7295_s4 }
0x25f4   :  { %p6357_p7 = pnand %p6355_p6, %p6352_p5 }
0x25f6   :  { %6360 = shalt.err (!%p6357_p7)
}
0x25f7   :  { %s6381_s22 = smov 128  }
0x25f8   :  { %5276 = dma.vmem_to_hbm [thread:$0]  %s5271_s8, 256, %s7295_s4, [#allocation3], %s6381_s22, %s6381_s22, %s6376_s21  }
0x25f9   :  { %6361 = dma.done.wait [#allocation3], 256  }
0x25fa   :  { %6362 = vsyncadd [#allocation3], 4294967040 }
0x25fb   :  { %5280 = vsyncpa [#allocation3], 1 }

</bundles_post_ra>
